<compile_context>
chip_gen: v7x
topology: tpu7x:2x2x1
jax: 0.10.0
libtpu: 0.0.40
codegen_flags: <defaults>
</compile_context>

<pallas_src>
import math

import jax
import jax.numpy as jnp
from jax import lax
from jax.experimental import pallas as pl
from jax.experimental.pallas import tpu as pltpu


# ------------------------------ fused kernel --------------------------------

def make_mose_kernel(S, Bp, E, H, NE, NH, M, K, L):
    """Builds the fused MoSE forward kernel.

    Ref order: x(S,Bp,E), d(Bp,1), attn_w(1,E), gw1(E,NH*M), gb1(1,NH*M),
    gw2(NH*M,NH*K), gb2(1,NH*K), ln_g(1,H), ln_b(1,H), mw(NE*H,NE),
    hw(H,NH*2), hb(1,NH*2), [rnn wih,whh,b]*L, [expert wih,whh,b]*L,
    out(Bp,2), scratch: feat(S*Bp,H), eout(S*Bp,NE*H), gxr(S*Bp,4H),
    gxe(S*Bp,4*NE*H).
    """
    EH = NE * H

    def kernel(*refs):
        (x_ref, d_ref, attn_w_ref, gw1_ref, gb1_ref, gw2_ref, gb2_ref,
         ln_g_ref, ln_b_ref, mw_ref, hw_ref, hb_ref) = refs[:12]
        rnn_refs = refs[12:12 + 3 * L]
        exp_refs = refs[12 + 3 * L:12 + 6 * L]
        out_ref = refs[12 + 6 * L]
        feat_s, eout_s, gxr_s, gxe_s = refs[12 + 6 * L + 1:]

        x3 = x_ref[...]                                   # (S, Bp, E)
        x_flat = x3.reshape(S * Bp, E)
        d = d_ref[...]                                    # (Bp, 1) int32
        # mask_nonzero = where(x.sum(-1) == 0, 0, 1)
        valid = jnp.sum(x3, axis=-1, keepdims=True) != 0.0   # (S, Bp, 1)

        # ---------------- gate attention over x + gate MLP -------------------
        w3 = attn_w_ref[...].reshape(1, 1, E)
        g_scores = jnp.sum(x3 * w3, axis=-1, keepdims=True)     # (S, Bp, 1)
        g_scores = jnp.where(valid, g_scores, -1e30)
        g_probs = jax.nn.softmax(g_scores, axis=0)               # (S, Bp, 1)
        gate_feature = jnp.sum(g_probs * x3, axis=0)             # (Bp, E)

        h1 = jnp.maximum(
            jnp.dot(gate_feature, gw1_ref[...],
                    preferred_element_type=jnp.float32) + gb1_ref[...], 0.0)
        g_logits = jnp.dot(h1, gw2_ref[...],
                           preferred_element_type=jnp.float32) + gb2_ref[...]
        gate_value = jnp.zeros((Bp, K), jnp.float32)
        for hh in range(NH):                              # per-sample D select
            p = jax.nn.softmax(g_logits[:, hh * K:(hh + 1) * K], axis=-1)
            gate_value = jnp.where(d == hh, p, gate_value)

        # ------------- LSTM stack with hoisted input projection --------------
        def run_lstm_stack(inp_flat, w_refs, gx_s, out_s, width):
            cur = inp_flat                                # (S*Bp, Din)
            for l in range(L):
                wih = w_refs[3 * l][...]
                whh = w_refs[3 * l + 1][...]
                b = w_refs[3 * l + 2][...]
                # hoisted: one big matmul for all timesteps
                gx_s[...] = jnp.dot(cur, wih,
                                    preferred_element_type=jnp.float32) + b

                def step(t, carry):
                    h, c = carry
                    r0 = pl.multiple_of(t * Bp, Bp)
                    gates = gx_s[pl.ds(r0, Bp), :] + jnp.dot(
                        h, whh, preferred_element_type=jnp.float32)
                    i_g = jax.nn.sigmoid(gates[:, 0 * width:1 * width])
                    f_g = jax.nn.sigmoid(gates[:, 1 * width:2 * width])
                    g_g = jnp.tanh(gates[:, 2 * width:3 * width])
                    o_g = jax.nn.sigmoid(gates[:, 3 * width:4 * width])
                    c_new = f_g * c + i_g * g_g
                    h_new = o_g * jnp.tanh(c_new)
                    out_s[pl.ds(r0, Bp), :] = h_new
                    return (h_new, c_new)

                zero = jnp.zeros((Bp, width), jnp.float32)
                lax.fori_loop(0, S, step, (zero, zero), unroll=True)
                cur = out_s[...]
            return cur

        # shared rnn LSTM + fused LayerNorm
        feat = run_lstm_stack(x_flat, rnn_refs, gxr_s, feat_s, H)  # (S*Bp, H)
        mean = jnp.mean(feat, axis=-1, keepdims=True)
        var = jnp.mean(jnp.square(feat - mean), axis=-1, keepdims=True)
        feat = (feat - mean) * lax.rsqrt(var + 1e-5) * ln_g_ref[...] + ln_b_ref[...]

        # all NE experts fused into one wide recurrence
        eout = run_lstm_stack(feat, exp_refs, gxe_s, eout_s, EH)   # (S*Bp, EH)

        # per-expert mask attention (one block-diag matmul) + gated accumulation
        e_scores = jnp.dot(eout, mw_ref[...],
                           preferred_element_type=jnp.float32).reshape(S, Bp, NE)
        e_scores = jnp.where(valid, e_scores, -1e30)
        e_probs = jax.nn.softmax(e_scores, axis=0)                 # (S, Bp, NE)
        # fold the gate weights into the attention weights before pooling
        e_w = e_probs * gate_value.reshape(1, Bp, NE)              # (S, Bp, NE)
        eout3 = eout.reshape(S, Bp, EH)
        rep = jnp.zeros((Bp, H), jnp.float32)
        for e in range(NE):
            rep = rep + jnp.sum(e_w[:, :, e:e + 1]
                                * eout3[:, :, e * H:(e + 1) * H], axis=0)

        # ----------------- per-sample head + final softmax -------------------
        h_logits = jnp.dot(rep, hw_ref[...],
                           preferred_element_type=jnp.float32) + hb_ref[...]
        out = jnp.zeros((Bp, 2), jnp.float32)
        for hh in range(NH):
            p = jax.nn.softmax(h_logits[:, 2 * hh:2 * hh + 2], axis=-1)
            out = jnp.where(d == hh, p, out)
        out_ref[...] = out

    return kernel


# ------------------------------- wrapper -------------------------------------

def mose_forward(packed, x, D):
    """x: (B, S, emb_dim) f32, D: (B,) int32 domain index -> (B, 2)."""
    B, S, E = x.shape
    H, NE, NH, M, K, L = (packed[k] for k in ("H", "NE", "NH", "M", "K", "L"))
    Bp = max(8, -(-B // 8) * 8)                    # pad batch to full sublanes

    x_p = jnp.pad(x, ((0, Bp - B), (0, 0), (0, 0)))
    x_tm = jnp.transpose(x_p, (1, 0, 2))           # time-major (S, Bp, E)
    d_p = jnp.pad(D.astype(jnp.int32), (0, Bp - B)).reshape(Bp, 1)

    args = [x_tm, d_p, packed["attn_w"], packed["gw1"], packed["gb1"],
            packed["gw2"], packed["gb2"], packed["ln_g"], packed["ln_b"],
            packed["mw"], packed["hw"], packed["hb"]]
    for t in packed["rnn"]:
        args += list(t)
    for t in packed["exp"]:
        args += list(t)

    vmem = pl.BlockSpec(memory_space=pltpu.MemorySpace.VMEM)
    out = pl.pallas_call(
        make_mose_kernel(S, Bp, E, H, NE, NH, M, K, L),
        out_shape=jax.ShapeDtypeStruct((Bp, 2), jnp.float32),
        in_specs=[vmem] * len(args),
        out_specs=vmem,
        scratch_shapes=[
            pltpu.VMEM((S * Bp, H), jnp.float32),          # rnn/feature seq
            pltpu.VMEM((S * Bp, NE * H), jnp.float32),     # fused expert seq
            pltpu.VMEM((S * Bp, 4 * H), jnp.float32),      # hoisted rnn gates
            pltpu.VMEM((S * Bp, 4 * NE * H), jnp.float32), # hoisted expert gates
        ],
    )(*args)
    return out[:B]


# --------------------- weight packing (torch layout -> kernel) ---------------

def _blockdiag(mats):
    n = len(mats)
    r, c = mats[0].shape
    out = jnp.zeros((n * r, n * c), jnp.float32)
    for i, m in enumerate(mats):
        out = out.at[i * r:(i + 1) * r, i * c:(i + 1) * c].set(m)
    return out


def _combine_gatemajor(w_list):
    """[(Din,4H)]*E -> (Din, 4*E*H), columns gate-type-major, expert within."""
    E_ = len(w_list)
    Din, fourH = w_list[0].shape
    H = fourH // 4
    w = jnp.stack(w_list, axis=0).reshape(E_, Din, 4, H)
    return jnp.transpose(w, (1, 2, 0, 3)).reshape(Din, 4 * E_ * H)


def _combine_hh(w_list):
    """[(H,4H)]*E -> block-diag (E*H, 4*E*H), columns gate-type-major."""
    E_ = len(w_list)
    H = w_list[0].shape[0]
    out = jnp.zeros((E_ * H, 4, E_, H), jnp.float32)
    for e, w in enumerate(w_list):
        out = out.at[e * H:(e + 1) * H, :, e, :].set(w.reshape(H, 4, H))
    return out.reshape(E_ * H, 4 * E_ * H)


def _combine_bias(b_list):
    E_ = len(b_list)
    H = b_list[0].shape[1] // 4
    b = jnp.stack(b_list, 0).reshape(E_, 4, H)
    return jnp.transpose(b, (1, 0, 2)).reshape(1, 4 * E_ * H)


def pack_params(tp):
    L = len(tp["rnn"])
    H = tp["ln_g"].shape[-1]
    NE = len(tp["experts"])
    NH = len(tp["gate"])
    E = tp["attn_w"].shape[1]
    M = tp["gate"][0][0].shape[1]
    K = tp["gate"][0][2].shape[1]

    exp_layers = []
    for l in range(L):
        wih_list = [tp["experts"][e][l][0] for e in range(NE)]
        whh_list = [tp["experts"][e][l][1] for e in range(NE)]
        b_list = [tp["experts"][e][l][2] for e in range(NE)]
        wih_c = _combine_gatemajor(wih_list) if l == 0 else _combine_hh(wih_list)
        exp_layers.append((wih_c, _combine_hh(whh_list), _combine_bias(b_list)))

    return {
        "L": L, "H": H, "NE": NE, "NH": NH, "E": E, "M": M, "K": K,
        "attn_w": tp["attn_w"],
        "ln_g": tp["ln_g"], "ln_b": tp["ln_b"],
        "rnn": [tuple(layer) for layer in tp["rnn"]],
        "exp": exp_layers,
        "mw": _blockdiag([w.T for w in tp["mask_w"]]),                   # (NE*H, NE)
        "gw1": jnp.concatenate([g[0] for g in tp["gate"]], axis=1),      # (E, NH*M)
        "gb1": jnp.concatenate([g[1] for g in tp["gate"]], axis=1),
        "gw2": _blockdiag([g[2] for g in tp["gate"]]),                   # (NH*M, NH*K)
        "gb2": jnp.concatenate([g[3] for g in tp["gate"]], axis=1),
        "hw": jnp.concatenate([h[0] for h in tp["head"]], axis=1),       # (H, NH*2)
        "hb": jnp.concatenate([h[1] for h in tp["head"]], axis=1),
    }


# --------------------------- parameter creation -------------------------------

def init_params(key, emb_dim, num_layers, mlp_dims, num_expert, num_head):
    H = mlp_dims[0]
    M = mlp_dims[-1]
    keys = iter(jax.random.split(key, 1024))

    def u(shape, bound):
        return jax.random.uniform(next(keys), shape, jnp.float32, -bound, bound)

    kH = 1.0 / math.sqrt(H)
    kE = 1.0 / math.sqrt(emb_dim)
    kM = 1.0 / math.sqrt(M)

    def lstm_params(din):
        layers = []
        for l in range(num_layers):
            d = din if l == 0 else H
            layers.append((u((d, 4 * H), kH),               # W_ih^T, cols i|f|g|o
                           u((H, 4 * H), kH),               # W_hh^T
                           u((1, 4 * H), kH) + u((1, 4 * H), kH)))  # b_ih + b_hh
        return layers

    return {
        "attn_w": u((1, emb_dim), kE),                      # Linear(E,1,bias=False)
        "rnn": lstm_params(emb_dim),
        "ln_g": jnp.ones((1, H), jnp.float32),
        "ln_b": jnp.zeros((1, H), jnp.float32),
        "experts": [lstm_params(H) for _ in range(num_expert)],
        "mask_w": [u((1, H), kH) for _ in range(num_expert)],
        "gate": [(u((emb_dim, M), kE), u((1, M), kE),
                  u((M, num_expert), kM), u((1, num_expert), kM))
                 for _ in range(num_head)],
        "head": [(u((H, 2), kH), u((1, 2), kH)) for _ in range(num_head)],
    }


# ----------------------- pure-JAX reference (for checking) -------------------

def reference_forward(tp, x, D):
    B, S, E = x.shape
    H = tp["ln_g"].shape[-1]
    valid = jnp.sum(x, axis=-1) != 0                        # (B, S)

    def mask_attn(inp, w1d, valid_):
        scores = jnp.einsum('bsd,d->bs', inp, w1d)
        scores = jnp.where(valid_, scores, -1e30)
        p = jax.nn.softmax(scores, axis=-1)
        return jnp.einsum('bs,bsd->bd', p, inp)

    def lstm(seq, layers):
        out = seq
        for (wih, whh, b) in layers:
            Hh = whh.shape[0]

            def step(carry, x_t):
                h, c = carry
                gates = x_t @ wih + h @ whh + b
                i = jax.nn.sigmoid(gates[:, :Hh])
                f = jax.nn.sigmoid(gates[:, Hh:2 * Hh])
                g = jnp.tanh(gates[:, 2 * Hh:3 * Hh])
                o = jax.nn.sigmoid(gates[:, 3 * Hh:])
                c = f * c + i * g
                h = o * jnp.tanh(c)
                return (h, c), h

            xs = jnp.transpose(out, (1, 0, 2))
            (_, _), hs = lax.scan(step, (jnp.zeros((B, Hh)), jnp.zeros((B, Hh))), xs)
            out = jnp.transpose(hs, (1, 0, 2))
        return out

    gf = mask_attn(x, tp["attn_w"][0], valid)
    gate_rows = []
    for b in range(B):
        w1, b1, w2, b2 = tp["gate"][int(D[b])]
        h1 = jnp.maximum(gf[b:b + 1] @ w1 + b1, 0.0)
        gate_rows.append(jax.nn.softmax(h1 @ w2 + b2, axis=-1))
    gate_value = jnp.concatenate(gate_rows, axis=0)

    feat = lstm(x, tp["rnn"])
    mean = jnp.mean(feat, -1, keepdims=True)
    var = jnp.mean((feat - mean) ** 2, -1, keepdims=True)
    feat = (feat - mean) * lax.rsqrt(var + 1e-5) * tp["ln_g"] + tp["ln_b"]

    rep = jnp.zeros((B, H), jnp.float32)
    for e in range(len(tp["experts"])):
        t = lstm(feat, tp["experts"][e])
        t = mask_attn(t, tp["mask_w"][e][0], valid)
        rep = rep + gate_value[:, e:e + 1] * t

    outs = []
    for b in range(B):
        wh, bh = tp["head"][int(D[b])]
        outs.append(jax.nn.softmax(rep[b:b + 1] @ wh + bh, axis=-1))
    return jnp.concatenate(outs, axis=0)


if __name__ == "__main__":
    emb_dim, num_layers, mlp_dims = 16, 1, [32]
    num_expert, num_head = 3, 2
    B, S = 2, 8

    key = jax.random.PRNGKey(0)
    kx, kp = jax.random.split(key)
    x = jax.random.normal(kx, (B, S, emb_dim), jnp.float32)
    D = jnp.array([0, 1], dtype=jnp.int32)          # domain index per sample

    tp = init_params(kp, emb_dim, num_layers, mlp_dims, num_expert, num_head)
    packed = pack_params(tp)

    out = mose_forward(packed, x, D)
    out = jax.block_until_ready(out)

    assert out.shape == (B, 2)
    assert bool(jnp.all(jnp.isfinite(out)))
    assert bool(jnp.allclose(jnp.sum(out, axis=-1), 1.0, atol=1e-5))
    # cross-check against a straightforward pure-JAX reference (loose tolerance
    # to allow for matmul-precision differences; structural bugs would be O(0.1))
    ref = reference_forward(tp, x, D)
    assert bool(jnp.allclose(out, ref, atol=2e-2, rtol=2e-2))
    print("KERNEL_OK")
</pallas_src>

<mosaic_0001>
module attributes {stable_mosaic.version = 11 : i64} {
  func.func @kernel(%arg0: memref<8x8x16xf32, #tpu.memory_space<vmem>>, %arg1: memref<8x1xi32, #tpu.memory_space<vmem>>, %arg2: memref<1x16xf32, #tpu.memory_space<vmem>>, %arg3: memref<16x64xf32, #tpu.memory_space<vmem>>, %arg4: memref<1x64xf32, #tpu.memory_space<vmem>>, %arg5: memref<64x6xf32, #tpu.memory_space<vmem>>, %arg6: memref<1x6xf32, #tpu.memory_space<vmem>>, %arg7: memref<1x32xf32, #tpu.memory_space<vmem>>, %arg8: memref<1x32xf32, #tpu.memory_space<vmem>>, %arg9: memref<96x3xf32, #tpu.memory_space<vmem>>, %arg10: memref<32x4xf32, #tpu.memory_space<vmem>>, %arg11: memref<1x4xf32, #tpu.memory_space<vmem>>, %arg12: memref<16x128xf32, #tpu.memory_space<vmem>>, %arg13: memref<32x128xf32, #tpu.memory_space<vmem>>, %arg14: memref<1x128xf32, #tpu.memory_space<vmem>>, %arg15: memref<32x384xf32, #tpu.memory_space<vmem>>, %arg16: memref<96x384xf32, #tpu.memory_space<vmem>>, %arg17: memref<1x384xf32, #tpu.memory_space<vmem>>, %arg18: memref<8x2xf32, #tpu.memory_space<vmem>>, %arg19: memref<64x32xf32, #tpu.memory_space<vmem>>, %arg20: memref<64x96xf32, #tpu.memory_space<vmem>>, %arg21: memref<64x128xf32, #tpu.memory_space<vmem>>, %arg22: memref<64x384xf32, #tpu.memory_space<vmem>>) attributes {dimension_semantics = [], scalar_prefetch = 0 : i64, scratch_operands = 4 : i64, tpu.core_type = #tpu.core_type<tc>} {
    %c0 = arith.constant 0 : index
    %c0_0 = arith.constant 0 : index
    %c0_1 = arith.constant 0 : index
    %0 = vector.load %arg0[%c0, %c0_0, %c0_1] : memref<8x8x16xf32, #tpu.memory_space<vmem>>, vector<8x8x16xf32>
    %1 = vector.shape_cast %0 : vector<8x8x16xf32> to vector<64x16xf32>
    %c0_2 = arith.constant 0 : index
    %c0_3 = arith.constant 0 : index
    %2 = vector.load %arg1[%c0_2, %c0_3] : memref<8x1xi32, #tpu.memory_space<vmem>>, vector<8x1xi32>
    %cst = arith.constant dense<0.000000e+00> : vector<8x8xf32>
    %3 = vector.multi_reduction <add>, %0, %cst [2] : vector<8x8x16xf32> to vector<8x8xf32>
    %4 = vector.shape_cast %3 : vector<8x8xf32> to vector<8x8x1xf32>
    %cst_4 = arith.constant 0.000000e+00 : f32
    %5 = vector.broadcast %cst_4 : f32 to vector<8x8x1xf32>
    %6 = arith.cmpf one, %4, %5 : vector<8x8x1xf32>
    %c0_5 = arith.constant 0 : index
    %c0_6 = arith.constant 0 : index
    %7 = vector.load %arg2[%c0_5, %c0_6] : memref<1x16xf32, #tpu.memory_space<vmem>>, vector<1x16xf32>
    %8 = vector.shape_cast %7 : vector<1x16xf32> to vector<1x1x16xf32>
    %9 = vector.broadcast %8 : vector<1x1x16xf32> to vector<8x8x16xf32>
    %10 = arith.mulf %0, %9 : vector<8x8x16xf32>
    %cst_7 = arith.constant dense<0.000000e+00> : vector<8x8xf32>
    %11 = vector.multi_reduction <add>, %10, %cst_7 [2] : vector<8x8x16xf32> to vector<8x8xf32>
    %12 = vector.shape_cast %11 : vector<8x8xf32> to vector<8x8x1xf32>
    %cst_8 = arith.constant -1.000000e+30 : f32
    %13 = vector.broadcast %cst_8 : f32 to vector<8x8x1xf32>
    %14 = arith.select %6, %12, %13 : vector<8x8x1xi1>, vector<8x8x1xf32>
    %cst_9 = arith.constant dense<0xFF800000> : vector<8x1xf32>
    %15 = vector.multi_reduction <maximumf>, %14, %cst_9 [0] : vector<8x8x1xf32> to vector<8x1xf32>
    %cst_10 = arith.constant 0xFF800000 : f32
    %16 = vector.broadcast %cst_10 : f32 to vector<8x1xf32>
    %17 = arith.maximumf %16, %15 : vector<8x1xf32>
    %18 = vector.shape_cast %17 : vector<8x1xf32> to vector<1x8x1xf32>
    %19 = vector.broadcast %18 : vector<1x8x1xf32> to vector<8x8x1xf32>
    %20 = arith.subf %14, %19 : vector<8x8x1xf32>
    %21 = math.exp %20 : vector<8x8x1xf32>
    %cst_11 = arith.constant dense<0.000000e+00> : vector<8x1xf32>
    %22 = vector.multi_reduction <add>, %21, %cst_11 [0] : vector<8x8x1xf32> to vector<8x1xf32>
    %23 = vector.shape_cast %22 : vector<8x1xf32> to vector<1x8x1xf32>
    %24 = vector.broadcast %23 : vector<1x8x1xf32> to vector<8x8x1xf32>
    %25 = arith.divf %21, %24 : vector<8x8x1xf32>
    %26 = vector.broadcast %25 : vector<8x8x1xf32> to vector<8x8x16xf32>
    %27 = arith.mulf %26, %0 : vector<8x8x16xf32>
    %cst_12 = arith.constant dense<0.000000e+00> : vector<8x16xf32>
    %28 = vector.multi_reduction <add>, %27, %cst_12 [0] : vector<8x8x16xf32> to vector<8x16xf32>
    %c0_13 = arith.constant 0 : index
    %c0_14 = arith.constant 0 : index
    %29 = vector.load %arg3[%c0_13, %c0_14] : memref<16x64xf32, #tpu.memory_space<vmem>>, vector<16x64xf32>
    %cst_15 = arith.constant dense<0.000000e+00> : vector<8x64xf32>
    %30 = tpu.matmul %28, %29, %cst_15 {dimension_numbers = #tpu.dot_dimension_numbers<[1], [0], [0], [1], [0, 0, 1, 1], [], []>} : vector<8x16xf32>, vector<16x64xf32>, vector<8x64xf32> -> vector<8x64xf32>
    %c0_16 = arith.constant 0 : index
    %c0_17 = arith.constant 0 : index
    %31 = vector.load %arg4[%c0_16, %c0_17] : memref<1x64xf32, #tpu.memory_space<vmem>>, vector<1x64xf32>
    %32 = vector.broadcast %31 : vector<1x64xf32> to vector<8x64xf32>
    %33 = arith.addf %30, %32 : vector<8x64xf32>
    %cst_18 = arith.constant 0.000000e+00 : f32
    %34 = vector.broadcast %cst_18 : f32 to vector<8x64xf32>
    %35 = arith.maximumf %33, %34 : vector<8x64xf32>
    %c0_19 = arith.constant 0 : index
    %c0_20 = arith.constant 0 : index
    %36 = vector.load %arg5[%c0_19, %c0_20] : memref<64x6xf32, #tpu.memory_space<vmem>>, vector<64x6xf32>
    %cst_21 = arith.constant dense<0.000000e+00> : vector<8x6xf32>
    %37 = tpu.matmul %35, %36, %cst_21 {dimension_numbers = #tpu.dot_dimension_numbers<[1], [0], [0], [1], [0, 0, 1, 1], [], []>} : vector<8x64xf32>, vector<64x6xf32>, vector<8x6xf32> -> vector<8x6xf32>
    %c0_22 = arith.constant 0 : index
    %c0_23 = arith.constant 0 : index
    %38 = vector.load %arg6[%c0_22, %c0_23] : memref<1x6xf32, #tpu.memory_space<vmem>>, vector<1x6xf32>
    %39 = vector.broadcast %38 : vector<1x6xf32> to vector<8x6xf32>
    %40 = arith.addf %37, %39 : vector<8x6xf32>
    %cst_24 = arith.constant 0.000000e+00 : f32
    %41 = vector.broadcast %cst_24 : f32 to vector<8x3xf32>
    %42 = vector.extract_strided_slice %40 {offsets = [0, 0], sizes = [8, 3], strides = [1, 1]} : vector<8x6xf32> to vector<8x3xf32>
    %cst_25 = arith.constant dense<0xFF800000> : vector<8xf32>
    %43 = vector.multi_reduction <maximumf>, %42, %cst_25 [1] : vector<8x3xf32> to vector<8xf32>
    %cst_26 = arith.constant 0xFF800000 : f32
    %44 = vector.broadcast %cst_26 : f32 to vector<8xf32>
    %45 = arith.maximumf %44, %43 : vector<8xf32>
    %46 = vector.shape_cast %45 : vector<8xf32> to vector<8x1xf32>
    %47 = vector.broadcast %46 : vector<8x1xf32> to vector<8x3xf32>
    %48 = arith.subf %42, %47 : vector<8x3xf32>
    %49 = math.exp %48 : vector<8x3xf32>
    %cst_27 = arith.constant dense<0.000000e+00> : vector<8xf32>
    %50 = vector.multi_reduction <add>, %49, %cst_27 [1] : vector<8x3xf32> to vector<8xf32>
    %51 = vector.shape_cast %50 : vector<8xf32> to vector<8x1xf32>
    %52 = vector.broadcast %51 : vector<8x1xf32> to vector<8x3xf32>
    %53 = arith.divf %49, %52 : vector<8x3xf32>
    %c0_i32 = arith.constant 0 : i32
    %54 = vector.broadcast %c0_i32 : i32 to vector<8x1xi32>
    %55 = arith.cmpi eq, %2, %54 : vector<8x1xi32>
    %56 = vector.shape_cast %55 : vector<8x1xi1> to vector<8x1xi1>
    %57 = vector.broadcast %56 : vector<8x1xi1> to vector<8x3xi1>
    %58 = arith.select %57, %53, %41 : vector<8x3xi1>, vector<8x3xf32>
    %59 = vector.extract_strided_slice %40 {offsets = [0, 3], sizes = [8, 3], strides = [1, 1]} : vector<8x6xf32> to vector<8x3xf32>
    %cst_28 = arith.constant dense<0xFF800000> : vector<8xf32>
    %60 = vector.multi_reduction <maximumf>, %59, %cst_28 [1] : vector<8x3xf32> to vector<8xf32>
    %cst_29 = arith.constant 0xFF800000 : f32
    %61 = vector.broadcast %cst_29 : f32 to vector<8xf32>
    %62 = arith.maximumf %61, %60 : vector<8xf32>
    %63 = vector.shape_cast %62 : vector<8xf32> to vector<8x1xf32>
    %64 = vector.broadcast %63 : vector<8x1xf32> to vector<8x3xf32>
    %65 = arith.subf %59, %64 : vector<8x3xf32>
    %66 = math.exp %65 : vector<8x3xf32>
    %cst_30 = arith.constant dense<0.000000e+00> : vector<8xf32>
    %67 = vector.multi_reduction <add>, %66, %cst_30 [1] : vector<8x3xf32> to vector<8xf32>
    %68 = vector.shape_cast %67 : vector<8xf32> to vector<8x1xf32>
    %69 = vector.broadcast %68 : vector<8x1xf32> to vector<8x3xf32>
    %70 = arith.divf %66, %69 : vector<8x3xf32>
    %c1_i32 = arith.constant 1 : i32
    %71 = vector.broadcast %c1_i32 : i32 to vector<8x1xi32>
    %72 = arith.cmpi eq, %2, %71 : vector<8x1xi32>
    %73 = vector.shape_cast %72 : vector<8x1xi1> to vector<8x1xi1>
    %74 = vector.broadcast %73 : vector<8x1xi1> to vector<8x3xi1>
    %75 = arith.select %74, %70, %58 : vector<8x3xi1>, vector<8x3xf32>
    %c0_31 = arith.constant 0 : index
    %c0_32 = arith.constant 0 : index
    %76 = vector.load %arg12[%c0_31, %c0_32] : memref<16x128xf32, #tpu.memory_space<vmem>>, vector<16x128xf32>
    %c0_33 = arith.constant 0 : index
    %c0_34 = arith.constant 0 : index
    %77 = vector.load %arg13[%c0_33, %c0_34] : memref<32x128xf32, #tpu.memory_space<vmem>>, vector<32x128xf32>
    %c0_35 = arith.constant 0 : index
    %c0_36 = arith.constant 0 : index
    %78 = vector.load %arg14[%c0_35, %c0_36] : memref<1x128xf32, #tpu.memory_space<vmem>>, vector<1x128xf32>
    %cst_37 = arith.constant dense<0.000000e+00> : vector<64x128xf32>
    %79 = tpu.matmul %1, %76, %cst_37 {dimension_numbers = #tpu.dot_dimension_numbers<[1], [0], [0], [1], [0, 0, 1, 1], [], []>} : vector<64x16xf32>, vector<16x128xf32>, vector<64x128xf32> -> vector<64x128xf32>
    %80 = vector.broadcast %78 : vector<1x128xf32> to vector<64x128xf32>
    %81 = arith.addf %79, %80 : vector<64x128xf32>
    %c0_38 = arith.constant 0 : index
    %c0_39 = arith.constant 0 : index
    %82 = vector.load %arg21[%c0_38, %c0_39] : memref<64x128xf32, #tpu.memory_space<vmem>>, vector<64x128xf32>
    tpu.vector_store %arg21[%c0_38, %c0_39], %81 {strides = array<i32>} : memref<64x128xf32, #tpu.memory_space<vmem>>, vector<64x128xf32>,
    %cst_40 = arith.constant 0.000000e+00 : f32
    %83 = vector.broadcast %cst_40 : f32 to vector<8x32xf32>
    %c0_i32_41 = arith.constant 0 : i32
    %c8_i32 = arith.constant 8 : i32
    %84 = arith.muli %c0_i32_41, %c8_i32 : i32
    %85 = tpu.assume_multiple %84, 8 : i32
    %86 = arith.index_cast %85 : i32 to index
    %c0_42 = arith.constant 0 : index
    %87 = vector.load %arg21[%86, %c0_42] : memref<64x128xf32, #tpu.memory_space<vmem>>, vector<8x128xf32>
    %cst_43 = arith.constant dense<0.000000e+00> : vector<8x128xf32>
    %88 = tpu.matmul %83, %77, %cst_43 {dimension_numbers = #tpu.dot_dimension_numbers<[1], [0], [0], [1], [0, 0, 1, 1], [], []>} : vector<8x32xf32>, vector<32x128xf32>, vector<8x128xf32> -> vector<8x128xf32>
    %89 = arith.addf %87, %88 : vector<8x128xf32>
    %90 = vector.extract_strided_slice %89 {offsets = [0, 0], sizes = [8, 32], strides = [1, 1]} : vector<8x128xf32> to vector<8x32xf32>
    %91 = arith.negf %90 : vector<8x32xf32>
    %92 = math.exp %91 : vector<8x32xf32>
    %cst_44 = arith.constant 1.000000e+00 : f32
    %93 = vector.broadcast %cst_44 : f32 to vector<8x32xf32>
    %94 = arith.addf %93, %92 : vector<8x32xf32>
    %95 = arith.divf %93, %94 : vector<8x32xf32>
    %96 = vector.extract_strided_slice %89 {offsets = [0, 32], sizes = [8, 32], strides = [1, 1]} : vector<8x128xf32> to vector<8x32xf32>
    %97 = arith.negf %96 : vector<8x32xf32>
    %98 = math.exp %97 : vector<8x32xf32>
    %cst_45 = arith.constant 1.000000e+00 : f32
    %99 = vector.broadcast %cst_45 : f32 to vector<8x32xf32>
    %100 = arith.addf %99, %98 : vector<8x32xf32>
    %101 = arith.divf %99, %100 : vector<8x32xf32>
    %102 = vector.extract_strided_slice %89 {offsets = [0, 64], sizes = [8, 32], strides = [1, 1]} : vector<8x128xf32> to vector<8x32xf32>
    %103 = math.tanh %102 : vector<8x32xf32>
    %104 = vector.extract_strided_slice %89 {offsets = [0, 96], sizes = [8, 32], strides = [1, 1]} : vector<8x128xf32> to vector<8x32xf32>
    %105 = arith.negf %104 : vector<8x32xf32>
    %106 = math.exp %105 : vector<8x32xf32>
    %cst_46 = arith.constant 1.000000e+00 : f32
    %107 = vector.broadcast %cst_46 : f32 to vector<8x32xf32>
    %108 = arith.addf %107, %106 : vector<8x32xf32>
    %109 = arith.divf %107, %108 : vector<8x32xf32>
    %110 = arith.mulf %101, %83 : vector<8x32xf32>
    %111 = arith.mulf %95, %103 : vector<8x32xf32>
    %112 = arith.addf %110, %111 : vector<8x32xf32>
    %113 = math.tanh %112 : vector<8x32xf32>
    %114 = arith.mulf %109, %113 : vector<8x32xf32>
    %115 = arith.index_cast %85 : i32 to index
    %c0_47 = arith.constant 0 : index
    %116 = vector.load %arg19[%115, %c0_47] : memref<64x32xf32, #tpu.memory_space<vmem>>, vector<8x32xf32>
    tpu.vector_store %arg19[%115, %c0_47], %114 {strides = array<i32>} : memref<64x32xf32, #tpu.memory_space<vmem>>, vector<8x32xf32>,
    %c1_i32_48 = arith.constant 1 : i32
    %c8_i32_49 = arith.constant 8 : i32
    %117 = arith.muli %c1_i32_48, %c8_i32_49 : i32
    %118 = tpu.assume_multiple %117, 8 : i32
    %119 = arith.index_cast %118 : i32 to index
    %c0_50 = arith.constant 0 : index
    %120 = vector.load %arg21[%119, %c0_50] : memref<64x128xf32, #tpu.memory_space<vmem>>, vector<8x128xf32>
    %cst_51 = arith.constant dense<0.000000e+00> : vector<8x128xf32>
    %121 = tpu.matmul %114, %77, %cst_51 {dimension_numbers = #tpu.dot_dimension_numbers<[1], [0], [0], [1], [0, 0, 1, 1], [], []>} : vector<8x32xf32>, vector<32x128xf32>, vector<8x128xf32> -> vector<8x128xf32>
    %122 = arith.addf %120, %121 : vector<8x128xf32>
    %123 = vector.extract_strided_slice %122 {offsets = [0, 0], sizes = [8, 32], strides = [1, 1]} : vector<8x128xf32> to vector<8x32xf32>
    %124 = arith.negf %123 : vector<8x32xf32>
    %125 = math.exp %124 : vector<8x32xf32>
    %cst_52 = arith.constant 1.000000e+00 : f32
    %126 = vector.broadcast %cst_52 : f32 to vector<8x32xf32>
    %127 = arith.addf %126, %125 : vector<8x32xf32>
    %128 = arith.divf %126, %127 : vector<8x32xf32>
    %129 = vector.extract_strided_slice %122 {offsets = [0, 32], sizes = [8, 32], strides = [1, 1]} : vector<8x128xf32> to vector<8x32xf32>
    %130 = arith.negf %129 : vector<8x32xf32>
    %131 = math.exp %130 : vector<8x32xf32>
    %cst_53 = arith.constant 1.000000e+00 : f32
    %132 = vector.broadcast %cst_53 : f32 to vector<8x32xf32>
    %133 = arith.addf %132, %131 : vector<8x32xf32>
    %134 = arith.divf %132, %133 : vector<8x32xf32>
    %135 = vector.extract_strided_slice %122 {offsets = [0, 64], sizes = [8, 32], strides = [1, 1]} : vector<8x128xf32> to vector<8x32xf32>
    %136 = math.tanh %135 : vector<8x32xf32>
    %137 = vector.extract_strided_slice %122 {offsets = [0, 96], sizes = [8, 32], strides = [1, 1]} : vector<8x128xf32> to vector<8x32xf32>
    %138 = arith.negf %137 : vector<8x32xf32>
    %139 = math.exp %138 : vector<8x32xf32>
    %cst_54 = arith.constant 1.000000e+00 : f32
    %140 = vector.broadcast %cst_54 : f32 to vector<8x32xf32>
    %141 = arith.addf %140, %139 : vector<8x32xf32>
    %142 = arith.divf %140, %141 : vector<8x32xf32>
    %143 = arith.mulf %134, %112 : vector<8x32xf32>
    %144 = arith.mulf %128, %136 : vector<8x32xf32>
    %145 = arith.addf %143, %144 : vector<8x32xf32>
    %146 = math.tanh %145 : vector<8x32xf32>
    %147 = arith.mulf %142, %146 : vector<8x32xf32>
    %148 = arith.index_cast %118 : i32 to index
    %c0_55 = arith.constant 0 : index
    %149 = vector.load %arg19[%148, %c0_55] : memref<64x32xf32, #tpu.memory_space<vmem>>, vector<8x32xf32>
    tpu.vector_store %arg19[%148, %c0_55], %147 {strides = array<i32>} : memref<64x32xf32, #tpu.memory_space<vmem>>, vector<8x32xf32>,
    %c2_i32 = arith.constant 2 : i32
    %c8_i32_56 = arith.constant 8 : i32
    %150 = arith.muli %c2_i32, %c8_i32_56 : i32
    %151 = tpu.assume_multiple %150, 8 : i32
    %152 = arith.index_cast %151 : i32 to index
    %c0_57 = arith.constant 0 : index
    %153 = vector.load %arg21[%152, %c0_57] : memref<64x128xf32, #tpu.memory_space<vmem>>, vector<8x128xf32>
    %cst_58 = arith.constant dense<0.000000e+00> : vector<8x128xf32>
    %154 = tpu.matmul %147, %77, %cst_58 {dimension_numbers = #tpu.dot_dimension_numbers<[1], [0], [0], [1], [0, 0, 1, 1], [], []>} : vector<8x32xf32>, vector<32x128xf32>, vector<8x128xf32> -> vector<8x128xf32>
    %155 = arith.addf %153, %154 : vector<8x128xf32>
    %156 = vector.extract_strided_slice %155 {offsets = [0, 0], sizes = [8, 32], strides = [1, 1]} : vector<8x128xf32> to vector<8x32xf32>
    %157 = arith.negf %156 : vector<8x32xf32>
    %158 = math.exp %157 : vector<8x32xf32>
    %cst_59 = arith.constant 1.000000e+00 : f32
    %159 = vector.broadcast %cst_59 : f32 to vector<8x32xf32>
    %160 = arith.addf %159, %158 : vector<8x32xf32>
    %161 = arith.divf %159, %160 : vector<8x32xf32>
    %162 = vector.extract_strided_slice %155 {offsets = [0, 32], sizes = [8, 32], strides = [1, 1]} : vector<8x128xf32> to vector<8x32xf32>
    %163 = arith.negf %162 : vector<8x32xf32>
    %164 = math.exp %163 : vector<8x32xf32>
    %cst_60 = arith.constant 1.000000e+00 : f32
    %165 = vector.broadcast %cst_60 : f32 to vector<8x32xf32>
    %166 = arith.addf %165, %164 : vector<8x32xf32>
    %167 = arith.divf %165, %166 : vector<8x32xf32>
    %168 = vector.extract_strided_slice %155 {offsets = [0, 64], sizes = [8, 32], strides = [1, 1]} : vector<8x128xf32> to vector<8x32xf32>
    %169 = math.tanh %168 : vector<8x32xf32>
    %170 = vector.extract_strided_slice %155 {offsets = [0, 96], sizes = [8, 32], strides = [1, 1]} : vector<8x128xf32> to vector<8x32xf32>
    %171 = arith.negf %170 : vector<8x32xf32>
    %172 = math.exp %171 : vector<8x32xf32>
    %cst_61 = arith.constant 1.000000e+00 : f32
    %173 = vector.broadcast %cst_61 : f32 to vector<8x32xf32>
    %174 = arith.addf %173, %172 : vector<8x32xf32>
    %175 = arith.divf %173, %174 : vector<8x32xf32>
    %176 = arith.mulf %167, %145 : vector<8x32xf32>
    %177 = arith.mulf %161, %169 : vector<8x32xf32>
    %178 = arith.addf %176, %177 : vector<8x32xf32>
    %179 = math.tanh %178 : vector<8x32xf32>
    %180 = arith.mulf %175, %179 : vector<8x32xf32>
    %181 = arith.index_cast %151 : i32 to index
    %c0_62 = arith.constant 0 : index
    %182 = vector.load %arg19[%181, %c0_62] : memref<64x32xf32, #tpu.memory_space<vmem>>, vector<8x32xf32>
    tpu.vector_store %arg19[%181, %c0_62], %180 {strides = array<i32>} : memref<64x32xf32, #tpu.memory_space<vmem>>, vector<8x32xf32>,
    %c3_i32 = arith.constant 3 : i32
    %c8_i32_63 = arith.constant 8 : i32
    %183 = arith.muli %c3_i32, %c8_i32_63 : i32
    %184 = tpu.assume_multiple %183, 8 : i32
    %185 = arith.index_cast %184 : i32 to index
    %c0_64 = arith.constant 0 : index
    %186 = vector.load %arg21[%185, %c0_64] : memref<64x128xf32, #tpu.memory_space<vmem>>, vector<8x128xf32>
    %cst_65 = arith.constant dense<0.000000e+00> : vector<8x128xf32>
    %187 = tpu.matmul %180, %77, %cst_65 {dimension_numbers = #tpu.dot_dimension_numbers<[1], [0], [0], [1], [0, 0, 1, 1], [], []>} : vector<8x32xf32>, vector<32x128xf32>, vector<8x128xf32> -> vector<8x128xf32>
    %188 = arith.addf %186, %187 : vector<8x128xf32>
    %189 = vector.extract_strided_slice %188 {offsets = [0, 0], sizes = [8, 32], strides = [1, 1]} : vector<8x128xf32> to vector<8x32xf32>
    %190 = arith.negf %189 : vector<8x32xf32>
    %191 = math.exp %190 : vector<8x32xf32>
    %cst_66 = arith.constant 1.000000e+00 : f32
    %192 = vector.broadcast %cst_66 : f32 to vector<8x32xf32>
    %193 = arith.addf %192, %191 : vector<8x32xf32>
    %194 = arith.divf %192, %193 : vector<8x32xf32>
    %195 = vector.extract_strided_slice %188 {offsets = [0, 32], sizes = [8, 32], strides = [1, 1]} : vector<8x128xf32> to vector<8x32xf32>
    %196 = arith.negf %195 : vector<8x32xf32>
    %197 = math.exp %196 : vector<8x32xf32>
    %cst_67 = arith.constant 1.000000e+00 : f32
    %198 = vector.broadcast %cst_67 : f32 to vector<8x32xf32>
    %199 = arith.addf %198, %197 : vector<8x32xf32>
    %200 = arith.divf %198, %199 : vector<8x32xf32>
    %201 = vector.extract_strided_slice %188 {offsets = [0, 64], sizes = [8, 32], strides = [1, 1]} : vector<8x128xf32> to vector<8x32xf32>
    %202 = math.tanh %201 : vector<8x32xf32>
    %203 = vector.extract_strided_slice %188 {offsets = [0, 96], sizes = [8, 32], strides = [1, 1]} : vector<8x128xf32> to vector<8x32xf32>
    %204 = arith.negf %203 : vector<8x32xf32>
    %205 = math.exp %204 : vector<8x32xf32>
    %cst_68 = arith.constant 1.000000e+00 : f32
    %206 = vector.broadcast %cst_68 : f32 to vector<8x32xf32>
    %207 = arith.addf %206, %205 : vector<8x32xf32>
    %208 = arith.divf %206, %207 : vector<8x32xf32>
    %209 = arith.mulf %200, %178 : vector<8x32xf32>
    %210 = arith.mulf %194, %202 : vector<8x32xf32>
    %211 = arith.addf %209, %210 : vector<8x32xf32>
    %212 = math.tanh %211 : vector<8x32xf32>
    %213 = arith.mulf %208, %212 : vector<8x32xf32>
    %214 = arith.index_cast %184 : i32 to index
    %c0_69 = arith.constant 0 : index
    %215 = vector.load %arg19[%214, %c0_69] : memref<64x32xf32, #tpu.memory_space<vmem>>, vector<8x32xf32>
    tpu.vector_store %arg19[%214, %c0_69], %213 {strides = array<i32>} : memref<64x32xf32, #tpu.memory_space<vmem>>, vector<8x32xf32>,
    %c4_i32 = arith.constant 4 : i32
    %c8_i32_70 = arith.constant 8 : i32
    %216 = arith.muli %c4_i32, %c8_i32_70 : i32
    %217 = tpu.assume_multiple %216, 8 : i32
    %218 = arith.index_cast %217 : i32 to index
    %c0_71 = arith.constant 0 : index
    %219 = vector.load %arg21[%218, %c0_71] : memref<64x128xf32, #tpu.memory_space<vmem>>, vector<8x128xf32>
    %cst_72 = arith.constant dense<0.000000e+00> : vector<8x128xf32>
    %220 = tpu.matmul %213, %77, %cst_72 {dimension_numbers = #tpu.dot_dimension_numbers<[1], [0], [0], [1], [0, 0, 1, 1], [], []>} : vector<8x32xf32>, vector<32x128xf32>, vector<8x128xf32> -> vector<8x128xf32>
    %221 = arith.addf %219, %220 : vector<8x128xf32>
    %222 = vector.extract_strided_slice %221 {offsets = [0, 0], sizes = [8, 32], strides = [1, 1]} : vector<8x128xf32> to vector<8x32xf32>
    %223 = arith.negf %222 : vector<8x32xf32>
    %224 = math.exp %223 : vector<8x32xf32>
    %cst_73 = arith.constant 1.000000e+00 : f32
    %225 = vector.broadcast %cst_73 : f32 to vector<8x32xf32>
    %226 = arith.addf %225, %224 : vector<8x32xf32>
    %227 = arith.divf %225, %226 : vector<8x32xf32>
    %228 = vector.extract_strided_slice %221 {offsets = [0, 32], sizes = [8, 32], strides = [1, 1]} : vector<8x128xf32> to vector<8x32xf32>
    %229 = arith.negf %228 : vector<8x32xf32>
    %230 = math.exp %229 : vector<8x32xf32>
    %cst_74 = arith.constant 1.000000e+00 : f32
    %231 = vector.broadcast %cst_74 : f32 to vector<8x32xf32>
    %232 = arith.addf %231, %230 : vector<8x32xf32>
    %233 = arith.divf %231, %232 : vector<8x32xf32>
    %234 = vector.extract_strided_slice %221 {offsets = [0, 64], sizes = [8, 32], strides = [1, 1]} : vector<8x128xf32> to vector<8x32xf32>
    %235 = math.tanh %234 : vector<8x32xf32>
    %236 = vector.extract_strided_slice %221 {offsets = [0, 96], sizes = [8, 32], strides = [1, 1]} : vector<8x128xf32> to vector<8x32xf32>
    %237 = arith.negf %236 : vector<8x32xf32>
    %238 = math.exp %237 : vector<8x32xf32>
    %cst_75 = arith.constant 1.000000e+00 : f32
    %239 = vector.broadcast %cst_75 : f32 to vector<8x32xf32>
    %240 = arith.addf %239, %238 : vector<8x32xf32>
    %241 = arith.divf %239, %240 : vector<8x32xf32>
    %242 = arith.mulf %233, %211 : vector<8x32xf32>
    %243 = arith.mulf %227, %235 : vector<8x32xf32>
    %244 = arith.addf %242, %243 : vector<8x32xf32>
    %245 = math.tanh %244 : vector<8x32xf32>
    %246 = arith.mulf %241, %245 : vector<8x32xf32>
    %247 = arith.index_cast %217 : i32 to index
    %c0_76 = arith.constant 0 : index
    %248 = vector.load %arg19[%247, %c0_76] : memref<64x32xf32, #tpu.memory_space<vmem>>, vector<8x32xf32>
    tpu.vector_store %arg19[%247, %c0_76], %246 {strides = array<i32>} : memref<64x32xf32, #tpu.memory_space<vmem>>, vector<8x32xf32>,
    %c5_i32 = arith.constant 5 : i32
    %c8_i32_77 = arith.constant 8 : i32
    %249 = arith.muli %c5_i32, %c8_i32_77 : i32
    %250 = tpu.assume_multiple %249, 8 : i32
    %251 = arith.index_cast %250 : i32 to index
    %c0_78 = arith.constant 0 : index
    %252 = vector.load %arg21[%251, %c0_78] : memref<64x128xf32, #tpu.memory_space<vmem>>, vector<8x128xf32>
    %cst_79 = arith.constant dense<0.000000e+00> : vector<8x128xf32>
    %253 = tpu.matmul %246, %77, %cst_79 {dimension_numbers = #tpu.dot_dimension_numbers<[1], [0], [0], [1], [0, 0, 1, 1], [], []>} : vector<8x32xf32>, vector<32x128xf32>, vector<8x128xf32> -> vector<8x128xf32>
    %254 = arith.addf %252, %253 : vector<8x128xf32>
    %255 = vector.extract_strided_slice %254 {offsets = [0, 0], sizes = [8, 32], strides = [1, 1]} : vector<8x128xf32> to vector<8x32xf32>
    %256 = arith.negf %255 : vector<8x32xf32>
    %257 = math.exp %256 : vector<8x32xf32>
    %cst_80 = arith.constant 1.000000e+00 : f32
    %258 = vector.broadcast %cst_80 : f32 to vector<8x32xf32>
    %259 = arith.addf %258, %257 : vector<8x32xf32>
    %260 = arith.divf %258, %259 : vector<8x32xf32>
    %261 = vector.extract_strided_slice %254 {offsets = [0, 32], sizes = [8, 32], strides = [1, 1]} : vector<8x128xf32> to vector<8x32xf32>
    %262 = arith.negf %261 : vector<8x32xf32>
    %263 = math.exp %262 : vector<8x32xf32>
    %cst_81 = arith.constant 1.000000e+00 : f32
    %264 = vector.broadcast %cst_81 : f32 to vector<8x32xf32>
    %265 = arith.addf %264, %263 : vector<8x32xf32>
    %266 = arith.divf %264, %265 : vector<8x32xf32>
    %267 = vector.extract_strided_slice %254 {offsets = [0, 64], sizes = [8, 32], strides = [1, 1]} : vector<8x128xf32> to vector<8x32xf32>
    %268 = math.tanh %267 : vector<8x32xf32>
    %269 = vector.extract_strided_slice %254 {offsets = [0, 96], sizes = [8, 32], strides = [1, 1]} : vector<8x128xf32> to vector<8x32xf32>
    %270 = arith.negf %269 : vector<8x32xf32>
    %271 = math.exp %270 : vector<8x32xf32>
    %cst_82 = arith.constant 1.000000e+00 : f32
    %272 = vector.broadcast %cst_82 : f32 to vector<8x32xf32>
    %273 = arith.addf %272, %271 : vector<8x32xf32>
    %274 = arith.divf %272, %273 : vector<8x32xf32>
    %275 = arith.mulf %266, %244 : vector<8x32xf32>
    %276 = arith.mulf %260, %268 : vector<8x32xf32>
    %277 = arith.addf %275, %276 : vector<8x32xf32>
    %278 = math.tanh %277 : vector<8x32xf32>
    %279 = arith.mulf %274, %278 : vector<8x32xf32>
    %280 = arith.index_cast %250 : i32 to index
    %c0_83 = arith.constant 0 : index
    %281 = vector.load %arg19[%280, %c0_83] : memref<64x32xf32, #tpu.memory_space<vmem>>, vector<8x32xf32>
    tpu.vector_store %arg19[%280, %c0_83], %279 {strides = array<i32>} : memref<64x32xf32, #tpu.memory_space<vmem>>, vector<8x32xf32>,
    %c6_i32 = arith.constant 6 : i32
    %c8_i32_84 = arith.constant 8 : i32
    %282 = arith.muli %c6_i32, %c8_i32_84 : i32
    %283 = tpu.assume_multiple %282, 8 : i32
    %284 = arith.index_cast %283 : i32 to index
    %c0_85 = arith.constant 0 : index
    %285 = vector.load %arg21[%284, %c0_85] : memref<64x128xf32, #tpu.memory_space<vmem>>, vector<8x128xf32>
    %cst_86 = arith.constant dense<0.000000e+00> : vector<8x128xf32>
    %286 = tpu.matmul %279, %77, %cst_86 {dimension_numbers = #tpu.dot_dimension_numbers<[1], [0], [0], [1], [0, 0, 1, 1], [], []>} : vector<8x32xf32>, vector<32x128xf32>, vector<8x128xf32> -> vector<8x128xf32>
    %287 = arith.addf %285, %286 : vector<8x128xf32>
    %288 = vector.extract_strided_slice %287 {offsets = [0, 0], sizes = [8, 32], strides = [1, 1]} : vector<8x128xf32> to vector<8x32xf32>
    %289 = arith.negf %288 : vector<8x32xf32>
    %290 = math.exp %289 : vector<8x32xf32>
    %cst_87 = arith.constant 1.000000e+00 : f32
    %291 = vector.broadcast %cst_87 : f32 to vector<8x32xf32>
    %292 = arith.addf %291, %290 : vector<8x32xf32>
    %293 = arith.divf %291, %292 : vector<8x32xf32>
    %294 = vector.extract_strided_slice %287 {offsets = [0, 32], sizes = [8, 32], strides = [1, 1]} : vector<8x128xf32> to vector<8x32xf32>
    %295 = arith.negf %294 : vector<8x32xf32>
    %296 = math.exp %295 : vector<8x32xf32>
    %cst_88 = arith.constant 1.000000e+00 : f32
    %297 = vector.broadcast %cst_88 : f32 to vector<8x32xf32>
    %298 = arith.addf %297, %296 : vector<8x32xf32>
    %299 = arith.divf %297, %298 : vector<8x32xf32>
    %300 = vector.extract_strided_slice %287 {offsets = [0, 64], sizes = [8, 32], strides = [1, 1]} : vector<8x128xf32> to vector<8x32xf32>
    %301 = math.tanh %300 : vector<8x32xf32>
    %302 = vector.extract_strided_slice %287 {offsets = [0, 96], sizes = [8, 32], strides = [1, 1]} : vector<8x128xf32> to vector<8x32xf32>
    %303 = arith.negf %302 : vector<8x32xf32>
    %304 = math.exp %303 : vector<8x32xf32>
    %cst_89 = arith.constant 1.000000e+00 : f32
    %305 = vector.broadcast %cst_89 : f32 to vector<8x32xf32>
    %306 = arith.addf %305, %304 : vector<8x32xf32>
    %307 = arith.divf %305, %306 : vector<8x32xf32>
    %308 = arith.mulf %299, %277 : vector<8x32xf32>
    %309 = arith.mulf %293, %301 : vector<8x32xf32>
    %310 = arith.addf %308, %309 : vector<8x32xf32>
    %311 = math.tanh %310 : vector<8x32xf32>
    %312 = arith.mulf %307, %311 : vector<8x32xf32>
    %313 = arith.index_cast %283 : i32 to index
    %c0_90 = arith.constant 0 : index
    %314 = vector.load %arg19[%313, %c0_90] : memref<64x32xf32, #tpu.memory_space<vmem>>, vector<8x32xf32>
    tpu.vector_store %arg19[%313, %c0_90], %312 {strides = array<i32>} : memref<64x32xf32, #tpu.memory_space<vmem>>, vector<8x32xf32>,
    %c7_i32 = arith.constant 7 : i32
    %c8_i32_91 = arith.constant 8 : i32
    %315 = arith.muli %c7_i32, %c8_i32_91 : i32
    %316 = tpu.assume_multiple %315, 8 : i32
    %317 = arith.index_cast %316 : i32 to index
    %c0_92 = arith.constant 0 : index
    %318 = vector.load %arg21[%317, %c0_92] : memref<64x128xf32, #tpu.memory_space<vmem>>, vector<8x128xf32>
    %cst_93 = arith.constant dense<0.000000e+00> : vector<8x128xf32>
    %319 = tpu.matmul %312, %77, %cst_93 {dimension_numbers = #tpu.dot_dimension_numbers<[1], [0], [0], [1], [0, 0, 1, 1], [], []>} : vector<8x32xf32>, vector<32x128xf32>, vector<8x128xf32> -> vector<8x128xf32>
    %320 = arith.addf %318, %319 : vector<8x128xf32>
    %321 = vector.extract_strided_slice %320 {offsets = [0, 0], sizes = [8, 32], strides = [1, 1]} : vector<8x128xf32> to vector<8x32xf32>
    %322 = arith.negf %321 : vector<8x32xf32>
    %323 = math.exp %322 : vector<8x32xf32>
    %cst_94 = arith.constant 1.000000e+00 : f32
    %324 = vector.broadcast %cst_94 : f32 to vector<8x32xf32>
    %325 = arith.addf %324, %323 : vector<8x32xf32>
    %326 = arith.divf %324, %325 : vector<8x32xf32>
    %327 = vector.extract_strided_slice %320 {offsets = [0, 32], sizes = [8, 32], strides = [1, 1]} : vector<8x128xf32> to vector<8x32xf32>
    %328 = arith.negf %327 : vector<8x32xf32>
    %329 = math.exp %328 : vector<8x32xf32>
    %cst_95 = arith.constant 1.000000e+00 : f32
    %330 = vector.broadcast %cst_95 : f32 to vector<8x32xf32>
    %331 = arith.addf %330, %329 : vector<8x32xf32>
    %332 = arith.divf %330, %331 : vector<8x32xf32>
    %333 = vector.extract_strided_slice %320 {offsets = [0, 64], sizes = [8, 32], strides = [1, 1]} : vector<8x128xf32> to vector<8x32xf32>
    %334 = math.tanh %333 : vector<8x32xf32>
    %335 = vector.extract_strided_slice %320 {offsets = [0, 96], sizes = [8, 32], strides = [1, 1]} : vector<8x128xf32> to vector<8x32xf32>
    %336 = arith.negf %335 : vector<8x32xf32>
    %337 = math.exp %336 : vector<8x32xf32>
    %cst_96 = arith.constant 1.000000e+00 : f32
    %338 = vector.broadcast %cst_96 : f32 to vector<8x32xf32>
    %339 = arith.addf %338, %337 : vector<8x32xf32>
    %340 = arith.divf %338, %339 : vector<8x32xf32>
    %341 = arith.mulf %332, %310 : vector<8x32xf32>
    %342 = arith.mulf %326, %334 : vector<8x32xf32>
    %343 = arith.addf %341, %342 : vector<8x32xf32>
    %344 = math.tanh %343 : vector<8x32xf32>
    %345 = arith.mulf %340, %344 : vector<8x32xf32>
    %346 = arith.index_cast %316 : i32 to index
    %c0_97 = arith.constant 0 : index
    %347 = vector.load %arg19[%346, %c0_97] : memref<64x32xf32, #tpu.memory_space<vmem>>, vector<8x32xf32>
    tpu.vector_store %arg19[%346, %c0_97], %345 {strides = array<i32>} : memref<64x32xf32, #tpu.memory_space<vmem>>, vector<8x32xf32>,
    %c8_i32_98 = arith.constant 8 : i32
    %c0_99 = arith.constant 0 : index
    %c0_100 = arith.constant 0 : index
    %348 = vector.load %arg19[%c0_99, %c0_100] : memref<64x32xf32, #tpu.memory_space<vmem>>, vector<64x32xf32>
    %cst_101 = arith.constant dense<0.000000e+00> : vector<64xf32>
    %349 = vector.multi_reduction <add>, %348, %cst_101 [1] : vector<64x32xf32> to vector<64xf32>
    %350 = vector.shape_cast %349 : vector<64xf32> to vector<64x1xf32>
    %cst_102 = arith.constant 3.200000e+01 : f32
    %351 = vector.broadcast %cst_102 : f32 to vector<64x1xf32>
    %352 = arith.divf %350, %351 : vector<64x1xf32>
    %353 = vector.broadcast %352 : vector<64x1xf32> to vector<64x32xf32>
    %354 = arith.subf %348, %353 : vector<64x32xf32>
    %355 = arith.mulf %354, %354 : vector<64x32xf32>
    %cst_103 = arith.constant dense<0.000000e+00> : vector<64xf32>
    %356 = vector.multi_reduction <add>, %355, %cst_103 [1] : vector<64x32xf32> to vector<64xf32>
    %357 = vector.shape_cast %356 : vector<64xf32> to vector<64x1xf32>
    %cst_104 = arith.constant 3.200000e+01 : f32
    %358 = vector.broadcast %cst_104 : f32 to vector<64x1xf32>
    %359 = arith.divf %357, %358 : vector<64x1xf32>
    %360 = vector.broadcast %352 : vector<64x1xf32> to vector<64x32xf32>
    %361 = arith.subf %348, %360 : vector<64x32xf32>
    %cst_105 = arith.constant 9.99999974E-6 : f32
    %362 = vector.broadcast %cst_105 : f32 to vector<64x1xf32>
    %363 = arith.addf %359, %362 : vector<64x1xf32>
    %364 = math.rsqrt %363 : vector<64x1xf32>
    %365 = vector.broadcast %364 : vector<64x1xf32> to vector<64x32xf32>
    %366 = arith.mulf %361, %365 : vector<64x32xf32>
    %c0_106 = arith.constant 0 : index
    %c0_107 = arith.constant 0 : index
    %367 = vector.load %arg7[%c0_106, %c0_107] : memref<1x32xf32, #tpu.memory_space<vmem>>, vector<1x32xf32>
    %368 = vector.broadcast %367 : vector<1x32xf32> to vector<64x32xf32>
    %369 = arith.mulf %366, %368 : vector<64x32xf32>
    %c0_108 = arith.constant 0 : index
    %c0_109 = arith.constant 0 : index
    %370 = vector.load %arg8[%c0_108, %c0_109] : memref<1x32xf32, #tpu.memory_space<vmem>>, vector<1x32xf32>
    %371 = vector.broadcast %370 : vector<1x32xf32> to vector<64x32xf32>
    %372 = arith.addf %369, %371 : vector<64x32xf32>
    %c0_110 = arith.constant 0 : index
    %c0_111 = arith.constant 0 : index
    %373 = vector.load %arg15[%c0_110, %c0_111] : memref<32x384xf32, #tpu.memory_space<vmem>>, vector<32x384xf32>
    %c0_112 = arith.constant 0 : index
    %c0_113 = arith.constant 0 : index
    %374 = vector.load %arg16[%c0_112, %c0_113] : memref<96x384xf32, #tpu.memory_space<vmem>>, vector<96x384xf32>
    %c0_114 = arith.constant 0 : index
    %c0_115 = arith.constant 0 : index
    %375 = vector.load %arg17[%c0_114, %c0_115] : memref<1x384xf32, #tpu.memory_space<vmem>>, vector<1x384xf32>
    %cst_116 = arith.constant dense<0.000000e+00> : vector<64x384xf32>
    %376 = tpu.matmul %372, %373, %cst_116 {dimension_numbers = #tpu.dot_dimension_numbers<[1], [0], [0], [1], [0, 0, 1, 1], [], []>} : vector<64x32xf32>, vector<32x384xf32>, vector<64x384xf32> -> vector<64x384xf32>
    %377 = vector.broadcast %375 : vector<1x384xf32> to vector<64x384xf32>
    %378 = arith.addf %376, %377 : vector<64x384xf32>
    %c0_117 = arith.constant 0 : index
    %c0_118 = arith.constant 0 : index
    %379 = vector.load %arg22[%c0_117, %c0_118] : memref<64x384xf32, #tpu.memory_space<vmem>>, vector<64x384xf32>
    tpu.vector_store %arg22[%c0_117, %c0_118], %378 {strides = array<i32>} : memref<64x384xf32, #tpu.memory_space<vmem>>, vector<64x384xf32>,
    %cst_119 = arith.constant 0.000000e+00 : f32
    %380 = vector.broadcast %cst_119 : f32 to vector<8x96xf32>
    %c0_i32_120 = arith.constant 0 : i32
    %c8_i32_121 = arith.constant 8 : i32
    %381 = arith.muli %c0_i32_120, %c8_i32_121 : i32
    %382 = tpu.assume_multiple %381, 8 : i32
    %383 = arith.index_cast %382 : i32 to index
    %c0_122 = arith.constant 0 : index
    %384 = vector.load %arg22[%383, %c0_122] : memref<64x384xf32, #tpu.memory_space<vmem>>, vector<8x384xf32>
    %cst_123 = arith.constant dense<0.000000e+00> : vector<8x384xf32>
    %385 = tpu.matmul %380, %374, %cst_123 {dimension_numbers = #tpu.dot_dimension_numbers<[1], [0], [0], [1], [0, 0, 1, 1], [], []>} : vector<8x96xf32>, vector<96x384xf32>, vector<8x384xf32> -> vector<8x384xf32>
    %386 = arith.addf %384, %385 : vector<8x384xf32>
    %387 = vector.extract_strided_slice %386 {offsets = [0, 0], sizes = [8, 96], strides = [1, 1]} : vector<8x384xf32> to vector<8x96xf32>
    %388 = arith.negf %387 : vector<8x96xf32>
    %389 = math.exp %388 : vector<8x96xf32>
    %cst_124 = arith.constant 1.000000e+00 : f32
    %390 = vector.broadcast %cst_124 : f32 to vector<8x96xf32>
    %391 = arith.addf %390, %389 : vector<8x96xf32>
    %392 = arith.divf %390, %391 : vector<8x96xf32>
    %393 = vector.extract_strided_slice %386 {offsets = [0, 96], sizes = [8, 96], strides = [1, 1]} : vector<8x384xf32> to vector<8x96xf32>
    %394 = arith.negf %393 : vector<8x96xf32>
    %395 = math.exp %394 : vector<8x96xf32>
    %cst_125 = arith.constant 1.000000e+00 : f32
    %396 = vector.broadcast %cst_125 : f32 to vector<8x96xf32>
    %397 = arith.addf %396, %395 : vector<8x96xf32>
    %398 = arith.divf %396, %397 : vector<8x96xf32>
    %399 = vector.extract_strided_slice %386 {offsets = [0, 192], sizes = [8, 96], strides = [1, 1]} : vector<8x384xf32> to vector<8x96xf32>
    %400 = math.tanh %399 : vector<8x96xf32>
    %401 = vector.extract_strided_slice %386 {offsets = [0, 288], sizes = [8, 96], strides = [1, 1]} : vector<8x384xf32> to vector<8x96xf32>
    %402 = arith.negf %401 : vector<8x96xf32>
    %403 = math.exp %402 : vector<8x96xf32>
    %cst_126 = arith.constant 1.000000e+00 : f32
    %404 = vector.broadcast %cst_126 : f32 to vector<8x96xf32>
    %405 = arith.addf %404, %403 : vector<8x96xf32>
    %406 = arith.divf %404, %405 : vector<8x96xf32>
    %407 = arith.mulf %398, %380 : vector<8x96xf32>
    %408 = arith.mulf %392, %400 : vector<8x96xf32>
    %409 = arith.addf %407, %408 : vector<8x96xf32>
    %410 = math.tanh %409 : vector<8x96xf32>
    %411 = arith.mulf %406, %410 : vector<8x96xf32>
    %412 = arith.index_cast %382 : i32 to index
    %c0_127 = arith.constant 0 : index
    %413 = vector.load %arg20[%412, %c0_127] : memref<64x96xf32, #tpu.memory_space<vmem>>, vector<8x96xf32>
    tpu.vector_store %arg20[%412, %c0_127], %411 {strides = array<i32>} : memref<64x96xf32, #tpu.memory_space<vmem>>, vector<8x96xf32>,
    %c1_i32_128 = arith.constant 1 : i32
    %c8_i32_129 = arith.constant 8 : i32
    %414 = arith.muli %c1_i32_128, %c8_i32_129 : i32
    %415 = tpu.assume_multiple %414, 8 : i32
    %416 = arith.index_cast %415 : i32 to index
    %c0_130 = arith.constant 0 : index
    %417 = vector.load %arg22[%416, %c0_130] : memref<64x384xf32, #tpu.memory_space<vmem>>, vector<8x384xf32>
    %cst_131 = arith.constant dense<0.000000e+00> : vector<8x384xf32>
    %418 = tpu.matmul %411, %374, %cst_131 {dimension_numbers = #tpu.dot_dimension_numbers<[1], [0], [0], [1], [0, 0, 1, 1], [], []>} : vector<8x96xf32>, vector<96x384xf32>, vector<8x384xf32> -> vector<8x384xf32>
    %419 = arith.addf %417, %418 : vector<8x384xf32>
    %420 = vector.extract_strided_slice %419 {offsets = [0, 0], sizes = [8, 96], strides = [1, 1]} : vector<8x384xf32> to vector<8x96xf32>
    %421 = arith.negf %420 : vector<8x96xf32>
    %422 = math.exp %421 : vector<8x96xf32>
    %cst_132 = arith.constant 1.000000e+00 : f32
    %423 = vector.broadcast %cst_132 : f32 to vector<8x96xf32>
    %424 = arith.addf %423, %422 : vector<8x96xf32>
    %425 = arith.divf %423, %424 : vector<8x96xf32>
    %426 = vector.extract_strided_slice %419 {offsets = [0, 96], sizes = [8, 96], strides = [1, 1]} : vector<8x384xf32> to vector<8x96xf32>
    %427 = arith.negf %426 : vector<8x96xf32>
    %428 = math.exp %427 : vector<8x96xf32>
    %cst_133 = arith.constant 1.000000e+00 : f32
    %429 = vector.broadcast %cst_133 : f32 to vector<8x96xf32>
    %430 = arith.addf %429, %428 : vector<8x96xf32>
    %431 = arith.divf %429, %430 : vector<8x96xf32>
    %432 = vector.extract_strided_slice %419 {offsets = [0, 192], sizes = [8, 96], strides = [1, 1]} : vector<8x384xf32> to vector<8x96xf32>
    %433 = math.tanh %432 : vector<8x96xf32>
    %434 = vector.extract_strided_slice %419 {offsets = [0, 288], sizes = [8, 96], strides = [1, 1]} : vector<8x384xf32> to vector<8x96xf32>
    %435 = arith.negf %434 : vector<8x96xf32>
    %436 = math.exp %435 : vector<8x96xf32>
    %cst_134 = arith.constant 1.000000e+00 : f32
    %437 = vector.broadcast %cst_134 : f32 to vector<8x96xf32>
    %438 = arith.addf %437, %436 : vector<8x96xf32>
    %439 = arith.divf %437, %438 : vector<8x96xf32>
    %440 = arith.mulf %431, %409 : vector<8x96xf32>
    %441 = arith.mulf %425, %433 : vector<8x96xf32>
    %442 = arith.addf %440, %441 : vector<8x96xf32>
    %443 = math.tanh %442 : vector<8x96xf32>
    %444 = arith.mulf %439, %443 : vector<8x96xf32>
    %445 = arith.index_cast %415 : i32 to index
    %c0_135 = arith.constant 0 : index
    %446 = vector.load %arg20[%445, %c0_135] : memref<64x96xf32, #tpu.memory_space<vmem>>, vector<8x96xf32>
    tpu.vector_store %arg20[%445, %c0_135], %444 {strides = array<i32>} : memref<64x96xf32, #tpu.memory_space<vmem>>, vector<8x96xf32>,
    %c2_i32_136 = arith.constant 2 : i32
    %c8_i32_137 = arith.constant 8 : i32
    %447 = arith.muli %c2_i32_136, %c8_i32_137 : i32
    %448 = tpu.assume_multiple %447, 8 : i32
    %449 = arith.index_cast %448 : i32 to index
    %c0_138 = arith.constant 0 : index
    %450 = vector.load %arg22[%449, %c0_138] : memref<64x384xf32, #tpu.memory_space<vmem>>, vector<8x384xf32>
    %cst_139 = arith.constant dense<0.000000e+00> : vector<8x384xf32>
    %451 = tpu.matmul %444, %374, %cst_139 {dimension_numbers = #tpu.dot_dimension_numbers<[1], [0], [0], [1], [0, 0, 1, 1], [], []>} : vector<8x96xf32>, vector<96x384xf32>, vector<8x384xf32> -> vector<8x384xf32>
    %452 = arith.addf %450, %451 : vector<8x384xf32>
    %453 = vector.extract_strided_slice %452 {offsets = [0, 0], sizes = [8, 96], strides = [1, 1]} : vector<8x384xf32> to vector<8x96xf32>
    %454 = arith.negf %453 : vector<8x96xf32>
    %455 = math.exp %454 : vector<8x96xf32>
    %cst_140 = arith.constant 1.000000e+00 : f32
    %456 = vector.broadcast %cst_140 : f32 to vector<8x96xf32>
    %457 = arith.addf %456, %455 : vector<8x96xf32>
    %458 = arith.divf %456, %457 : vector<8x96xf32>
    %459 = vector.extract_strided_slice %452 {offsets = [0, 96], sizes = [8, 96], strides = [1, 1]} : vector<8x384xf32> to vector<8x96xf32>
    %460 = arith.negf %459 : vector<8x96xf32>
    %461 = math.exp %460 : vector<8x96xf32>
    %cst_141 = arith.constant 1.000000e+00 : f32
    %462 = vector.broadcast %cst_141 : f32 to vector<8x96xf32>
    %463 = arith.addf %462, %461 : vector<8x96xf32>
    %464 = arith.divf %462, %463 : vector<8x96xf32>
    %465 = vector.extract_strided_slice %452 {offsets = [0, 192], sizes = [8, 96], strides = [1, 1]} : vector<8x384xf32> to vector<8x96xf32>
    %466 = math.tanh %465 : vector<8x96xf32>
    %467 = vector.extract_strided_slice %452 {offsets = [0, 288], sizes = [8, 96], strides = [1, 1]} : vector<8x384xf32> to vector<8x96xf32>
    %468 = arith.negf %467 : vector<8x96xf32>
    %469 = math.exp %468 : vector<8x96xf32>
    %cst_142 = arith.constant 1.000000e+00 : f32
    %470 = vector.broadcast %cst_142 : f32 to vector<8x96xf32>
    %471 = arith.addf %470, %469 : vector<8x96xf32>
    %472 = arith.divf %470, %471 : vector<8x96xf32>
    %473 = arith.mulf %464, %442 : vector<8x96xf32>
    %474 = arith.mulf %458, %466 : vector<8x96xf32>
    %475 = arith.addf %473, %474 : vector<8x96xf32>
    %476 = math.tanh %475 : vector<8x96xf32>
    %477 = arith.mulf %472, %476 : vector<8x96xf32>
    %478 = arith.index_cast %448 : i32 to index
    %c0_143 = arith.constant 0 : index
    %479 = vector.load %arg20[%478, %c0_143] : memref<64x96xf32, #tpu.memory_space<vmem>>, vector<8x96xf32>
    tpu.vector_store %arg20[%478, %c0_143], %477 {strides = array<i32>} : memref<64x96xf32, #tpu.memory_space<vmem>>, vector<8x96xf32>,
    %c3_i32_144 = arith.constant 3 : i32
    %c8_i32_145 = arith.constant 8 : i32
    %480 = arith.muli %c3_i32_144, %c8_i32_145 : i32
    %481 = tpu.assume_multiple %480, 8 : i32
    %482 = arith.index_cast %481 : i32 to index
    %c0_146 = arith.constant 0 : index
    %483 = vector.load %arg22[%482, %c0_146] : memref<64x384xf32, #tpu.memory_space<vmem>>, vector<8x384xf32>
    %cst_147 = arith.constant dense<0.000000e+00> : vector<8x384xf32>
    %484 = tpu.matmul %477, %374, %cst_147 {dimension_numbers = #tpu.dot_dimension_numbers<[1], [0], [0], [1], [0, 0, 1, 1], [], []>} : vector<8x96xf32>, vector<96x384xf32>, vector<8x384xf32> -> vector<8x384xf32>
    %485 = arith.addf %483, %484 : vector<8x384xf32>
    %486 = vector.extract_strided_slice %485 {offsets = [0, 0], sizes = [8, 96], strides = [1, 1]} : vector<8x384xf32> to vector<8x96xf32>
    %487 = arith.negf %486 : vector<8x96xf32>
    %488 = math.exp %487 : vector<8x96xf32>
    %cst_148 = arith.constant 1.000000e+00 : f32
    %489 = vector.broadcast %cst_148 : f32 to vector<8x96xf32>
    %490 = arith.addf %489, %488 : vector<8x96xf32>
    %491 = arith.divf %489, %490 : vector<8x96xf32>
    %492 = vector.extract_strided_slice %485 {offsets = [0, 96], sizes = [8, 96], strides = [1, 1]} : vector<8x384xf32> to vector<8x96xf32>
    %493 = arith.negf %492 : vector<8x96xf32>
    %494 = math.exp %493 : vector<8x96xf32>
    %cst_149 = arith.constant 1.000000e+00 : f32
    %495 = vector.broadcast %cst_149 : f32 to vector<8x96xf32>
    %496 = arith.addf %495, %494 : vector<8x96xf32>
    %497 = arith.divf %495, %496 : vector<8x96xf32>
    %498 = vector.extract_strided_slice %485 {offsets = [0, 192], sizes = [8, 96], strides = [1, 1]} : vector<8x384xf32> to vector<8x96xf32>
    %499 = math.tanh %498 : vector<8x96xf32>
    %500 = vector.extract_strided_slice %485 {offsets = [0, 288], sizes = [8, 96], strides = [1, 1]} : vector<8x384xf32> to vector<8x96xf32>
    %501 = arith.negf %500 : vector<8x96xf32>
    %502 = math.exp %501 : vector<8x96xf32>
    %cst_150 = arith.constant 1.000000e+00 : f32
    %503 = vector.broadcast %cst_150 : f32 to vector<8x96xf32>
    %504 = arith.addf %503, %502 : vector<8x96xf32>
    %505 = arith.divf %503, %504 : vector<8x96xf32>
    %506 = arith.mulf %497, %475 : vector<8x96xf32>
    %507 = arith.mulf %491, %499 : vector<8x96xf32>
    %508 = arith.addf %506, %507 : vector<8x96xf32>
    %509 = math.tanh %508 : vector<8x96xf32>
    %510 = arith.mulf %505, %509 : vector<8x96xf32>
    %511 = arith.index_cast %481 : i32 to index
    %c0_151 = arith.constant 0 : index
    %512 = vector.load %arg20[%511, %c0_151] : memref<64x96xf32, #tpu.memory_space<vmem>>, vector<8x96xf32>
    tpu.vector_store %arg20[%511, %c0_151], %510 {strides = array<i32>} : memref<64x96xf32, #tpu.memory_space<vmem>>, vector<8x96xf32>,
    %c4_i32_152 = arith.constant 4 : i32
    %c8_i32_153 = arith.constant 8 : i32
    %513 = arith.muli %c4_i32_152, %c8_i32_153 : i32
    %514 = tpu.assume_multiple %513, 8 : i32
    %515 = arith.index_cast %514 : i32 to index
    %c0_154 = arith.constant 0 : index
    %516 = vector.load %arg22[%515, %c0_154] : memref<64x384xf32, #tpu.memory_space<vmem>>, vector<8x384xf32>
    %cst_155 = arith.constant dense<0.000000e+00> : vector<8x384xf32>
    %517 = tpu.matmul %510, %374, %cst_155 {dimension_numbers = #tpu.dot_dimension_numbers<[1], [0], [0], [1], [0, 0, 1, 1], [], []>} : vector<8x96xf32>, vector<96x384xf32>, vector<8x384xf32> -> vector<8x384xf32>
    %518 = arith.addf %516, %517 : vector<8x384xf32>
    %519 = vector.extract_strided_slice %518 {offsets = [0, 0], sizes = [8, 96], strides = [1, 1]} : vector<8x384xf32> to vector<8x96xf32>
    %520 = arith.negf %519 : vector<8x96xf32>
    %521 = math.exp %520 : vector<8x96xf32>
    %cst_156 = arith.constant 1.000000e+00 : f32
    %522 = vector.broadcast %cst_156 : f32 to vector<8x96xf32>
    %523 = arith.addf %522, %521 : vector<8x96xf32>
    %524 = arith.divf %522, %523 : vector<8x96xf32>
    %525 = vector.extract_strided_slice %518 {offsets = [0, 96], sizes = [8, 96], strides = [1, 1]} : vector<8x384xf32> to vector<8x96xf32>
    %526 = arith.negf %525 : vector<8x96xf32>
    %527 = math.exp %526 : vector<8x96xf32>
    %cst_157 = arith.constant 1.000000e+00 : f32
    %528 = vector.broadcast %cst_157 : f32 to vector<8x96xf32>
    %529 = arith.addf %528, %527 : vector<8x96xf32>
    %530 = arith.divf %528, %529 : vector<8x96xf32>
    %531 = vector.extract_strided_slice %518 {offsets = [0, 192], sizes = [8, 96], strides = [1, 1]} : vector<8x384xf32> to vector<8x96xf32>
    %532 = math.tanh %531 : vector<8x96xf32>
    %533 = vector.extract_strided_slice %518 {offsets = [0, 288], sizes = [8, 96], strides = [1, 1]} : vector<8x384xf32> to vector<8x96xf32>
    %534 = arith.negf %533 : vector<8x96xf32>
    %535 = math.exp %534 : vector<8x96xf32>
    %cst_158 = arith.constant 1.000000e+00 : f32
    %536 = vector.broadcast %cst_158 : f32 to vector<8x96xf32>
    %537 = arith.addf %536, %535 : vector<8x96xf32>
    %538 = arith.divf %536, %537 : vector<8x96xf32>
    %539 = arith.mulf %530, %508 : vector<8x96xf32>
    %540 = arith.mulf %524, %532 : vector<8x96xf32>
    %541 = arith.addf %539, %540 : vector<8x96xf32>
    %542 = math.tanh %541 : vector<8x96xf32>
    %543 = arith.mulf %538, %542 : vector<8x96xf32>
    %544 = arith.index_cast %514 : i32 to index
    %c0_159 = arith.constant 0 : index
    %545 = vector.load %arg20[%544, %c0_159] : memref<64x96xf32, #tpu.memory_space<vmem>>, vector<8x96xf32>
    tpu.vector_store %arg20[%544, %c0_159], %543 {strides = array<i32>} : memref<64x96xf32, #tpu.memory_space<vmem>>, vector<8x96xf32>,
    %c5_i32_160 = arith.constant 5 : i32
    %c8_i32_161 = arith.constant 8 : i32
    %546 = arith.muli %c5_i32_160, %c8_i32_161 : i32
    %547 = tpu.assume_multiple %546, 8 : i32
    %548 = arith.index_cast %547 : i32 to index
    %c0_162 = arith.constant 0 : index
    %549 = vector.load %arg22[%548, %c0_162] : memref<64x384xf32, #tpu.memory_space<vmem>>, vector<8x384xf32>
    %cst_163 = arith.constant dense<0.000000e+00> : vector<8x384xf32>
    %550 = tpu.matmul %543, %374, %cst_163 {dimension_numbers = #tpu.dot_dimension_numbers<[1], [0], [0], [1], [0, 0, 1, 1], [], []>} : vector<8x96xf32>, vector<96x384xf32>, vector<8x384xf32> -> vector<8x384xf32>
    %551 = arith.addf %549, %550 : vector<8x384xf32>
    %552 = vector.extract_strided_slice %551 {offsets = [0, 0], sizes = [8, 96], strides = [1, 1]} : vector<8x384xf32> to vector<8x96xf32>
    %553 = arith.negf %552 : vector<8x96xf32>
    %554 = math.exp %553 : vector<8x96xf32>
    %cst_164 = arith.constant 1.000000e+00 : f32
    %555 = vector.broadcast %cst_164 : f32 to vector<8x96xf32>
    %556 = arith.addf %555, %554 : vector<8x96xf32>
    %557 = arith.divf %555, %556 : vector<8x96xf32>
    %558 = vector.extract_strided_slice %551 {offsets = [0, 96], sizes = [8, 96], strides = [1, 1]} : vector<8x384xf32> to vector<8x96xf32>
    %559 = arith.negf %558 : vector<8x96xf32>
    %560 = math.exp %559 : vector<8x96xf32>
    %cst_165 = arith.constant 1.000000e+00 : f32
    %561 = vector.broadcast %cst_165 : f32 to vector<8x96xf32>
    %562 = arith.addf %561, %560 : vector<8x96xf32>
    %563 = arith.divf %561, %562 : vector<8x96xf32>
    %564 = vector.extract_strided_slice %551 {offsets = [0, 192], sizes = [8, 96], strides = [1, 1]} : vector<8x384xf32> to vector<8x96xf32>
    %565 = math.tanh %564 : vector<8x96xf32>
    %566 = vector.extract_strided_slice %551 {offsets = [0, 288], sizes = [8, 96], strides = [1, 1]} : vector<8x384xf32> to vector<8x96xf32>
    %567 = arith.negf %566 : vector<8x96xf32>
    %568 = math.exp %567 : vector<8x96xf32>
    %cst_166 = arith.constant 1.000000e+00 : f32
    %569 = vector.broadcast %cst_166 : f32 to vector<8x96xf32>
    %570 = arith.addf %569, %568 : vector<8x96xf32>
    %571 = arith.divf %569, %570 : vector<8x96xf32>
    %572 = arith.mulf %563, %541 : vector<8x96xf32>
    %573 = arith.mulf %557, %565 : vector<8x96xf32>
    %574 = arith.addf %572, %573 : vector<8x96xf32>
    %575 = math.tanh %574 : vector<8x96xf32>
    %576 = arith.mulf %571, %575 : vector<8x96xf32>
    %577 = arith.index_cast %547 : i32 to index
    %c0_167 = arith.constant 0 : index
    %578 = vector.load %arg20[%577, %c0_167] : memref<64x96xf32, #tpu.memory_space<vmem>>, vector<8x96xf32>
    tpu.vector_store %arg20[%577, %c0_167], %576 {strides = array<i32>} : memref<64x96xf32, #tpu.memory_space<vmem>>, vector<8x96xf32>,
    %c6_i32_168 = arith.constant 6 : i32
    %c8_i32_169 = arith.constant 8 : i32
    %579 = arith.muli %c6_i32_168, %c8_i32_169 : i32
    %580 = tpu.assume_multiple %579, 8 : i32
    %581 = arith.index_cast %580 : i32 to index
    %c0_170 = arith.constant 0 : index
    %582 = vector.load %arg22[%581, %c0_170] : memref<64x384xf32, #tpu.memory_space<vmem>>, vector<8x384xf32>
    %cst_171 = arith.constant dense<0.000000e+00> : vector<8x384xf32>
    %583 = tpu.matmul %576, %374, %cst_171 {dimension_numbers = #tpu.dot_dimension_numbers<[1], [0], [0], [1], [0, 0, 1, 1], [], []>} : vector<8x96xf32>, vector<96x384xf32>, vector<8x384xf32> -> vector<8x384xf32>
    %584 = arith.addf %582, %583 : vector<8x384xf32>
    %585 = vector.extract_strided_slice %584 {offsets = [0, 0], sizes = [8, 96], strides = [1, 1]} : vector<8x384xf32> to vector<8x96xf32>
    %586 = arith.negf %585 : vector<8x96xf32>
    %587 = math.exp %586 : vector<8x96xf32>
    %cst_172 = arith.constant 1.000000e+00 : f32
    %588 = vector.broadcast %cst_172 : f32 to vector<8x96xf32>
    %589 = arith.addf %588, %587 : vector<8x96xf32>
    %590 = arith.divf %588, %589 : vector<8x96xf32>
    %591 = vector.extract_strided_slice %584 {offsets = [0, 96], sizes = [8, 96], strides = [1, 1]} : vector<8x384xf32> to vector<8x96xf32>
    %592 = arith.negf %591 : vector<8x96xf32>
    %593 = math.exp %592 : vector<8x96xf32>
    %cst_173 = arith.constant 1.000000e+00 : f32
    %594 = vector.broadcast %cst_173 : f32 to vector<8x96xf32>
    %595 = arith.addf %594, %593 : vector<8x96xf32>
    %596 = arith.divf %594, %595 : vector<8x96xf32>
    %597 = vector.extract_strided_slice %584 {offsets = [0, 192], sizes = [8, 96], strides = [1, 1]} : vector<8x384xf32> to vector<8x96xf32>
    %598 = math.tanh %597 : vector<8x96xf32>
    %599 = vector.extract_strided_slice %584 {offsets = [0, 288], sizes = [8, 96], strides = [1, 1]} : vector<8x384xf32> to vector<8x96xf32>
    %600 = arith.negf %599 : vector<8x96xf32>
    %601 = math.exp %600 : vector<8x96xf32>
    %cst_174 = arith.constant 1.000000e+00 : f32
    %602 = vector.broadcast %cst_174 : f32 to vector<8x96xf32>
    %603 = arith.addf %602, %601 : vector<8x96xf32>
    %604 = arith.divf %602, %603 : vector<8x96xf32>
    %605 = arith.mulf %596, %574 : vector<8x96xf32>
    %606 = arith.mulf %590, %598 : vector<8x96xf32>
    %607 = arith.addf %605, %606 : vector<8x96xf32>
    %608 = math.tanh %607 : vector<8x96xf32>
    %609 = arith.mulf %604, %608 : vector<8x96xf32>
    %610 = arith.index_cast %580 : i32 to index
    %c0_175 = arith.constant 0 : index
    %611 = vector.load %arg20[%610, %c0_175] : memref<64x96xf32, #tpu.memory_space<vmem>>, vector<8x96xf32>
    tpu.vector_store %arg20[%610, %c0_175], %609 {strides = array<i32>} : memref<64x96xf32, #tpu.memory_space<vmem>>, vector<8x96xf32>,
    %c7_i32_176 = arith.constant 7 : i32
    %c8_i32_177 = arith.constant 8 : i32
    %612 = arith.muli %c7_i32_176, %c8_i32_177 : i32
    %613 = tpu.assume_multiple %612, 8 : i32
    %614 = arith.index_cast %613 : i32 to index
    %c0_178 = arith.constant 0 : index
    %615 = vector.load %arg22[%614, %c0_178] : memref<64x384xf32, #tpu.memory_space<vmem>>, vector<8x384xf32>
    %cst_179 = arith.constant dense<0.000000e+00> : vector<8x384xf32>
    %616 = tpu.matmul %609, %374, %cst_179 {dimension_numbers = #tpu.dot_dimension_numbers<[1], [0], [0], [1], [0, 0, 1, 1], [], []>} : vector<8x96xf32>, vector<96x384xf32>, vector<8x384xf32> -> vector<8x384xf32>
    %617 = arith.addf %615, %616 : vector<8x384xf32>
    %618 = vector.extract_strided_slice %617 {offsets = [0, 0], sizes = [8, 96], strides = [1, 1]} : vector<8x384xf32> to vector<8x96xf32>
    %619 = arith.negf %618 : vector<8x96xf32>
    %620 = math.exp %619 : vector<8x96xf32>
    %cst_180 = arith.constant 1.000000e+00 : f32
    %621 = vector.broadcast %cst_180 : f32 to vector<8x96xf32>
    %622 = arith.addf %621, %620 : vector<8x96xf32>
    %623 = arith.divf %621, %622 : vector<8x96xf32>
    %624 = vector.extract_strided_slice %617 {offsets = [0, 96], sizes = [8, 96], strides = [1, 1]} : vector<8x384xf32> to vector<8x96xf32>
    %625 = arith.negf %624 : vector<8x96xf32>
    %626 = math.exp %625 : vector<8x96xf32>
    %cst_181 = arith.constant 1.000000e+00 : f32
    %627 = vector.broadcast %cst_181 : f32 to vector<8x96xf32>
    %628 = arith.addf %627, %626 : vector<8x96xf32>
    %629 = arith.divf %627, %628 : vector<8x96xf32>
    %630 = vector.extract_strided_slice %617 {offsets = [0, 192], sizes = [8, 96], strides = [1, 1]} : vector<8x384xf32> to vector<8x96xf32>
    %631 = math.tanh %630 : vector<8x96xf32>
    %632 = vector.extract_strided_slice %617 {offsets = [0, 288], sizes = [8, 96], strides = [1, 1]} : vector<8x384xf32> to vector<8x96xf32>
    %633 = arith.negf %632 : vector<8x96xf32>
    %634 = math.exp %633 : vector<8x96xf32>
    %cst_182 = arith.constant 1.000000e+00 : f32
    %635 = vector.broadcast %cst_182 : f32 to vector<8x96xf32>
    %636 = arith.addf %635, %634 : vector<8x96xf32>
    %637 = arith.divf %635, %636 : vector<8x96xf32>
    %638 = arith.mulf %629, %607 : vector<8x96xf32>
    %639 = arith.mulf %623, %631 : vector<8x96xf32>
    %640 = arith.addf %638, %639 : vector<8x96xf32>
    %641 = math.tanh %640 : vector<8x96xf32>
    %642 = arith.mulf %637, %641 : vector<8x96xf32>
    %643 = arith.index_cast %613 : i32 to index
    %c0_183 = arith.constant 0 : index
    %644 = vector.load %arg20[%643, %c0_183] : memref<64x96xf32, #tpu.memory_space<vmem>>, vector<8x96xf32>
    tpu.vector_store %arg20[%643, %c0_183], %642 {strides = array<i32>} : memref<64x96xf32, #tpu.memory_space<vmem>>, vector<8x96xf32>,
    %c8_i32_184 = arith.constant 8 : i32
    %c0_185 = arith.constant 0 : index
    %c0_186 = arith.constant 0 : index
    %645 = vector.load %arg20[%c0_185, %c0_186] : memref<64x96xf32, #tpu.memory_space<vmem>>, vector<64x96xf32>
    %c0_187 = arith.constant 0 : index
    %c0_188 = arith.constant 0 : index
    %646 = vector.load %arg9[%c0_187, %c0_188] : memref<96x3xf32, #tpu.memory_space<vmem>>, vector<96x3xf32>
    %cst_189 = arith.constant dense<0.000000e+00> : vector<64x3xf32>
    %647 = tpu.matmul %645, %646, %cst_189 {dimension_numbers = #tpu.dot_dimension_numbers<[1], [0], [0], [1], [0, 0, 1, 1], [], []>} : vector<64x96xf32>, vector<96x3xf32>, vector<64x3xf32> -> vector<64x3xf32>
    %648 = vector.shape_cast %647 : vector<64x3xf32> to vector<8x8x3xf32>
    %cst_190 = arith.constant -1.000000e+30 : f32
    %649 = vector.shape_cast %6 : vector<8x8x1xi1> to vector<8x8x1xi1>
    %650 = vector.broadcast %649 : vector<8x8x1xi1> to vector<8x8x3xi1>
    %651 = vector.broadcast %cst_190 : f32 to vector<8x8x3xf32>
    %652 = arith.select %650, %648, %651 : vector<8x8x3xi1>, vector<8x8x3xf32>
    %cst_191 = arith.constant dense<0xFF800000> : vector<8x3xf32>
    %653 = vector.multi_reduction <maximumf>, %652, %cst_191 [0] : vector<8x8x3xf32> to vector<8x3xf32>
    %cst_192 = arith.constant 0xFF800000 : f32
    %654 = vector.broadcast %cst_192 : f32 to vector<8x3xf32>
    %655 = arith.maximumf %654, %653 : vector<8x3xf32>
    %656 = vector.shape_cast %655 : vector<8x3xf32> to vector<1x8x3xf32>
    %657 = vector.broadcast %656 : vector<1x8x3xf32> to vector<8x8x3xf32>
    %658 = arith.subf %652, %657 : vector<8x8x3xf32>
    %659 = math.exp %658 : vector<8x8x3xf32>
    %cst_193 = arith.constant dense<0.000000e+00> : vector<8x3xf32>
    %660 = vector.multi_reduction <add>, %659, %cst_193 [0] : vector<8x8x3xf32> to vector<8x3xf32>
    %661 = vector.shape_cast %660 : vector<8x3xf32> to vector<1x8x3xf32>
    %662 = vector.broadcast %661 : vector<1x8x3xf32> to vector<8x8x3xf32>
    %663 = arith.divf %659, %662 : vector<8x8x3xf32>
    %664 = vector.shape_cast %75 : vector<8x3xf32> to vector<1x8x3xf32>
    %665 = vector.broadcast %664 : vector<1x8x3xf32> to vector<8x8x3xf32>
    %666 = arith.mulf %663, %665 : vector<8x8x3xf32>
    %667 = vector.shape_cast %645 : vector<64x96xf32> to vector<8x8x96xf32>
    %cst_194 = arith.constant 0.000000e+00 : f32
    %668 = vector.broadcast %cst_194 : f32 to vector<8x32xf32>
    %669 = vector.extract_strided_slice %666 {offsets = [0, 0, 0], sizes = [8, 8, 1], strides = [1, 1, 1]} : vector<8x8x3xf32> to vector<8x8x1xf32>
    %670 = vector.extract_strided_slice %667 {offsets = [0, 0, 0], sizes = [8, 8, 32], strides = [1, 1, 1]} : vector<8x8x96xf32> to vector<8x8x32xf32>
    %671 = vector.broadcast %669 : vector<8x8x1xf32> to vector<8x8x32xf32>
    %672 = arith.mulf %671, %670 : vector<8x8x32xf32>
    %cst_195 = arith.constant dense<0.000000e+00> : vector<8x32xf32>
    %673 = vector.multi_reduction <add>, %672, %cst_195 [0] : vector<8x8x32xf32> to vector<8x32xf32>
    %674 = arith.addf %668, %673 : vector<8x32xf32>
    %675 = vector.extract_strided_slice %666 {offsets = [0, 0, 1], sizes = [8, 8, 1], strides = [1, 1, 1]} : vector<8x8x3xf32> to vector<8x8x1xf32>
    %676 = vector.extract_strided_slice %667 {offsets = [0, 0, 32], sizes = [8, 8, 32], strides = [1, 1, 1]} : vector<8x8x96xf32> to vector<8x8x32xf32>
    %677 = vector.broadcast %675 : vector<8x8x1xf32> to vector<8x8x32xf32>
    %678 = arith.mulf %677, %676 : vector<8x8x32xf32>
    %cst_196 = arith.constant dense<0.000000e+00> : vector<8x32xf32>
    %679 = vector.multi_reduction <add>, %678, %cst_196 [0] : vector<8x8x32xf32> to vector<8x32xf32>
    %680 = arith.addf %674, %679 : vector<8x32xf32>
    %681 = vector.extract_strided_slice %666 {offsets = [0, 0, 2], sizes = [8, 8, 1], strides = [1, 1, 1]} : vector<8x8x3xf32> to vector<8x8x1xf32>
    %682 = vector.extract_strided_slice %667 {offsets = [0, 0, 64], sizes = [8, 8, 32], strides = [1, 1, 1]} : vector<8x8x96xf32> to vector<8x8x32xf32>
    %683 = vector.broadcast %681 : vector<8x8x1xf32> to vector<8x8x32xf32>
    %684 = arith.mulf %683, %682 : vector<8x8x32xf32>
    %cst_197 = arith.constant dense<0.000000e+00> : vector<8x32xf32>
    %685 = vector.multi_reduction <add>, %684, %cst_197 [0] : vector<8x8x32xf32> to vector<8x32xf32>
    %686 = arith.addf %680, %685 : vector<8x32xf32>
    %c0_198 = arith.constant 0 : index
    %c0_199 = arith.constant 0 : index
    %687 = vector.load %arg10[%c0_198, %c0_199] : memref<32x4xf32, #tpu.memory_space<vmem>>, vector<32x4xf32>
    %cst_200 = arith.constant dense<0.000000e+00> : vector<8x4xf32>
    %688 = tpu.matmul %686, %687, %cst_200 {dimension_numbers = #tpu.dot_dimension_numbers<[1], [0], [0], [1], [0, 0, 1, 1], [], []>} : vector<8x32xf32>, vector<32x4xf32>, vector<8x4xf32> -> vector<8x4xf32>
    %c0_201 = arith.constant 0 : index
    %c0_202 = arith.constant 0 : index
    %689 = vector.load %arg11[%c0_201, %c0_202] : memref<1x4xf32, #tpu.memory_space<vmem>>, vector<1x4xf32>
    %690 = vector.broadcast %689 : vector<1x4xf32> to vector<8x4xf32>
    %691 = arith.addf %688, %690 : vector<8x4xf32>
    %cst_203 = arith.constant 0.000000e+00 : f32
    %692 = vector.broadcast %cst_203 : f32 to vector<8x2xf32>
    %693 = vector.extract_strided_slice %691 {offsets = [0, 0], sizes = [8, 2], strides = [1, 1]} : vector<8x4xf32> to vector<8x2xf32>
    %cst_204 = arith.constant dense<0xFF800000> : vector<8xf32>
    %694 = vector.multi_reduction <maximumf>, %693, %cst_204 [1] : vector<8x2xf32> to vector<8xf32>
    %cst_205 = arith.constant 0xFF800000 : f32
    %695 = vector.broadcast %cst_205 : f32 to vector<8xf32>
    %696 = arith.maximumf %695, %694 : vector<8xf32>
    %697 = vector.shape_cast %696 : vector<8xf32> to vector<8x1xf32>
    %698 = vector.broadcast %697 : vector<8x1xf32> to vector<8x2xf32>
    %699 = arith.subf %693, %698 : vector<8x2xf32>
    %700 = math.exp %699 : vector<8x2xf32>
    %cst_206 = arith.constant dense<0.000000e+00> : vector<8xf32>
    %701 = vector.multi_reduction <add>, %700, %cst_206 [1] : vector<8x2xf32> to vector<8xf32>
    %702 = vector.shape_cast %701 : vector<8xf32> to vector<8x1xf32>
    %703 = vector.broadcast %702 : vector<8x1xf32> to vector<8x2xf32>
    %704 = arith.divf %700, %703 : vector<8x2xf32>
    %c0_i32_207 = arith.constant 0 : i32
    %705 = vector.broadcast %c0_i32_207 : i32 to vector<8x1xi32>
    %706 = arith.cmpi eq, %2, %705 : vector<8x1xi32>
    %707 = vector.shape_cast %706 : vector<8x1xi1> to vector<8x1xi1>
    %708 = vector.broadcast %707 : vector<8x1xi1> to vector<8x2xi1>
    %709 = arith.select %708, %704, %692 : vector<8x2xi1>, vector<8x2xf32>
    %710 = vector.extract_strided_slice %691 {offsets = [0, 2], sizes = [8, 2], strides = [1, 1]} : vector<8x4xf32> to vector<8x2xf32>
    %cst_208 = arith.constant dense<0xFF800000> : vector<8xf32>
    %711 = vector.multi_reduction <maximumf>, %710, %cst_208 [1] : vector<8x2xf32> to vector<8xf32>
    %cst_209 = arith.constant 0xFF800000 : f32
    %712 = vector.broadcast %cst_209 : f32 to vector<8xf32>
    %713 = arith.maximumf %712, %711 : vector<8xf32>
    %714 = vector.shape_cast %713 : vector<8xf32> to vector<8x1xf32>
    %715 = vector.broadcast %714 : vector<8x1xf32> to vector<8x2xf32>
    %716 = arith.subf %710, %715 : vector<8x2xf32>
    %717 = math.exp %716 : vector<8x2xf32>
    %cst_210 = arith.constant dense<0.000000e+00> : vector<8xf32>
    %718 = vector.multi_reduction <add>, %717, %cst_210 [1] : vector<8x2xf32> to vector<8xf32>
    %719 = vector.shape_cast %718 : vector<8xf32> to vector<8x1xf32>
    %720 = vector.broadcast %719 : vector<8x1xf32> to vector<8x2xf32>
    %721 = arith.divf %717, %720 : vector<8x2xf32>
    %c1_i32_211 = arith.constant 1 : i32
    %722 = vector.broadcast %c1_i32_211 : i32 to vector<8x1xi32>
    %723 = arith.cmpi eq, %2, %722 : vector<8x1xi32>
    %724 = vector.shape_cast %723 : vector<8x1xi1> to vector<8x1xi1>
    %725 = vector.broadcast %724 : vector<8x1xi1> to vector<8x2xi1>
    %726 = arith.select %725, %721, %709 : vector<8x2xi1>, vector<8x2xf32>
    %c0_212 = arith.constant 0 : index
    %c0_213 = arith.constant 0 : index
    %727 = vector.load %arg18[%c0_212, %c0_213] : memref<8x2xf32, #tpu.memory_space<vmem>>, vector<8x2xf32>
    tpu.vector_store %arg18[%c0_212, %c0_213], %726 {strides = array<i32>} : memref<8x2xf32, #tpu.memory_space<vmem>>, vector<8x2xf32>,
    return
  }
}

</mosaic_0001>

<bundles_post_ra>
// kernel: tpu_custom_call.1
= control target key start
LH: loop header
LB: loop body
LE: loop exit
PB: predicated region body
PF: predicated region fallthrough
CT: control target
= control target key end

     0   :  { %s7148_s0 = inlined_call_operand.vmem [shape: f32[8,8,16], index: 0, kind: input, shape index: {}]   ;;  %s7149_s1 = inlined_call_operand.vmem [shape: s32[8,1], index: 1, kind: input, shape index: {}]   ;;  %s7150_s2 = inlined_call_operand.hbm [shape: f32[1,16], index: 2, kind: input, shape index: {}]   ;;  %s7151_s3 = inlined_call_operand.vmem [shape: f32[16,64], index: 3, kind: input, shape index: {}]   ;;  %s7152_s4 = inlined_call_operand.hbm [shape: f32[1,64], index: 4, kind: input, shape index: {}]   ;;  %s7153_s5 = inlined_call_operand.vmem [shape: f32[64,6], index: 5, kind: input, shape index: {}]   ;;  %s7154_s6 = inlined_call_operand.hbm [shape: f32[1,6], index: 6, kind: input, shape index: {}]   ;;  %s7155_s7 = inlined_call_operand.hbm [shape: f32[1,32], index: 7, kind: input, shape index: {}]   ;;  %s7156_s8 = inlined_call_operand.vmem [shape: f32[1,32], index: 8, kind: input, shape index: {}]   ;;  %s7157_s9 = inlined_call_operand.vmem [shape: f32[96,3], index: 9, kind: input, shape index: {}]   ;;  %s7158_s10 = inlined_call_operand.vmem [shape: f32[32,4], index: 10, kind: input, shape index: {}]   ;;  %s7159_s11 = inlined_call_operand.vmem [shape: f32[1,4], index: 11, kind: input, shape index: {}]   ;;  %s7160_s12 = inlined_call_operand.vmem [shape: f32[16,128], index: 12, kind: input, shape index: {}]   ;;  %s7161_s13 = inlined_call_operand.vmem [shape: f32[32,128], index: 13, kind: input, shape index: {}]   ;;  %s7162_s14 = inlined_call_operand.vmem [shape: f32[1,128], index: 14, kind: input, shape index: {}]   ;;  %s7163_s15 = inlined_call_operand.vmem [shape: f32[32,384], index: 15, kind: input, shape index: {}]   ;;  %s7164_s16 = inlined_call_operand.hbm [shape: f32[96,384], index: 16, kind: input, shape index: {}]   ;;  %s7165_s17 = inlined_call_operand.vmem [shape: f32[1,384], index: 17, kind: input, shape index: {}]   ;;  %s7166_s18 = inlined_call_operand.vmem [shape: f32[8,2], index: 18, kind: output, shape index: {}]  }
   0x1   :  { %7169 = sst [smem:[#allocation17_spill]] %s7148_s0 }
   0x2   :  { %7170 = sst [smem:[#allocation18_spill]] %s7149_s1 }
   0x3   :  { %7171 = sst [smem:[#allocation19_spill]] %s7150_s2 }
   0x4   :  { %23 = vsyncpa [#allocation7], 0 }
   0x5   :  { %24 = vsyncpa [#allocation9], 0 }
   0x6   :  { %25 = vsyncpa [#allocation12], 0  ;;  %s5811_s27 = smov [#allocation8]   ;;  %s5812_s29 = smov [#allocation11]  }
   0x7   :  { %s48_s28 = sshll.u32 %s5811_s27, 4  ;;  %s70_s30 = sshll.u32 %s5812_s29, 4  ;;  %s49_s28 = int_to_ptr.vmem [resolvable:$true] %s48_s28  ;;  %s71_s30 = int_to_ptr.vmem [resolvable:$true] %s70_s30 }
   0x8   :  { %s5695_s1 = scalar_lea.hbm %s7152_s4, 16 }
   0x9   :  { %p5696_p0 = scmp.ne.s32.totalorder %s7152_s4, %s5695_s1  ;;  %p5699_p1 = scmp.lt.u32.totalorder %s5695_s1, %s7152_s4 }
   0xb   :  { %p5701_p2 = pnand %p5699_p1, %p5696_p0 }
   0xd   :  { %5704 = shalt.err (!%p5701_p2)
}
   0xe   :  { %s5705_s23 = scalar_lea.vmem %s49_s28, 16  ;;  %s5709_s24 = scalar_lea.vmem %s49_s28, 32 }
   0xf   :  { %p5706_p3 = scmp.ne.s32.totalorder %s49_s28, %s5705_s23  ;;  %p5710_p4 = scmp.lt.s32.totalorder %s49_s28, %s49_s28 }
  0x10   :  { %p5711_p5 = scmp.lt.s32.totalorder %s5709_s24, %s5705_s23 }
  0x12   :  { %p5712_p6 = por %p5711_p5, %p5710_p4 }
  0x14   :  { %p5713_p7 = pnand %p5712_p6, %p5706_p3 }
  0x16   :  { %5716 = shalt.err (!%p5713_p7)
}
  0x17   :  { %51 = dma.hbm_to_vmem [thread:$0]  %s7152_s4, 16, %s49_s28, [#allocation9]  }
  0x18   :  { %s5717_s0 = scalar_lea.hbm %s7155_s7, 16 }
  0x19   :  { %p5718_p8 = scmp.ne.s32.totalorder %s7155_s7, %s5717_s0  ;;  %p5721_p9 = scmp.lt.u32.totalorder %s5717_s0, %s7155_s7 }
  0x1b   :  { %p5723_p10 = pnand %p5721_p9, %p5718_p8 }
  0x1d   :  { %5726 = shalt.err (!%p5723_p10)
}
  0x1e   :  { %s5727_s22 = scalar_lea.vmem %s71_s30, 16  ;;  %s5731_s2 = scalar_lea.vmem %s71_s30, 32 }
  0x1f   :  { %p5728_p11 = scmp.ne.s32.totalorder %s71_s30, %s5727_s22  ;;  %p5732_p12 = scmp.lt.s32.totalorder %s71_s30, %s71_s30 }
  0x20   :  { %p5733_p13 = scmp.lt.s32.totalorder %s5731_s2, %s5727_s22 }
  0x22   :  { %p5734_p0 = por %p5733_p13, %p5732_p12 }
  0x24   :  { %p5735_p1 = pnand %p5734_p0, %p5728_p11 }
  0x26   :  { %5738 = shalt.err (!%p5735_p1)
}
  0x27   :  { %73 = dma.hbm_to_vmem [thread:$0]  %s7155_s7, 16, %s71_s30, [#allocation12]  }
  0x28   :  { %s5813_s23 = smov [#allocation6]   ;;  %s5814_s25 = smov [#allocation10]  }
  0x29   :  { %s36_s24 = sshll.u32 %s5813_s23, 4  ;;  %s60_s26 = sshll.u32 %s5814_s25, 4  ;;  %s37_s24 = int_to_ptr.vmem [resolvable:$true] %s36_s24  ;;  %s61_s26 = int_to_ptr.vmem [resolvable:$true] %s60_s26 }
  0x2a   :  { %s7172_s0 = sld [smem:[#allocation19_spill]] }
  0x30   :  { %s5739_s19 = scalar_lea.hbm %s7172_s0, 16 }
  0x31   :  { %p5740_p2 = scmp.ne.s32.totalorder %s7172_s0, %s5739_s19  ;;  %p5743_p3 = scmp.lt.u32.totalorder %s5739_s19, %s7172_s0 }
  0x33   :  { %p5745_p4 = pnand %p5743_p3, %p5740_p2 }
  0x35   :  { %5748 = shalt.err (!%p5745_p4)
}
  0x36   :  { %s5749_s7 = scalar_lea.vmem %s37_s24, 16  ;;  %s5753_s30 = scalar_lea.vmem %s37_s24, 32 }
  0x37   :  { %p5750_p5 = scmp.ne.s32.totalorder %s37_s24, %s5749_s7  ;;  %p5754_p6 = scmp.lt.s32.totalorder %s37_s24, %s37_s24 }
  0x38   :  { %p5755_p7 = scmp.lt.s32.totalorder %s5753_s30, %s5749_s7 }
  0x3a   :  { %p5756_p8 = por %p5755_p7, %p5754_p6 }
  0x3c   :  { %p5757_p9 = pnand %p5756_p8, %p5750_p5 }
  0x3e   :  { %5760 = shalt.err (!%p5757_p9)
}
  0x3f   :  { %39 = dma.hbm_to_vmem [thread:$0]  %s7172_s0, 16, %s37_s24, [#allocation7]  }
  0x40   :  { %s5761_s25 = scalar_lea.hbm %s7154_s6, 16 }
  0x41   :  { %p5762_p10 = scmp.ne.s32.totalorder %s7154_s6, %s5761_s25  ;;  %p5765_p11 = scmp.lt.u32.totalorder %s5761_s25, %s7154_s6 }
  0x43   :  { %p5767_p12 = pnand %p5765_p11, %p5762_p10 }
  0x45   :  { %5770 = shalt.err (!%p5767_p12)
}
  0x46   :  { %s5771_s20 = scalar_lea.vmem %s61_s26, 16  ;;  %s5775_s21 = scalar_lea.vmem %s61_s26, 32 }
  0x47   :  { %p5772_p13 = scmp.ne.s32.totalorder %s61_s26, %s5771_s20  ;;  %p5776_p0 = scmp.lt.s32.totalorder %s61_s26, %s61_s26 }
  0x48   :  { %p5777_p1 = scmp.lt.s32.totalorder %s5775_s21, %s5771_s20 }
  0x4a   :  { %p5778_p2 = por %p5777_p1, %p5776_p0 }
  0x4c   :  { %p5779_p3 = pnand %p5778_p2, %p5772_p13 }
  0x4e   :  { %5782 = shalt.err (!%p5779_p3)
}
  0x4f   :  { %63 = dma.hbm_to_vmem [thread:$0]  %s7154_s6, 16, %s61_s26, [#allocation9]  }
  0x50   :  { %s5815_s22 = smov [#allocation13]   ;;  %s5783_s4 = scalar_lea.hbm %s7164_s16, 4608 }
  0x51   :  { %s95_s7 = sshll.u32 %s5815_s22, 4  ;;  %p5784_p4 = scmp.ne.s32.totalorder %s7164_s16, %s5783_s4  ;;  %s96_s7 = int_to_ptr.vmem [resolvable:$true] %s95_s7 }
  0x52   :  { %p5787_p5 = scmp.lt.u32.totalorder %s5783_s4, %s7164_s16 }
  0x54   :  { %p5789_p6 = pnand %p5787_p5, %p5784_p4 }
  0x56   :  { %5792 = shalt.err (!%p5789_p6)
}
  0x57   :  { %s5793_s29 = scalar_lea.vmem %s96_s7, 4608  ;;  %p5798_p8 = scmp.lt.s32.totalorder %s96_s7, %s96_s7 }
  0x58   :  { %p5794_p7 = scmp.ne.s32.totalorder %s96_s7, %s5793_s29  ;;  %p5799_p9 = scmp.lt.s32.totalorder %s5793_s29, %s5793_s29 }
  0x5a   :  { %p5800_p10 = por %p5799_p9, %p5798_p8 }
  0x5c   :  { %p5801_p11 = pnand %p5800_p10, %p5794_p7 }
  0x5e   :  { %5804 = shalt.err (!%p5801_p11)
}
  0x5f   :  { %s5816_s6 = smov 384   ;;  %s5817_s26 = smov 24  }
  0x60   :  { %101 = dma.hbm_to_vmem [thread:$0]  %s7164_s16, 4608, %s96_s7, [#allocation12], %s5816_s6, %s5816_s6, %s5817_s26  }
  0x61   :  { %5805 = dma.done.wait [#allocation7], 16  }
  0x62   :  { %5806 = vsyncadd [#allocation7], 4294967280 }
  0x63   :  { %5807 = dma.done.wait [#allocation9], 32  }
  0x64   :  { %5808 = vsyncadd [#allocation9], 4294967264 }
  0x65   :  { %5809 = dma.done.wait [#allocation12], 4624  }
  0x66   :  { %5810 = vsyncadd [#allocation12], 4294962672  ;;  %vm128_vm0 = vcmask 130048   ;;  %s7173_s24 = sld [smem:[#allocation17_spill]]  ;;  %v4179_v14 = vld [vmem:[#allocation6] ss:$0 sm:$0xff] }
  0x67   :  { %v278_v33 = vld [vmem:[%s7151_s3] sm:$0xff]  ;;  %v279_v34 = vld [vmem:[%s7151_s3 + $0x8] sm:$0xff]  ;;  %v5818_v36 = vmov 0.0|0.0   ;;  %vm5819_vm1 = vmmov 0   ;;  %v5820_v38 = vmov 0.0   ;;  %v363_v43 = vld [vmem:[%s7153_s5 + $0x10] sm:$0xff] }
  0x68   :  { %v496_v35 = vld [vmem:[%s7160_s12] sm:$0xff]  ;;  %4890 = vmatprep.subr.bf16.mxu0 %v5818_v36  ;;  %v4891_v37 = vpack.c.bf16 %v279_v34, %v278_v33  ;;  %4481 = vmatprep.mubr.msk.f32.mxu0 %vm5819_vm1, %v5820_v38  ;;  %v497_v39 = vld [vmem:[%s7160_s12 + $0x8] sm:$0xff]  ;;  %v364_v45 = vld [vmem:[%s7153_s5 + $0x18] sm:$0xff]  ;;  %vm376_vm10 = vcmask 523264   ;;  %vm647_vm11 = vcmask 261120   ;;  %vm1966_vm12 = vcmask 785408  }
  0x69   :  { %v6073_v40 = vpack.c.bf16 %v497_v39, %v496_v35  ;;  %4893 = vmatprep.subr.bf16.mxu1 %v5818_v36  ;;  %4500 = vmatprep.mubr.msk.f32.mxu1 %vm5819_vm1, %v5820_v38  ;;  %v361_v41 = vld [vmem:[%s7153_s5] sm:$0xff]  ;;  %v362_v42 = vld [vmem:[%s7153_s5 + $0x8] sm:$0xff]  ;;  %v4897_v46 = vpack.c.bf16 %v364_v45, %v363_v43  ;;  %vm450_vm13 = vcmask 23552   ;;  %vm469_vm14 = vcmask 48152   ;;  %s7174_s23 = sld [smem:[#allocation18_spill]]  ;;  %s5825_s25 = smov 125  }
  0x6a   :  { %4892 = vmatpush3.bf16.msra.mxu0 %v4891_v37  ;;  %v4894_v44 = vpack.c.bf16 %v362_v42, %v361_v41  ;;  %v365_v47 = vld [vmem:[%s7153_s5 + $0x20] sm:$0xff]  ;;  %v366_v48 = vld [vmem:[%s7153_s5 + $0x28] sm:$0xff]  ;;  %s5826_s27 = smov 3  }
  0x6b   :  { %4906 = vmatprep.subr.bf16.mxu0 %v6073_v40  ;;  %v4900_v49 = vpack.c.bf16 %v366_v48, %v365_v47 }
  0x6c   :  { %v5989_v0 = vld [vmem:[%s7173_s24 + $0x10] sm:$0xff]  ;;  %v5994_v1 = vld [vmem:[%s7173_s24] sm:$0xff]  ;;  %v5999_v2 = vld [vmem:[%s7173_s24 + $0x18] sm:$0xff]  ;;  %4895 = vmatpush3.bf16.msra.mxu1 %v4894_v44 }
  0x6d   :  { %v135_v3 = vsel %vm128_vm0, %v5989_v0, 0.0  ;;  %v129_v4 = vsel %vm128_vm0, %v5994_v1, 0.0  ;;  %v6008_v5 = vld [vmem:[%s7173_s24 + $0x8] sm:$0xff]  ;;  %v138_v6 = vsel %vm128_vm0, %v5999_v2, 0.0  ;;  %v6022_v9 = vld [vmem:[%s7173_s24 + $0x20] sm:$0xff]  ;;  %v6031_v12 = vld [vmem:[%s7173_s24 + $0x38] sm:$0xff]  ;;  %v168_v18 = vmul.f32 %v4179_v14, %v5994_v1  ;;  %4896 = vmatprep.subr.bf16.mxu1 %v5818_v36 }
  0x6e   :  { %136 = vadd.xlane.f32.xlu1 %v135_v3  ;;  %130 = vadd.xlane.f32.xlu0 %v129_v4  ;;  %v132_v7 = vsel %vm128_vm0, %v6008_v5, 0.0  ;;  %v6017_v8 = vld [vmem:[%s7173_s24 + $0x28] sm:$0xff]  ;;  %v141_v11 = vsel %vm128_vm0, %v6022_v9, 0.0  ;;  %v6036_v13 = vld [vmem:[%s7173_s24 + $0x30] sm:$0xff]  ;;  %v150_v15 = vsel %vm128_vm0, %v6031_v12, 0.0  ;;  %v169_v17 = vmul.f32 %v4179_v14, %v6008_v5 }
  0x6f   :  { %v144_v10 = vsel %vm128_vm0, %v6017_v8, 0.0  ;;  %v147_v16 = vsel %vm128_vm0, %v6036_v13, 0.0  ;;  %v176_v20 = vsel %vm128_vm0, %v168_v18, 0.0  ;;  %v171_v21 = vmul.f32 %v4179_v14, %v5999_v2 }
  0x70   :  { %v179_v19 = vsel %vm128_vm0, %v169_v17, 0.0  ;;  %v170_v22 = vmul.f32 %v4179_v14, %v5989_v0  ;;  %v173_v25 = vmul.f32 %v4179_v14, %v6017_v8  ;;  %v172_v26 = vmul.f32 %v4179_v14, %v6022_v9  ;;  %4898 = vmatpush3.bf16.msra.mxu1 %v4897_v46 }
  0x71   :  { %v185_v23 = vsel %vm128_vm0, %v171_v21, 0.0  ;;  %v175_v29 = vmul.f32 %v4179_v14, %v6031_v12  ;;  %v174_v30 = vmul.f32 %v4179_v14, %v6036_v13  ;;  %4899 = vmatprep.subr.bf16.mxu1 %v5818_v36 }
  0x72   :  { %139 = vadd.xlane.f32.xlu1 %v138_v6  ;;  %133 = vadd.xlane.f32.xlu0 %v132_v7  ;;  %v182_v24 = vsel %vm128_vm0, %v170_v22, 0.0  ;;  %v191_v27 = vsel %vm128_vm0, %v173_v25, 0.0  ;;  %v188_v28 = vsel %vm128_vm0, %v172_v26, 0.0 }
  0x73   :  { %v197_v31 = vsel %vm128_vm0, %v175_v29, 0.0  ;;  %v194_v32 = vsel %vm128_vm0, %v174_v30, 0.0 }
  0x74   :  { %4901 = vmatpush3.bf16.msra.mxu1 %v4900_v49 }
  0x75   :  { %4902 = vmatprep.subr.bf16.mxu1 %v5818_v36 }
  0x76   :  { %145 = vadd.xlane.f32.xlu1 %v144_v10  ;;  %142 = vadd.xlane.f32.xlu0 %v141_v11 }
  0x7a   :  { %151 = vadd.xlane.f32.xlu1 %v150_v15  ;;  %148 = vadd.xlane.f32.xlu0 %v147_v16 }
  0x7e   :  { %180 = vadd.xlane.f32.xlu1 %v179_v19  ;;  %177 = vadd.xlane.f32.xlu0 %v176_v20 }
  0x82   :  { %186 = vadd.xlane.f32.xlu1 %v185_v23  ;;  %183 = vadd.xlane.f32.xlu0 %v182_v24 }
  0x86   :  { %192 = vadd.xlane.f32.xlu1 %v191_v27  ;;  %189 = vadd.xlane.f32.xlu0 %v188_v28 }
  0x8a   :  { %198 = vadd.xlane.f32.xlu1 %v197_v31  ;;  %195 = vadd.xlane.f32.xlu0 %v194_v32 }
  0xfb   :  { %v6099_v50 = vpop.xlane.xlu1 %136  ;;  %v6101_v51 = vpop.xlane.xlu0 %130 }
  0xfc   :  { %vm155_vm4 = vcmp.ne.f32.partialorder %v6099_v50, 0.0  ;;  %vm153_vm5 = vcmp.ne.f32.partialorder %v6101_v51, 0.0 }
  0xff   :  { %v6104_v52 = vpop.xlane.xlu1 %139  ;;  %v6106_v53 = vpop.xlane.xlu0 %133 }
 0x100   :  { %vm154_vm6 = vcmp.ne.f32.partialorder %v6106_v53, 0.0  ;;  %vm156_vm7 = vcmp.ne.f32.partialorder %v6104_v52, 0.0 }
 0x103   :  { %v6108_v54 = vpop.xlane.xlu1 %145  ;;  %v6110_v55 = vpop.xlane.xlu0 %142 }
 0x104   :  { %vm158_vm2 = vcmp.ne.f32.partialorder %v6108_v54, 0.0  ;;  %vm157_vm3 = vcmp.ne.f32.partialorder %v6110_v55, 0.0 }
 0x107   :  { %v6112_v56 = vpop.xlane.xlu1 %151  ;;  %v6114_v57 = vpop.xlane.xlu0 %148 }
 0x108   :  { %vm160_vm8 = vcmp.ne.f32.partialorder %v6112_v56, 0.0  ;;  %vm159_vm9 = vcmp.ne.f32.partialorder %v6114_v57, 0.0 }
 0x10b   :  { %v181_v58 = vpop.xlane.xlu1 %180  ;;  %v178_v59 = vpop.xlane.xlu0 %177 }
 0x10c   :  { %v201_v6 = vsel %vm154_vm6, %v181_v58, -1e+30  ;;  %v200_v7 = vsel %vm153_vm5, %v178_v59, -1e+30 }
 0x10f   :  { %v187_v60 = vpop.xlane.xlu1 %186  ;;  %v184_v61 = vpop.xlane.xlu0 %183 }
 0x110   :  { %v203_v10 = vsel %vm156_vm7, %v187_v60, -1e+30  ;;  %v202_v17 = vsel %vm155_vm4, %v184_v61, -1e+30 }
 0x113   :  { %v193_v62 = vpop.xlane.xlu1 %192  ;;  %v190_v63 = vpop.xlane.xlu0 %189 }
 0x114   :  { %v205_v3 = vsel %vm158_vm2, %v193_v62, -1e+30  ;;  %v204_v4 = vsel %vm157_vm3, %v190_v63, -1e+30 }
 0x115   :  { %v209_v11 = vmax.f32 %v201_v6, %v205_v3  ;;  %v208_v14 = vmax.f32 %v200_v7, %v204_v4 }
 0x117   :  { %v199_v15 = vpop.xlane.xlu1 %198  ;;  %v196_v16 = vpop.xlane.xlu0 %195  ;;  %v212_v22 = vmax.f32 %v208_v14, %v209_v11 }
 0x118   :  { %v207_v18 = vsel %vm160_vm8, %v199_v15, -1e+30  ;;  %v206_v19 = vsel %vm159_vm9, %v196_v16, -1e+30 }
 0x119   :  { %v211_v20 = vmax.f32 %v203_v10, %v207_v18  ;;  %v210_v21 = vmax.f32 %v202_v17, %v206_v19 }
 0x11b   :  { %v213_v23 = vmax.f32 %v210_v21, %v211_v20 }
 0x11d   :  { %v214_v24 = vmax.f32 %v212_v22, %v213_v23 }
 0x11f   :  { %v215_v25 = vsub.f32 %v200_v7, %v214_v24  ;;  %v216_v26 = vsub.f32 %v201_v6, %v214_v24  ;;  %v217_v27 = vsub.f32 %v202_v17, %v214_v24  ;;  %v218_v28 = vsub.f32 %v203_v10, %v214_v24 }
 0x120   :  { %v219_v31 = vsub.f32 %v204_v4, %v214_v24  ;;  %v220_v33 = vsub.f32 %v205_v3, %v214_v24  ;;  %v221_v35 = vsub.f32 %v206_v19, %v214_v24  ;;  %v222_v39 = vsub.f32 %v207_v18, %v214_v24 }
 0x121   :  { %v223_v29 = vmul.f32 1.442695, %v215_v25  ;;  %v225_v30 = vmul.f32 1.442695, %v216_v26  ;;  %v227_v32 = vmul.f32 1.442695, %v217_v27 }
 0x122   :  { %v229_v34 = vmul.f32 1.442695, %v218_v28  ;;  %v231_v37 = vmul.f32 1.442695, %v219_v31  ;;  %v233_v41 = vmul.f32 1.442695, %v220_v33 }
 0x123   :  { %5403 = vpow2.f32 %v223_v29  ;;  %v235_v42 = vmul.f32 1.442695, %v221_v35  ;;  %v237_v43 = vmul.f32 1.442695, %v222_v39 }
 0x124   :  { %5405 = vpow2.f32 %v225_v30 }
 0x125   :  { %5407 = vpow2.f32 %v227_v32 }
 0x126   :  { %5409 = vpow2.f32 %v229_v34 }
 0x127   :  { %5411 = vpow2.f32 %v231_v37 }
 0x128   :  { %5413 = vpow2.f32 %v233_v41 }
 0x129   :  { %5415 = vpow2.f32 %v235_v42 }
 0x12a   :  { %5417 = vpow2.f32 %v237_v43 }
 0x12d   :  { %v5404_v44 = vpop.eup %5403 }
 0x12e   :  { %v5406_v45 = vpop.eup %5405 }
 0x12f   :  { %v239_v46 = vadd.f32 %v5406_v45, %v5404_v44  ;;  %v5408_v47 = vpop.eup %5407 }
 0x130   :  { %v5410_v49 = vpop.eup %5409 }
 0x131   :  { %v240_v48 = vadd.f32 %v5408_v47, %v239_v46  ;;  %v5412_v59 = vpop.eup %5411  ;;  %v498_v46 = vld [vmem:[%s7161_s13] sm:$0xff] }
 0x132   :  { %v5414_v61 = vpop.eup %5413 }
 0x133   :  { %v241_v58 = vadd.f32 %v5410_v49, %v240_v48  ;;  %v5416_v63 = vpop.eup %5415 }
 0x134   :  { %v5418_v4 = vpop.eup %5417 }
 0x135   :  { %v242_v60 = vadd.f32 %v5412_v59, %v241_v58  ;;  %v501_v58 = vld [vmem:[%s7161_s13 + $0x18] sm:$0xff] }
 0x137   :  { %v243_v62 = vadd.f32 %v5414_v61, %v242_v60 }
 0x139   :  { %v244_v3 = vadd.f32 %v5416_v63, %v243_v62 }
 0x13b   :  { %v245_v6 = vadd.f32 %v5418_v4, %v244_v3 }
 0x13d   :  { %5419 = vrcp.f32 %v245_v6 }
 0x147   :  { %v5420_v7 = vpop.eup %5419 }
 0x148   :  { %v247_v10 = vmul.f32 %v5420_v7, %v5404_v44  ;;  %v248_v11 = vmul.f32 %v5420_v7, %v5406_v45  ;;  %v249_v14 = vmul.f32 %v5420_v7, %v5408_v47  ;;  %v250_v15 = vmul.f32 %v5420_v7, %v5410_v49  ;;  %v499_v47 = vld [vmem:[%s7161_s13 + $0x8] sm:$0xff]  ;;  %v500_v49 = vld [vmem:[%s7161_s13 + $0x10] sm:$0xff] }
 0x149   :  { %v251_v16 = vmul.f32 %v5420_v7, %v5412_v59  ;;  %v252_v20 = vmul.f32 %v5420_v7, %v5414_v61  ;;  %v253_v25 = vmul.f32 %v5420_v7, %v5416_v63  ;;  %v254_v29 = vmul.f32 %v5420_v7, %v5418_v4 }
 0x14a   :  { %v255_v17 = vmul.f32 %v247_v10, %v5994_v1  ;;  %v256_v18 = vmul.f32 %v248_v11, %v6008_v5  ;;  %v257_v19 = vmul.f32 %v249_v14, %v5989_v0  ;;  %v258_v21 = vmul.f32 %v250_v15, %v5999_v2 }
 0x14b   :  { %v259_v26 = vmul.f32 %v251_v16, %v6022_v9  ;;  %v260_v30 = vmul.f32 %v252_v20, %v6017_v8  ;;  %v261_v33 = vmul.f32 %v253_v25, %v6036_v13  ;;  %v262_v37 = vmul.f32 %v254_v29, %v6031_v12 }
 0x14c   :  { %v263_v22 = vsel %vm128_vm0, %v255_v17, 0.0  ;;  %v264_v23 = vsel %vm128_vm0, %v256_v18, 0.0  ;;  %v266_v27 = vsel %vm128_vm0, %v257_v19, 0.0  ;;  %v268_v31 = vsel %vm128_vm0, %v258_v21, 0.0 }
 0x14d   :  { %v265_v24 = vadd.f32 %v264_v23, %v263_v22  ;;  %v270_v34 = vsel %vm128_vm0, %v259_v26, 0.0  ;;  %v272_v39 = vsel %vm128_vm0, %v260_v30, 0.0  ;;  %v274_v42 = vsel %vm128_vm0, %v261_v33, 0.0 }
 0x14e   :  { %v276_v44 = vsel %vm128_vm0, %v262_v37, 0.0  ;;  %v6166_v48 = vpack.c.bf16 %v499_v47, %v498_v46 }
 0x14f   :  { %v267_v28 = vadd.f32 %v266_v27, %v265_v24 }
 0x151   :  { %v269_v32 = vadd.f32 %v268_v31, %v267_v28 }
 0x153   :  { %v271_v35 = vadd.f32 %v270_v34, %v269_v32 }
 0x155   :  { %v273_v41 = vadd.f32 %v272_v39, %v271_v35 }
 0x157   :  { %v275_v43 = vadd.f32 %v274_v42, %v273_v41 }
 0x159   :  { %v277_v45 = vadd.f32 %v276_v44, %v275_v43 }
 0x15b   :  { %4482 = vmatmul.mubr.msk.f32.vlgmr.msra.gmra.mrb[0].mxu0 %vm128_vm0, %v277_v45 }
 0x15c   :  { %4908 = vmatpush3.bf16.msra.mxu0 %v6073_v40  ;;  %4507 = vmatprep.mubr.msk.f32.mxu0 %vm128_vm0, %v5994_v1  ;;  %v6180_v1 = vpack.c.bf16 %v501_v58, %v500_v49  ;;  %v4184_v40 = vld [vmem:[%s7162_s14] ss:$0 sm:$0xff]  ;;  %s5822_s14 = smov 32  }
 0x15d   :  { %4909 = vmatprep.subr.bf16.mxu0 %v5818_v36 }
 0x15f   :  { %4508 = vmatmul.mubr.msk.f32.vlgmr.msra.gmra.mrb[2].mxu0 %vm128_vm0, %v6008_v5 }
 0x160   :  { %4911 = vmatpush3.bf16.msra.mxu0 %v6166_v48  ;;  %4510 = vmatprep.mubr.msk.f32.mxu0 %vm128_vm0, %v5989_v0  ;;  %v367_v0 = vld [vmem:[%s7153_s5 + $0x30] sm:$0xff] }
 0x161   :  { %4912 = vmatprep.subr.bf16.mxu0 %v5818_v36 }
 0x163   :  { %4511 = vmatmul.mubr.msk.f32.gmra.mrb[4].mxu0 %vm128_vm0, %v5999_v2  ;;  %v368_v2 = vld [vmem:[%s7153_s5 + $0x38] sm:$0xff]  ;;  %s5821_s5 = smov 64  }
 0x164   :  { %4513 = vmatprep.mubr.msk.f32.mxu0 %vm128_vm0, %v6022_v9  ;;  %4914 = vmatpush3.bf16.msra.mxu0 %v6180_v1  ;;  %v4903_v5 = vpack.c.bf16 %v368_v2, %v367_v0 }
 0x165   :  { %4915 = vmatprep.subr.bf16.mxu0 %v5818_v36 }
 0x166   :  { %4904 = vmatpush3.bf16.msra.mxu1 %v4903_v5 }
 0x167   :  { %4514 = vmatmul.mubr.msk.f32.gmra.mrb[6].mxu0 %vm128_vm0, %v6017_v8  ;;  %4927 = vmatprep.subr.bf16.mxu1 %v5818_v36  ;;  %v4180_v8 = vld [vmem:[#allocation8] ss:$0 sm:$0xff] }
 0x168   :  { %4516 = vmatprep.mubr.msk.f32.mxu0 %vm128_vm0, %v6036_v13 }
 0x16b   :  { %4517 = vmatmul.mubr.msk.f32.gmra.mrb[8].mxu0 %vm128_vm0, %v6031_v12 }
 0x16c   :  { %4527 = vmatprep.mubr.msk.f32.mxu0 %vm5819_vm1, %v5820_v38 }
 0x16f   :  { %4528 = vmatmul.mubr.f32.vlgmr.msra.gmra.mrb[10].mxu0 %v5820_v38 }
 0x170   :  { %4917 = vmatpush3.bf16.msra.mxu0 %v6166_v48  ;;  %4538 = vmatprep.mubr.msk.f32.mxu0 %vm5819_vm1, %v5820_v38 }
 0x171   :  { %4918 = vmatprep.subr.bf16.mxu0 %v5818_v36 }
 0x174   :  { %4920 = vmatpush3.bf16.msra.mxu0 %v6180_v1 }
 0x175   :  { %4921 = vmatprep.subr.bf16.mxu0 %v5818_v36 }
 0x22e   :  { %v356_v9 = vpop.f32.mrb[0].mxu0 }
 0x22f   :  { %v357_v12 = vadd.f32 %v4180_v8, %v356_v9  ;;  %v4483_v13 = vpop.f32.mrb[1].mxu0 }
 0x231   :  { %v360_v59 = vmax.f32 %v357_v12, 0.0 }
 0x232   :  { %v4509_v60 = vpop.f32.mrb[2].mxu0 }
 0x233   :  { %v605_v61 = vadd.f32 %v4509_v60, %v4184_v40  ;;  %4501 = vmatmul.mubr.msk.f32.vlgmr.msra.gmra.mrb[0].mxu1 %vm376_vm10, %v360_v59  ;;  %v599_v62 = vpop.f32.mrb[3].mxu0 }
 0x234   :  { %4929 = vmatpush3.bf16.msra.mxu1 %v6166_v48  ;;  %4560 = vmatprep.mubr.msk.f32.mxu1 %vm5819_vm1, %v5820_v38  ;;  %v600_v19 = vadd.f32 %v4184_v40, %v599_v62 }
 0x235   :  { %4930 = vmatprep.subr.bf16.mxu1 %v5818_v36 }
 0x236   :  { %v4512_v63 = vpop.f32.mrb[4].mxu0 }
 0x237   :  { %v6219_v3 = vadd.f32 %v4512_v63, %v4184_v40  ;;  %v609_v4 = vpop.f32.mrb[5].mxu0 }
 0x238   :  { %v6221_v6 = vadd.f32 %v4184_v40, %v609_v4  ;;  %4932 = vmatpush3.bf16.msra.mxu1 %v6180_v1 }
 0x239   :  { %4939 = vmatprep.subr.bf16.mxu1 %v5818_v36 }
 0x23a   :  { %v4515_v7 = vpop.f32.mrb[6].mxu0 }
 0x23b   :  { %v6225_v10 = vadd.f32 %v4515_v7, %v4184_v40  ;;  %v619_v11 = vpop.f32.mrb[7].mxu0 }
 0x23c   :  { %v6227_v14 = vadd.f32 %v4184_v40, %v619_v11 }
 0x23e   :  { %v4518_v15 = vpop.f32.mrb[8].mxu0 }
 0x23f   :  { %v6229_v16 = vadd.f32 %v4518_v15, %v4184_v40  ;;  %v629_v17 = vpop.f32.mrb[9].mxu0 }
 0x240   :  { %v6231_v18 = vadd.f32 %v4184_v40, %v629_v17 }
 0x242   :  { %v717_v20 = vpop.f32.mrb[10].mxu0 }
 0x243   :  { %v721_v21 = vadd.f32 %v717_v20, %v600_v19  ;;  %v4529_v22 = vpop.f32.mrb[11].mxu0 }
 0x245   :  { %5421 = vtanh.f32 %v721_v21  ;;  %v4193_v24 = vmul.f32 -1.442695, %v721_v21 }
 0x247   :  { %5423 = vpow2.f32 %v4193_v24 }
 0x24f   :  { %v5422_v23 = vpop.eup %5421 }
 0x250   :  { %731 = vrot.lane.b32.xlu0 %v5422_v23, %s5821_s5 }
 0x251   :  { %v5424_v25 = vpop.eup %5423 }
 0x252   :  { %v725_v26 = vadd.f32 1.0, %v5424_v25 }
 0x254   :  { %5425 = vrcp.f32 %v725_v26 }
 0x25e   :  { %v5426_v27 = vpop.eup %5425 }
 0x25f   :  { %v729_v32 = vmul.f32 0.0, %v5426_v27 }
 0x2c2   :  { %v732_v28 = vpop.permute.xlu0 %731 }
 0x2c3   :  { %v734_v29 = vmul.f32 %v5426_v27, %v732_v28 }
 0x2c5   :  { %736 = vrot.lane.b32.xlu1 %v734_v29, %s5822_s14 }
 0x306   :  { %v6235_v30 = vpop.f32.mrb[0].mxu1 }
 0x307   :  { %v4502_v31 = vpop.f32.mrb[1].mxu1 }
 0x337   :  { %v737_v33 = vpop.permute.xlu1 %736 }
 0x338   :  { %v739_v34 = vadd.f32 %v737_v33, %v729_v32 }
 0x33a   :  { %5427 = vtanh.f32 %v739_v34 }
 0x344   :  { %v5428_v35 = vpop.eup %5427 }
 0x345   :  { %742 = vrot.lane.b32.xlu1 %v5428_v35, %s5821_s5 }
 0x3b7   :  { %v743_v37 = vpop.permute.xlu1 %742 }
 0x3b8   :  { %v745_v39 = vmul.f32 %v5426_v27, %v743_v37 }
 0x3ba   :  { %747 = vrot.lane.b32.xlu1 %v745_v39, %s5822_s14 }
 0x42c   :  { %v748_v41 = vpop.permute.xlu1 %747 }
 0x42d   :  { %750 = vst.msk [vmem:[#allocation2] sm:$0xff] %vm647_vm11, %v748_v41  ;;  %4539 = vmatmul.mubr.msk.f32.vlgmr.msra.gmra.mrb[12].mxu0 %vm647_vm11, %v748_v41 }
 0x42e   :  { %4923 = vmatpush3.bf16.msra.mxu0 %v6166_v48  ;;  %4549 = vmatprep.mubr.msk.f32.mxu0 %vm5819_vm1, %v5820_v38 }
 0x42f   :  { %4924 = vmatprep.subr.bf16.mxu0 %v5818_v36 }
 0x432   :  { %4926 = vmatpush3.bf16.msra.mxu0 %v6180_v1 }
 0x433   :  { %4933 = vmatprep.subr.bf16.mxu0 %v5818_v36 }
 0x500   :  { %v821_v42 = vpop.f32.mrb[12].mxu0 }
 0x501   :  { %v825_v43 = vadd.f32 %v821_v42, %v605_v61  ;;  %v4540_v44 = vpop.f32.mrb[13].mxu0 }
 0x503   :  { %5429 = vtanh.f32 %v825_v43  ;;  %v4195_v46 = vmul.f32 -1.442695, %v825_v43 }
 0x505   :  { %5431 = vpow2.f32 %v4195_v46 }
 0x50d   :  { %v5430_v45 = vpop.eup %5429 }
 0x50e   :  { %835 = vrot.lane.b32.xlu0 %v5430_v45, %s5821_s5 }
 0x50f   :  { %v5432_v47 = vpop.eup %5431 }
 0x510   :  { %v829_v49 = vadd.f32 1.0, %v5432_v47 }
 0x512   :  { %5433 = vrcp.f32 %v829_v49 }
 0x51c   :  { %v5434_v58 = vpop.eup %5433 }
 0x51d   :  { %v833_v5 = vmul.f32 %v5434_v58, %v739_v34 }
 0x580   :  { %v836_v0 = vpop.permute.xlu0 %835 }
 0x581   :  { %v838_v2 = vmul.f32 %v5434_v58, %v836_v0 }
 0x583   :  { %840 = vrot.lane.b32.xlu1 %v838_v2, %s5822_s14 }
 0x5f5   :  { %v841_v8 = vpop.permute.xlu1 %840 }
 0x5f6   :  { %v843_v9 = vadd.f32 %v841_v8, %v833_v5 }
 0x5f8   :  { %5435 = vtanh.f32 %v843_v9 }
 0x602   :  { %v5436_v12 = vpop.eup %5435 }
 0x603   :  { %846 = vrot.lane.b32.xlu0 %v5436_v12, %s5821_s5 }
 0x675   :  { %v847_v13 = vpop.permute.xlu0 %846 }
 0x676   :  { %v849_v40 = vmul.f32 %v5434_v58, %v847_v13 }
 0x678   :  { %851 = vrot.lane.b32.xlu1 %v849_v40, %s5822_s14 }
 0x6ea   :  { %v852_v59 = vpop.permute.xlu1 %851 }
 0x6eb   :  { %855 = vst.msk [vmem:[#allocation2 + $0x8] sm:$0xff] %vm647_vm11, %v852_v59  ;;  %4550 = vmatmul.mubr.msk.f32.vlgmr.msra.gmra.mrb[14].mxu0 %vm647_vm11, %v852_v59 }
 0x6ec   :  { %4935 = vmatpush3.bf16.msra.mxu0 %v6166_v48  ;;  %4571 = vmatprep.mubr.msk.f32.mxu0 %vm5819_vm1, %v5820_v38 }
 0x6ed   :  { %4936 = vmatprep.subr.bf16.mxu0 %v5818_v36 }
 0x6f0   :  { %4938 = vmatpush3.bf16.msra.mxu0 %v6180_v1 }
 0x6f1   :  { %4945 = vmatprep.subr.bf16.mxu0 %v5818_v36 }
 0x7be   :  { %v926_v60 = vpop.f32.mrb[14].mxu0 }
 0x7bf   :  { %v930_v61 = vadd.f32 %v926_v60, %v6221_v6  ;;  %v4551_v62 = vpop.f32.mrb[15].mxu0 }
 0x7c1   :  { %5437 = vtanh.f32 %v930_v61  ;;  %v4197_v4 = vmul.f32 -1.442695, %v930_v61 }
 0x7c3   :  { %5439 = vpow2.f32 %v4197_v4 }
 0x7cb   :  { %v5438_v63 = vpop.eup %5437 }
 0x7cc   :  { %940 = vrot.lane.b32.xlu0 %v5438_v63, %s5821_s5 }
 0x7cd   :  { %v5440_v7 = vpop.eup %5439 }
 0x7ce   :  { %v934_v11 = vadd.f32 1.0, %v5440_v7 }
 0x7d0   :  { %5441 = vrcp.f32 %v934_v11 }
 0x7da   :  { %v5442_v15 = vpop.eup %5441 }
 0x7db   :  { %v938_v20 = vmul.f32 %v5442_v15, %v843_v9 }
 0x83e   :  { %v941_v17 = vpop.permute.xlu0 %940 }
 0x83f   :  { %v943_v19 = vmul.f32 %v5442_v15, %v941_v17 }
 0x841   :  { %945 = vrot.lane.b32.xlu1 %v943_v19, %s5822_s14 }
 0x8b3   :  { %v946_v21 = vpop.permute.xlu1 %945 }
 0x8b4   :  { %v948_v22 = vadd.f32 %v946_v21, %v938_v20 }
 0x8b6   :  { %5443 = vtanh.f32 %v948_v22 }
 0x8c0   :  { %v5444_v6 = vpop.eup %5443 }
 0x8c1   :  { %951 = vrot.lane.b32.xlu0 %v5444_v6, %s5821_s5 }
 0x933   :  { %v952_v23 = vpop.permute.xlu0 %951 }
 0x934   :  { %v954_v24 = vmul.f32 %v5442_v15, %v952_v23 }
 0x936   :  { %956 = vrot.lane.b32.xlu1 %v954_v24, %s5822_s14 }
 0x9a8   :  { %v957_v25 = vpop.permute.xlu1 %956 }
 0x9a9   :  { %960 = vst.msk [vmem:[#allocation2 + $0x10] sm:$0xff] %vm647_vm11, %v957_v25  ;;  %4561 = vmatmul.mubr.msk.f32.vlgmr.msra.gmra.mrb[2].mxu1 %vm647_vm11, %v957_v25 }
 0x9aa   :  { %4941 = vmatpush3.bf16.msra.mxu1 %v6166_v48  ;;  %4582 = vmatprep.mubr.msk.f32.mxu1 %vm5819_vm1, %v5820_v38 }
 0x9ab   :  { %4942 = vmatprep.subr.bf16.mxu1 %v5818_v36 }
 0x9ae   :  { %4944 = vmatpush3.bf16.msra.mxu1 %v6180_v1 }
 0x9af   :  { %4951 = vmatprep.subr.bf16.mxu1 %v5818_v36 }
 0xa7c   :  { %v1031_v26 = vpop.f32.mrb[2].mxu1 }
 0xa7d   :  { %v1035_v27 = vadd.f32 %v1031_v26, %v6219_v3  ;;  %v4562_v28 = vpop.f32.mrb[3].mxu1 }
 0xa7f   :  { %5445 = vtanh.f32 %v1035_v27  ;;  %v4199_v31 = vmul.f32 -1.442695, %v1035_v27 }
 0xa81   :  { %5447 = vpow2.f32 %v4199_v31 }
 0xa89   :  { %v5446_v29 = vpop.eup %5445 }
 0xa8a   :  { %1045 = vrot.lane.b32.xlu0 %v5446_v29, %s5821_s5 }
 0xa8b   :  { %v5448_v32 = vpop.eup %5447 }
 0xa8c   :  { %v1039_v33 = vadd.f32 1.0, %v5448_v32 }
 0xa8e   :  { %5449 = vrcp.f32 %v1039_v33 }
 0xa98   :  { %v5450_v34 = vpop.eup %5449 }
 0xa99   :  { %v1043_v39 = vmul.f32 %v5450_v34, %v948_v22 }
 0xafc   :  { %v1046_v35 = vpop.permute.xlu0 %1045 }
 0xafd   :  { %v1048_v37 = vmul.f32 %v5450_v34, %v1046_v35 }
 0xaff   :  { %1050 = vrot.lane.b32.xlu1 %v1048_v37, %s5822_s14 }
 0xb71   :  { %v1051_v41 = vpop.permute.xlu1 %1050 }
 0xb72   :  { %v1053_v42 = vadd.f32 %v1051_v41, %v1043_v39 }
 0xb74   :  { %5451 = vtanh.f32 %v1053_v42 }
 0xb7e   :  { %v5452_v3 = vpop.eup %5451 }
 0xb7f   :  { %1056 = vrot.lane.b32.xlu0 %v5452_v3, %s5821_s5 }
 0xbf1   :  { %v1057_v43 = vpop.permute.xlu0 %1056 }
 0xbf2   :  { %v1059_v44 = vmul.f32 %v5450_v34, %v1057_v43 }
 0xbf4   :  { %1061 = vrot.lane.b32.xlu1 %v1059_v44, %s5822_s14 }
 0xc66   :  { %v1062_v45 = vpop.permute.xlu1 %1061 }
 0xc67   :  { %1065 = vst.msk [vmem:[#allocation2 + $0x18] sm:$0xff] %vm647_vm11, %v1062_v45  ;;  %4572 = vmatmul.mubr.msk.f32.vlgmr.msra.gmra.mrb[16].mxu0 %vm647_vm11, %v1062_v45 }
 0xc68   :  { %4947 = vmatpush3.bf16.msra.mxu0 %v6166_v48  ;;  %4593 = vmatprep.mubr.msk.f32.mxu0 %vm5819_vm1, %v5820_v38 }
 0xc69   :  { %4948 = vmatprep.subr.bf16.mxu0 %v5818_v36 }
 0xc6c   :  { %4950 = vmatpush3.bf16.msra.mxu0 %v6180_v1 }
 0xd3a   :  { %v1136_v46 = vpop.f32.mrb[16].mxu0 }
 0xd3b   :  { %v1140_v47 = vadd.f32 %v1136_v46, %v6227_v14  ;;  %v4573_v49 = vpop.f32.mrb[17].mxu0 }
 0xd3d   :  { %5453 = vtanh.f32 %v1140_v47  ;;  %v4201_v0 = vmul.f32 -1.442695, %v1140_v47 }
 0xd3f   :  { %5455 = vpow2.f32 %v4201_v0 }
 0xd47   :  { %v5454_v58 = vpop.eup %5453 }
 0xd48   :  { %1150 = vrot.lane.b32.xlu0 %v5454_v58, %s5821_s5 }
 0xd49   :  { %v5456_v2 = vpop.eup %5455 }
 0xd4a   :  { %v1144_v5 = vadd.f32 1.0, %v5456_v2 }
 0xd4c   :  { %5457 = vrcp.f32 %v1144_v5 }
 0xd56   :  { %v5458_v8 = vpop.eup %5457 }
 0xd57   :  { %v1148_v13 = vmul.f32 %v5458_v8, %v1053_v42 }
 0xdba   :  { %v1151_v9 = vpop.permute.xlu0 %1150 }
 0xdbb   :  { %v1153_v12 = vmul.f32 %v5458_v8, %v1151_v9 }
 0xdbd   :  { %1155 = vrot.lane.b32.xlu1 %v1153_v12, %s5822_s14 }
 0xe2f   :  { %v1156_v40 = vpop.permute.xlu1 %1155 }
 0xe30   :  { %v1158_v59 = vadd.f32 %v1156_v40, %v1148_v13 }
 0xe32   :  { %5459 = vtanh.f32 %v1158_v59 }
 0xe3c   :  { %v5460_v14 = vpop.eup %5459 }
 0xe3d   :  { %1161 = vrot.lane.b32.xlu0 %v5460_v14, %s5821_s5 }
 0xeaf   :  { %v1162_v60 = vpop.permute.xlu0 %1161 }
 0xeb0   :  { %v1164_v61 = vmul.f32 %v5458_v8, %v1162_v60  ;;  %v1488_v60 = vld [vmem:[#allocation2 + $0x10] sm:$0xff] }
 0xeb2   :  { %1166 = vrot.lane.b32.xlu1 %v1164_v61, %s5822_s14  ;;  %v1500_v61 = vsel %vm647_vm11, %v1488_v60, 0.0 }
 0xf24   :  { %v1167_v62 = vpop.permute.xlu1 %1166 }
 0xf25   :  { %1170 = vst.msk [vmem:[#allocation2 + $0x20] sm:$0xff] %vm647_vm11, %v1167_v62  ;;  %4583 = vmatmul.mubr.msk.f32.vlgmr.msra.gmra.mrb[4].mxu1 %vm647_vm11, %v1167_v62  ;;  %v6317_v62 = vld [vmem:[#allocation2 + $0x18] sm:$0xff] }
 0xf26   :  { %4953 = vmatpush3.bf16.msra.mxu1 %v6166_v48  ;;  %4604 = vmatprep.mubr.msk.f32.mxu1 %vm5819_vm1, %v5820_v38 }
 0xf27   :  { %4954 = vmatprep.subr.bf16.mxu1 %v5818_v36 }
 0xf2a   :  { %4956 = vmatpush3.bf16.msra.mxu1 %v6180_v1 }
 0xff8   :  { %v1241_v63 = vpop.f32.mrb[4].mxu1 }
 0xff9   :  { %v1245_v4 = vadd.f32 %v1241_v63, %v6225_v10  ;;  %v4584_v7 = vpop.f32.mrb[5].mxu1  ;;  %v1503_v63 = vsel %vm647_vm11, %v6317_v62, 0.0 }
 0xffb   :  { %5461 = vtanh.f32 %v1245_v4  ;;  %v4203_v15 = vmul.f32 -1.442695, %v1245_v4  ;;  %v1490_v4 = vld [vmem:[#allocation2 + $0x20] sm:$0xff] }
 0xffc   :  { %v1506_v7 = vsel %vm647_vm11, %v1490_v4, 0.0 }
 0xffd   :  { %5463 = vpow2.f32 %v4203_v15 }
0x1005   :  { %v5462_v11 = vpop.eup %5461 }
0x1006   :  { %1255 = vrot.lane.b32.xlu0 %v5462_v11, %s5821_s5 }
0x1007   :  { %v5464_v17 = vpop.eup %5463 }
0x1008   :  { %v1249_v19 = vadd.f32 1.0, %v5464_v17 }
0x100a   :  { %5465 = vrcp.f32 %v1249_v19 }
0x1014   :  { %v5466_v48 = vpop.eup %5465 }
0x1015   :  { %v1253_v22 = vmul.f32 %v5466_v48, %v1158_v59  ;;  %v1486_v59 = vld [vmem:[#allocation2] sm:$0xff] }
0x1016   :  { %v1494_v14 = vsel %vm647_vm11, %v1486_v59, 0.0 }
0x1078   :  { %v1256_v20 = vpop.permute.xlu0 %1255 }
0x1079   :  { %v1258_v21 = vmul.f32 %v5466_v48, %v1256_v20 }
0x107b   :  { %1260 = vrot.lane.b32.xlu1 %v1258_v21, %s5822_s14 }
0x10ed   :  { %v1261_v1 = vpop.permute.xlu1 %1260 }
0x10ee   :  { %v1263_v6 = vadd.f32 %v1261_v1, %v1253_v22 }
0x10f0   :  { %5467 = vtanh.f32 %v1263_v6 }
0x10fa   :  { %v5468_v10 = vpop.eup %5467 }
0x10fb   :  { %1266 = vrot.lane.b32.xlu0 %v5468_v10, %s5821_s5 }
0x116d   :  { %v1267_v23 = vpop.permute.xlu0 %1266 }
0x116e   :  { %v1269_v24 = vmul.f32 %v5466_v48, %v1267_v23  ;;  %v1487_v48 = vld [vmem:[#allocation2 + $0x8] sm:$0xff] }
0x116f   :  { %v1497_v20 = vsel %vm647_vm11, %v1487_v48, 0.0 }
0x1170   :  { %1271 = vrot.lane.b32.xlu1 %v1269_v24, %s5822_s14 }
0x11e2   :  { %v1272_v25 = vpop.permute.xlu1 %1271 }
0x11e3   :  { %1275 = vst.msk [vmem:[#allocation2 + $0x28] sm:$0xff] %vm647_vm11, %v1272_v25  ;;  %4594 = vmatmul.mubr.msk.f32.vlgmr.msra.gmra.mrb[18].mxu0 %vm647_vm11, %v1272_v25 }
0x11e4   :  { %1782 = vmatprep.mubr.f32.mxu0 %v5820_v38 }
0x11ea   :  { %v1491_v21 = vld [vmem:[#allocation2 + $0x28] sm:$0xff] }
0x11eb   :  { %v1509_v22 = vsel %vm647_vm11, %v1491_v21, 0.0 }
0x12b6   :  { %v1346_v26 = vpop.f32.mrb[18].mxu0 }
0x12b7   :  { %v1350_v27 = vadd.f32 %v1346_v26, %v6231_v18  ;;  %v4595_v28 = vpop.f32.mrb[19].mxu0 }
0x12b9   :  { %5469 = vtanh.f32 %v1350_v27  ;;  %v4205_v31 = vmul.f32 -1.442695, %v1350_v27 }
0x12bb   :  { %5471 = vpow2.f32 %v4205_v31 }
0x12c3   :  { %v5470_v29 = vpop.eup %5469 }
0x12c4   :  { %1360 = vrot.lane.b32.xlu0 %v5470_v29, %s5821_s5 }
0x12c5   :  { %v5472_v32 = vpop.eup %5471 }
0x12c6   :  { %v1354_v33 = vadd.f32 1.0, %v5472_v32 }
0x12c8   :  { %5473 = vrcp.f32 %v1354_v33 }
0x12d2   :  { %v5474_v34 = vpop.eup %5473 }
0x12d3   :  { %v1358_v39 = vmul.f32 %v5474_v34, %v1263_v6 }
0x1336   :  { %v1361_v35 = vpop.permute.xlu0 %1360 }
0x1337   :  { %v1363_v37 = vmul.f32 %v5474_v34, %v1361_v35 }
0x1339   :  { %1365 = vrot.lane.b32.xlu1 %v1363_v37, %s5822_s14 }
0x13ab   :  { %v1366_v41 = vpop.permute.xlu1 %1365 }
0x13ac   :  { %v1368_v42 = vadd.f32 %v1366_v41, %v1358_v39 }
0x13ae   :  { %5475 = vtanh.f32 %v1368_v42 }
0x13b8   :  { %v5476_v18 = vpop.eup %5475 }
0x13b9   :  { %1371 = vrot.lane.b32.xlu0 %v5476_v18, %s5821_s5 }
0x142b   :  { %v1372_v3 = vpop.permute.xlu0 %1371 }
0x142c   :  { %v1374_v43 = vmul.f32 %v5474_v34, %v1372_v3 }
0x142e   :  { %1376 = vrot.lane.b32.xlu1 %v1374_v43, %s5822_s14  ;;  %v1630_v43 = vld [vmem:[%s7163_s15 + $0x8] sm:$0xff] }
0x14a0   :  { %v1377_v44 = vpop.permute.xlu1 %1376 }
0x14a1   :  { %1380 = vst.msk [vmem:[#allocation2 + $0x30] sm:$0xff] %vm647_vm11, %v1377_v44  ;;  %4605 = vmatmul.mubr.msk.f32.vlgmr.msra.gmra.mrb[6].mxu1 %vm647_vm11, %v1377_v44  ;;  %v1633_v44 = vld [vmem:[%s7163_s15 + $0x20] sm:$0xff] }
0x14a8   :  { %v1492_v11 = vld [vmem:[#allocation2 + $0x30] sm:$0xff] }
0x14a9   :  { %v1512_v15 = vsel %vm647_vm11, %v1492_v11, 0.0 }
0x1574   :  { %v1451_v45 = vpop.f32.mrb[6].mxu1 }
0x1575   :  { %v1455_v46 = vadd.f32 %v1451_v45, %v6229_v16  ;;  %v4606_v47 = vpop.f32.mrb[7].mxu1  ;;  %v1629_v45 = vld [vmem:[%s7163_s15] sm:$0xff] }
0x1576   :  { %v1632_v47 = vld [vmem:[%s7163_s15 + $0x18] sm:$0xff] }
0x1577   :  { %5477 = vtanh.f32 %v1455_v46  ;;  %v4207_v58 = vmul.f32 -1.442695, %v1455_v46  ;;  %v4957_v46 = vpack.c.bf16 %v1633_v44, %v1630_v43  ;;  %v1651_v43 = vld [vmem:[#allocation13 + $0x50] sm:$0xff] }
0x1579   :  { %5479 = vpow2.f32 %v4207_v58  ;;  %4958 = vmatprep.subr.bf16.mxu0 %v4957_v46  ;;  %v1636_v58 = vld [vmem:[%s7163_s15 + $0x38] sm:$0xff] }
0x1581   :  { %v5478_v49 = vpop.eup %5477 }
0x1582   :  { %1465 = vrot.lane.b32.xlu0 %v5478_v49, %s5821_s5  ;;  %v4959_v49 = vpack.c.bf16 %v1632_v47, %v1629_v45 }
0x1583   :  { %v5480_v0 = vpop.eup %5479 }
0x1584   :  { %v1459_v2 = vadd.f32 1.0, %v5480_v0  ;;  %4960 = vmatpush1.bf16.msra.mxu0 %v4959_v49  ;;  %v1639_v0 = vld [vmem:[%s7163_s15 + $0x50] sm:$0xff] }
0x1586   :  { %5481 = vrcp.f32 %v1459_v2  ;;  %v1635_v2 = vld [vmem:[%s7163_s15 + $0x30] sm:$0xff] }
0x1590   :  { %v5482_v5 = vpop.eup %5481 }
0x1591   :  { %v1463_v12 = vmul.f32 %v5482_v5, %v1368_v42 }
0x15f4   :  { %v1466_v8 = vpop.permute.xlu0 %1465 }
0x15f5   :  { %v1468_v9 = vmul.f32 %v5482_v5, %v1466_v8  ;;  %v1638_v8 = vld [vmem:[%s7163_s15 + $0x48] sm:$0xff] }
0x15f7   :  { %1470 = vrot.lane.b32.xlu1 %v1468_v9, %s5822_s14  ;;  %v4963_v9 = vpack.c.bf16 %v1638_v8, %v1635_v2  ;;  %v1647_v2 = vld [vmem:[#allocation13 + $0x30] sm:$0xff] }
0x1669   :  { %v1471_v13 = vpop.permute.xlu1 %1470 }
0x166a   :  { %v1473_v40 = vadd.f32 %v1471_v13, %v1463_v12 }
0x166c   :  { %5483 = vtanh.f32 %v1473_v40 }
0x1676   :  { %v5484_v16 = vpop.eup %5483 }
0x1677   :  { %1476 = vrot.lane.b32.xlu0 %v5484_v16, %s5821_s5 }
0x1696   :  { %1495 = vadd.xlane.f32.xlu0 %v1494_v14 }
0x169a   :  { %1501 = vadd.xlane.f32.xlu0 %v1500_v61 }
0x169e   :  { %1504 = vadd.xlane.f32.xlu0 %v1503_v63 }
0x16a2   :  { %1507 = vadd.xlane.f32.xlu0 %v1506_v7 }
0x16a6   :  { %1513 = vadd.xlane.f32.xlu0 %v1512_v15 }
0x16e9   :  { %v1477_v17 = vpop.permute.xlu0 %1476 }
0x16ea   :  { %v1479_v19 = vmul.f32 %v5482_v5, %v1477_v17  ;;  %v4961_v5 = vpack.c.bf16 %v1639_v0, %v1636_v58 }
0x16ec   :  { %1481 = vrot.lane.b32.xlu1 %v1479_v19, %s5822_s14  ;;  %4962 = vmatprep.subr.bf16.mxu0 %v4961_v5  ;;  %v1650_v5 = vld [vmem:[#allocation13 + $0x48] sm:$0xff] }
0x16ed   :  { %4964 = vmatpush1.bf16.msra.mxu0 %v4963_v9  ;;  %v6428_v8 = vpack.c.bf16 %v1650_v5, %v1647_v2  ;;  %v1654_v9 = vld [vmem:[#allocation13 + $0x68] sm:$0xff] }
0x1710   :  { %1498 = vadd.xlane.f32.xlu1 %v1497_v20 }
0x1714   :  { %1510 = vadd.xlane.f32.xlu1 %v1509_v22 }
0x1723   :  { %v1496_v1 = vpop.xlane.xlu0 %1495 }
0x1724   :  { %v1519_v6 = vmul.f32 0.03125, %v1496_v1 }
0x1726   :  { %v6326_v10 = vsub.f32 %v1486_v59, %v1519_v6  ;;  %v1634_v6 = vld [vmem:[%s7163_s15 + $0x28] sm:$0xff] }
0x1727   :  { %v1502_v23 = vpop.xlane.xlu0 %1501 }
0x1728   :  { %v1521_v24 = vmul.f32 0.03125, %v1502_v23  ;;  %v1535_v25 = vmul.f32 %v6326_v10, %v6326_v10  ;;  %v1637_v23 = vld [vmem:[%s7163_s15 + $0x40] sm:$0xff] }
0x172a   :  { %v6330_v26 = vsub.f32 %v1488_v60, %v1521_v24  ;;  %v1543_v27 = vsel %vm647_vm11, %v1535_v25, 0.0  ;;  %v1640_v25 = vld [vmem:[%s7163_s15 + $0x58] sm:$0xff] }
0x172b   :  { %1544 = vadd.xlane.f32.xlu0 %v1543_v27  ;;  %v1505_v28 = vpop.xlane.xlu0 %1504  ;;  %v4969_v27 = vpack.c.bf16 %v1640_v25, %v1637_v23  ;;  %v1674_v25 = vld [vmem:[#allocation13 + $0x108] sm:$0xff] }
0x172c   :  { %v1537_v29 = vmul.f32 %v6330_v26, %v6330_v26  ;;  %v1522_v16 = vmul.f32 0.03125, %v1505_v28 }
0x172e   :  { %v1549_v31 = vsel %vm647_vm11, %v1537_v29, 0.0  ;;  %v6373_v60 = vsub.f32 %v6317_v62, %v1522_v16  ;;  %v6400_v29 = vld [vmem:[#allocation11] ss:$0 sm:$0xff]  ;;  %v1653_v16 = vld [vmem:[#allocation13 + $0x60] sm:$0xff] }
0x172f   :  { %1550 = vadd.xlane.f32.xlu0 %v1549_v31  ;;  %v1508_v32 = vpop.xlane.xlu0 %1507 }
0x1730   :  { %v1523_v33 = vmul.f32 0.03125, %v1508_v32  ;;  %v1538_v17 = vmul.f32 %v6373_v60, %v6373_v60  ;;  %v6407_v32 = vld [vmem:[%s7156_s8] ss:$0 sm:$0xff] }
0x1732   :  { %v6336_v34 = vsub.f32 %v1490_v4, %v1523_v33  ;;  %v1552_v19 = vsel %vm647_vm11, %v1538_v17, 0.0  ;;  %v1666_v17 = vld [vmem:[#allocation13 + $0xc8] sm:$0xff] }
0x1733   :  { %v1514_v35 = vpop.xlane.xlu0 %1513 }
0x1734   :  { %v1525_v37 = vmul.f32 0.03125, %v1514_v35  ;;  %v1539_v39 = vmul.f32 %v6336_v34, %v6336_v34 }
0x1736   :  { %v6340_v41 = vsub.f32 %v1492_v11, %v1525_v37  ;;  %v1555_v42 = vsel %vm647_vm11, %v1539_v39, 0.0  ;;  %v1642_v37 = vld [vmem:[#allocation13 + $0x8] sm:$0xff]  ;;  %v1645_v39 = vld [vmem:[#allocation13 + $0x20] sm:$0xff] }
0x1737   :  { %1556 = vadd.xlane.f32.xlu0 %v1555_v42  ;;  %v6414_v42 = vpack.c.bf16 %v1645_v39, %v1642_v37 }
0x1738   :  { %v1541_v18 = vmul.f32 %v6340_v41, %v6340_v41 }
0x1739   :  { %4974 = vmatprep.subr.bf16.mxu0 %v6414_v42 }
0x173a   :  { %v1561_v3 = vsel %vm647_vm11, %v1541_v18, 0.0  ;;  %v1644_v18 = vld [vmem:[#allocation13 + $0x18] sm:$0xff] }
0x173b   :  { %1562 = vadd.xlane.f32.xlu0 %v1561_v3  ;;  %v1648_v3 = vld [vmem:[#allocation13 + $0x38] sm:$0xff] }
0x173c   :  { %v6418_v45 = vpack.c.bf16 %v1651_v43, %v1648_v3 }
0x175e   :  { %v1482_v12 = vpop.permute.xlu1 %1481 }
0x175f   :  { %1485 = vst.msk [vmem:[#allocation2 + $0x38] sm:$0xff] %vm647_vm11, %v1482_v12  ;;  %v1657_v12 = vld [vmem:[#allocation13 + $0x80] sm:$0xff] }
0x1766   :  { %v1493_v13 = vld [vmem:[#allocation2 + $0x38] sm:$0xff] }
0x1767   :  { %v1515_v40 = vsel %vm647_vm11, %v1493_v13, 0.0 }
0x1768   :  { %1516 = vadd.xlane.f32.xlu1 %v1515_v40  ;;  %v6430_v40 = vpack.c.bf16 %v1657_v12, %v1654_v9 }
0x179d   :  { %v1499_v59 = vpop.xlane.xlu1 %1498 }
0x179e   :  { %v1520_v14 = vmul.f32 0.03125, %v1499_v59  ;;  %v1656_v59 = vld [vmem:[#allocation13 + $0x78] sm:$0xff] }
0x17a0   :  { %v6375_v61 = vsub.f32 %v1487_v48, %v1520_v14  ;;  %v1660_v14 = vld [vmem:[#allocation13 + $0x98] sm:$0xff] }
0x17a1   :  { %v1511_v63 = vpop.xlane.xlu1 %1510 }
0x17a2   :  { %v1524_v4 = vmul.f32 0.03125, %v1511_v63  ;;  %v1536_v7 = vmul.f32 %v6375_v61, %v6375_v61  ;;  %v1663_v63 = vld [vmem:[#allocation13 + $0xb0] sm:$0xff] }
0x17a4   :  { %v6379_v11 = vsub.f32 %v1491_v21, %v1524_v4  ;;  %v1546_v15 = vsel %vm647_vm11, %v1536_v7, 0.0  ;;  %v1631_v21 = vld [vmem:[%s7163_s15 + $0x10] sm:$0xff]  ;;  %v6436_v4 = vpack.c.bf16 %v1663_v63, %v1660_v14  ;;  %v1659_v7 = vld [vmem:[#allocation13 + $0x90] sm:$0xff] }
0x17a5   :  { %1547 = vadd.xlane.f32.xlu1 %v1546_v15  ;;  %v4965_v24 = vpack.c.bf16 %v1634_v6, %v1631_v21  ;;  %v1662_v15 = vld [vmem:[#allocation13 + $0xa8] sm:$0xff]  ;;  %v1675_v21 = vld [vmem:[#allocation13 + $0x110] sm:$0xff] }
0x17a6   :  { %v1540_v62 = vmul.f32 %v6379_v11, %v6379_v11 }
0x17a7   :  { %4966 = vmatprep.subr.bf16.mxu1 %v4965_v24 }
0x17a8   :  { %v1558_v48 = vsel %vm647_vm11, %v1540_v62, 0.0  ;;  %4968 = vmatpush3.bf16.msra.mxu1 %v4965_v24  ;;  %v6439_v62 = vpack.c.bf16 %v1662_v15, %v1659_v7  ;;  %v1671_v24 = vld [vmem:[#allocation13 + $0xf0] sm:$0xff] }
0x17a9   :  { %1553 = vadd.xlane.f32.xlu1 %v1552_v19  ;;  %4970 = vmatprep.subr.bf16.mxu1 %v4969_v27  ;;  %v1669_v19 = vld [vmem:[#allocation13 + $0xe0] sm:$0xff] }
0x17ac   :  { %4972 = vmatpush3.bf16.msra.mxu1 %v4969_v27  ;;  %v6451_v27 = vpack.c.bf16 %v1674_v25, %v1671_v24 }
0x17ad   :  { %1559 = vadd.xlane.f32.xlu1 %v1558_v48  ;;  %4997 = vmatprep.subr.bf16.mxu1 %v5818_v36  ;;  %v6442_v48 = vpack.c.bf16 %v1669_v19, %v1666_v17  ;;  %v1643_v19 = vld [vmem:[#allocation13 + $0x10] sm:$0xff] }
0x17b8   :  { %v1545_v20 = vpop.xlane.xlu0 %1544 }
0x17b9   :  { %v1567_v22 = vmul.f32 0.03125, %v1545_v20  ;;  %v1665_v20 = vld [vmem:[#allocation13 + $0xc0] sm:$0xff] }
0x17bb   :  { %v1575_v1 = vadd.f32 1e-05, %v1567_v22  ;;  %v1668_v22 = vld [vmem:[#allocation13 + $0xd8] sm:$0xff] }
0x17bc   :  { %v6445_v6 = vpack.c.bf16 %v1668_v22, %v1665_v20  ;;  %v1646_v20 = vld [vmem:[#allocation13 + $0x28] sm:$0xff] }
0x17bd   :  { %5485 = vrsqrt.f32 %v1575_v1  ;;  %v1672_v1 = vld [vmem:[#allocation13 + $0xf8] sm:$0xff] }
0x17be   :  { %v6448_v23 = vpack.c.bf16 %v1675_v21, %v1672_v1 }
0x17c7   :  { %v5486_v28 = vpop.eup %5485 }
0x17c8   :  { %v1591_v31 = vmul.f32 %v5486_v28, %v6326_v10  ;;  %v1641_v10 = vld [vmem:[#allocation13] sm:$0xff]  ;;  %v1551_v28 = vpop.xlane.xlu0 %1550 }
0x17c9   :  { %v6416_v44 = vpack.c.bf16 %v1644_v18, %v1641_v10 }
0x17ca   :  { %v1606_v33 = vmul.f32 %v6400_v29, %v1591_v31 }
0x17cc   :  { %v1621_v35 = vadd.f32 %v6407_v32, %v1606_v33  ;;  %v1557_v31 = vpop.xlane.xlu0 %1556  ;;  %v1569_v33 = vmul.f32 0.03125, %v1551_v28  ;;  %v6463_v28 = vpack.c.bf16 %v1646_v20, %v1643_v19 }
0x17cd   :  { %v1571_v37 = vmul.f32 0.03125, %v1557_v31 }
0x17ce   :  { %4210 = vmatmul.mubr.msk.f32.vlgmr.msra.gmra.mrb[20].mxu0 %vm647_vm11, %v1621_v35  ;;  %4615 = vmatprep.mubr.msk.f32.mxu1 %vm647_vm11, %v1621_v35  ;;  %v1577_v35 = vadd.f32 1e-05, %v1569_v33  ;;  %v1649_v33 = vld [vmem:[#allocation13 + $0x40] sm:$0xff] }
0x17cf   :  { %1788 = vmatprep.mubr.f32.mxu0 %v5820_v38  ;;  %4976 = vmatpush1.bf16.msra.mxu0 %v6416_v44  ;;  %v1579_v10 = vadd.f32 1e-05, %v1571_v37 }
0x17d0   :  { %4978 = vmatprep.subr.bf16.mxu0 %v6418_v45  ;;  %v1563_v39 = vpop.xlane.xlu0 %1562  ;;  %5487 = vrsqrt.f32 %v1577_v35 }
0x17d1   :  { %v1573_v18 = vmul.f32 0.03125, %v1563_v39  ;;  %5489 = vrsqrt.f32 %v1579_v10 }
0x17d3   :  { %4980 = vmatpush1.bf16.msra.mxu0 %v6428_v8 }
0x17d4   :  { %4982 = vmatprep.subr.bf16.mxu0 %v6430_v40 }
0x17da   :  { %v5488_v12 = vpop.eup %5487 }
0x17db   :  { %v5490_v14 = vpop.eup %5489 }
0x17dc   :  { %v1595_v17 = vmul.f32 %v5490_v14, %v6336_v34  ;;  %v1652_v34 = vld [vmem:[#allocation13 + $0x58] sm:$0xff] }
0x17dd   :  { %v1676_v14 = vld [vmem:[#allocation13 + $0x118] sm:$0xff] }
0x17f5   :  { %v1517_v46 = vpop.xlane.xlu1 %1516 }
0x17f6   :  { %v1526_v47 = vmul.f32 0.03125, %v1517_v46 }
0x17f8   :  { %v6423_v49 = vsub.f32 %v1493_v13, %v1526_v47  ;;  %v6433_v13 = vpack.c.bf16 %v1656_v59, %v1653_v16  ;;  %v1581_v47 = vadd.f32 1e-05, %v1573_v18  ;;  %v1593_v59 = vmul.f32 %v5488_v12, %v6330_v26  ;;  %v1670_v12 = vld [vmem:[#allocation13 + $0xe8] sm:$0xff] }
0x17fa   :  { %v1542_v58 = vmul.f32 %v6423_v49, %v6423_v49  ;;  %4984 = vmatpush1.bf16.msra.mxu0 %v6433_v13  ;;  %v1608_v15 = vmul.f32 %v6400_v29, %v1593_v59  ;;  %v1673_v59 = vld [vmem:[#allocation13 + $0x100] sm:$0xff] }
0x17fb   :  { %4986 = vmatprep.subr.bf16.mxu0 %v6436_v4 }
0x17fc   :  { %v1564_v0 = vsel %vm647_vm11, %v1542_v58, 0.0  ;;  %v1623_v26 = vadd.f32 %v6407_v32, %v1608_v15 }
0x17fd   :  { %1565 = vadd.xlane.f32.xlu1 %v1564_v0 }
0x17fe   :  { %4988 = vmatpush1.bf16.msra.mxu0 %v6439_v62 }
0x17ff   :  { %4990 = vmatprep.subr.bf16.mxu0 %v6442_v48 }
0x1802   :  { %4992 = vmatpush1.bf16.msra.mxu0 %v6445_v6 }
0x1803   :  { %4994 = vmatprep.subr.bf16.mxu0 %v6448_v23 }
0x1806   :  { %4996 = vmatpush1.bf16.msra.mxu0 %v6451_v27 }
0x1807   :  { %5016 = vmatprep.subr.bf16.mxu0 %v6414_v42 }
0x1832   :  { %v1548_v3 = vpop.xlane.xlu1 %1547 }
0x1833   :  { %v1568_v43 = vmul.f32 0.03125, %v1548_v3  ;;  %v1655_v3 = vld [vmem:[#allocation13 + $0x70] sm:$0xff] }
0x1835   :  { %v1576_v46 = vadd.f32 1e-05, %v1568_v43  ;;  %v1658_v43 = vld [vmem:[#allocation13 + $0x88] sm:$0xff] }
0x1836   :  { %v1554_v58 = vpop.xlane.xlu1 %1553 }
0x1837   :  { %5491 = vrsqrt.f32 %v1576_v46  ;;  %v1570_v0 = vmul.f32 0.03125, %v1554_v58 }
0x1838   :  { %5493 = vrsqrt.f32 %v1581_v47  ;;  %v6488_v47 = vpack.c.bf16 %v1658_v43, %v1655_v3 }
0x1839   :  { %v1578_v2 = vadd.f32 1e-05, %v1570_v0  ;;  %v1661_v0 = vld [vmem:[#allocation13 + $0xa0] sm:$0xff] }
0x183a   :  { %v1560_v5 = vpop.xlane.xlu1 %1559 }
0x183b   :  { %5495 = vrsqrt.f32 %v1578_v2  ;;  %v1572_v9 = vmul.f32 0.03125, %v1560_v5  ;;  %v1664_v2 = vld [vmem:[#allocation13 + $0xb8] sm:$0xff] }
0x183c   :  { %v6497_v5 = vpack.c.bf16 %v1664_v2, %v1661_v0 }
0x183d   :  { %v1580_v16 = vadd.f32 1e-05, %v1572_v9  ;;  %v1667_v9 = vld [vmem:[#allocation13 + $0xd0] sm:$0xff] }
0x183f   :  { %5497 = vrsqrt.f32 %v1580_v16  ;;  %v6503_v16 = vpack.c.bf16 %v1670_v12, %v1667_v9 }
0x1841   :  { %v5492_v63 = vpop.eup %5491 }
0x1842   :  { %v1592_v7 = vmul.f32 %v5492_v63, %v6375_v61  ;;  %v5494_v22 = vpop.eup %5493  ;;  %v1610_v61 = vmul.f32 %v6400_v29, %v1595_v17  ;;  %v6509_v63 = vpack.c.bf16 %v1676_v14, %v1673_v59 }
0x1843   :  { %v1597_v31 = vmul.f32 %v5494_v22, %v6340_v41  ;;  %v6476_v41 = vpack.c.bf16 %v1652_v34, %v1649_v33  ;;  %v1677_v33 = vld [vmem:[%s7165_s17] sm:$0x7]  ;;  %s5823_s17 = smov 96  }
0x1844   :  { %v1607_v1 = vmul.f32 %v6400_v29, %v1592_v7  ;;  %v1625_v10 = vadd.f32 %v6407_v32, %v1610_v61 }
0x1845   :  { %v5496_v21 = vpop.eup %5495  ;;  %v1612_v18 = vmul.f32 %v6400_v29, %v1597_v31 }
0x1846   :  { %v1622_v24 = vadd.f32 %v6407_v32, %v1607_v1  ;;  %v1594_v25 = vmul.f32 %v5496_v21, %v6373_v60 }
0x1847   :  { %v1627_v58 = vadd.f32 %v6407_v32, %v1612_v18 }
0x1848   :  { %4211 = vmatmul.mubr.msk.f32.gmra.mrb[22].mxu0 %vm647_vm11, %v1622_v24  ;;  %4616 = vmatmul.mubr.msk.f32.vlgmr.msra.gmra.mrb[8].mxu1 %vm647_vm11, %v1622_v24  ;;  %v1609_v35 = vmul.f32 %v6400_v29, %v1594_v25 }
0x1849   :  { %v5498_v37 = vpop.eup %5497  ;;  %4618 = vmatprep.mubr.msk.f32.mxu1 %vm647_vm11, %v1623_v26  ;;  %1794 = vmatprep.mubr.f32.mxu0 %v5820_v38 }
0x184a   :  { %v1624_v60 = vadd.f32 %v6407_v32, %v1609_v35  ;;  %v1596_v39 = vmul.f32 %v5498_v37, %v6379_v11  ;;  %4999 = vmatpush3.bf16.msra.mxu1 %v6463_v28 }
0x184b   :  { %5000 = vmatprep.subr.bf16.mxu1 %v5818_v36 }
0x184c   :  { %4212 = vmatmul.mubr.msk.f32.gmra.mrb[24].mxu0 %vm647_vm11, %v1623_v26  ;;  %4619 = vmatmul.mubr.msk.f32.gmra.mrb[10].mxu1 %vm647_vm11, %v1624_v60  ;;  %v1611_v46 = vmul.f32 %v6400_v29, %v1596_v39  ;;  %v1679_v26 = vlaneseq }
0x184d   :  { %4621 = vmatprep.mubr.msk.f32.mxu1 %vm647_vm11, %v1625_v10  ;;  %1800 = vmatprep.mubr.f32.mxu0 %v5820_v38 }
0x184e   :  { %v1626_v11 = vadd.f32 %v6407_v32, %v1611_v46  ;;  %5002 = vmatpush3.bf16.msra.mxu1 %v6476_v41  ;;  %v1680_v61 = vshrl.u32 %v1679_v26, 7 }
0x184f   :  { %5003 = vmatprep.subr.bf16.mxu1 %v5818_v36 }
0x1850   :  { %4213 = vmatmul.mubr.msk.f32.gmra.mrb[26].mxu0 %vm647_vm11, %v1624_v60  ;;  %4622 = vmatmul.mubr.msk.f32.gmra.mrb[12].mxu1 %vm647_vm11, %v1626_v11  ;;  %v1689_v31 = vsub.s32 2, %v1680_v61  ;;  %v1685_v34 = vsub.s32 1, %v1680_v61  ;;  %v1681_v9 = vsub.s32 0, %v1680_v61 }
0x1851   :  { %4624 = vmatprep.mubr.msk.f32.mxu1 %vm647_vm11, %v1627_v58  ;;  %1806 = vmatprep.mubr.f32.mxu0 %v5820_v38 }
0x1852   :  { %5005 = vmatpush3.bf16.msra.mxu1 %v6488_v47  ;;  %v6566_v35 = vrot.slane %v1677_v33, %v1689_v31  ;;  %v6572_v39 = vrot.slane %v1677_v33, %v1685_v34  ;;  %v6578_v12 = vrot.slane %v1677_v33, %v1681_v9 }
0x1853   :  { %5006 = vmatprep.subr.bf16.mxu1 %v5818_v36 }
0x1854   :  { %4214 = vmatmul.mubr.msk.f32.gmra.mrb[28].mxu0 %vm647_vm11, %v1625_v10 }
0x1855   :  { %1812 = vmatprep.mubr.f32.mxu0 %v5820_v38 }
0x1856   :  { %5008 = vmatpush3.bf16.msra.mxu1 %v6497_v5 }
0x1857   :  { %5009 = vmatprep.subr.bf16.mxu1 %v5818_v36 }
0x1858   :  { %4215 = vmatmul.mubr.msk.f32.gmra.mrb[30].mxu0 %vm647_vm11, %v1626_v11 }
0x1859   :  { %1818 = vmatprep.mubr.f32.mxu0 %v5820_v38 }
0x185a   :  { %5011 = vmatpush3.bf16.msra.mxu1 %v6503_v16 }
0x185b   :  { %5012 = vmatprep.subr.bf16.mxu1 %v5818_v36 }
0x185c   :  { %4216 = vmatmul.mubr.msk.f32.gmra.mrb[32].mxu0 %vm647_vm11, %v1627_v58 }
0x185d   :  { %1824 = vmatprep.mubr.f32.mxu0 %v5820_v38 }
0x185e   :  { %5014 = vmatpush3.bf16.msra.mxu1 %v6509_v63 }
0x185f   :  { %5039 = vmatprep.subr.bf16.mxu1 %v5818_v36 }
0x188a   :  { %v1566_v7 = vpop.xlane.xlu1 %1565 }
0x188b   :  { %v1574_v15 = vmul.f32 0.03125, %v1566_v7 }
0x188d   :  { %v1582_v17 = vadd.f32 1e-05, %v1574_v15 }
0x188f   :  { %5499 = vrsqrt.f32 %v1582_v17 }
0x1899   :  { %v5500_v19 = vpop.eup %5499 }
0x189a   :  { %v1598_v20 = vmul.f32 %v5500_v19, %v6423_v49 }
0x189c   :  { %v1613_v22 = vmul.f32 %v6400_v29, %v1598_v20 }
0x189e   :  { %v1628_v1 = vadd.f32 %v6407_v32, %v1613_v22 }
0x18a0   :  { %4217 = vmatmul.mubr.msk.f32.gmra.mrb[34].mxu0 %vm647_vm11, %v1628_v1  ;;  %4625 = vmatmul.mubr.msk.f32.gmra.mrb[14].mxu1 %vm647_vm11, %v1628_v1 }
0x18a1   :  { %2033 = vmatprep.mubr.f32.mxu0 %v5820_v38  ;;  %4651 = vmatprep.mubr.msk.f32.mxu1 %vm5819_vm1, %v5820_v38 }
0x18a4   :  { %2034 = vmatmul.mubr.f32.vlgmr.msra.gmra.mrb[20].mxu0 %v5820_v38  ;;  %4652 = vmatmul.mubr.f32.vlgmr.msra.gmra.mrb[16].mxu1 %v5820_v38 }
0x18a5   :  { %5018 = vmatpush1.bf16.msra.mxu0 %v6416_v44  ;;  %5041 = vmatpush3.bf16.msra.mxu1 %v6463_v28 }
0x18a6   :  { %5020 = vmatprep.subr.bf16.mxu0 %v6418_v45  ;;  %5042 = vmatprep.subr.bf16.mxu1 %v5818_v36 }
0x18a7   :  { %2238 = vmatprep.mubr.f32.mxu0 %v5820_v38  ;;  %4678 = vmatprep.mubr.msk.f32.mxu1 %vm5819_vm1, %v5820_v38 }
0x18a9   :  { %5022 = vmatpush1.bf16.msra.mxu0 %v6428_v8  ;;  %5044 = vmatpush3.bf16.msra.mxu1 %v6476_v41 }
0x18aa   :  { %5024 = vmatprep.subr.bf16.mxu0 %v6430_v40  ;;  %5045 = vmatprep.subr.bf16.mxu1 %v5818_v36 }
0x18ad   :  { %5026 = vmatpush1.bf16.msra.mxu0 %v6433_v13  ;;  %5047 = vmatpush3.bf16.msra.mxu1 %v6488_v47 }
0x18ae   :  { %5028 = vmatprep.subr.bf16.mxu0 %v6436_v4  ;;  %5048 = vmatprep.subr.bf16.mxu1 %v5818_v36 }
0x18b1   :  { %5030 = vmatpush1.bf16.msra.mxu0 %v6439_v62  ;;  %5050 = vmatpush3.bf16.msra.mxu1 %v6497_v5 }
0x18b2   :  { %5032 = vmatprep.subr.bf16.mxu0 %v6442_v48  ;;  %5051 = vmatprep.subr.bf16.mxu1 %v5818_v36 }
0x18b5   :  { %5034 = vmatpush1.bf16.msra.mxu0 %v6445_v6  ;;  %5053 = vmatpush3.bf16.msra.mxu1 %v6503_v16 }
0x18b6   :  { %5036 = vmatprep.subr.bf16.mxu0 %v6448_v23  ;;  %5054 = vmatprep.subr.bf16.mxu1 %v5818_v36 }
0x18b9   :  { %5038 = vmatpush1.bf16.msra.mxu0 %v6451_v27  ;;  %5056 = vmatpush3.bf16.msra.mxu1 %v6509_v63 }
0x18ba   :  { %5058 = vmatprep.subr.bf16.mxu0 %v6414_v42  ;;  %5081 = vmatprep.subr.bf16.mxu1 %v5818_v36 }
0x191b   :  { %v6553_v29 = vpop.f32.mrb[8].mxu1 }
0x191c   :  { %v1897_v32 = vpop.f32.mrb[9].mxu1 }
0x191d   :  { %v1898_v10 = vadd.f32 %v1897_v32, %v6566_v35 }
0x191f   :  { %v6555_v49 = vpop.f32.mrb[10].mxu1 }
0x1920   :  { %v6557_v21 = vpop.f32.mrb[11].mxu1 }
0x1923   :  { %v6559_v24 = vpop.f32.mrb[12].mxu1 }
0x1924   :  { %v6561_v25 = vpop.f32.mrb[13].mxu1 }
0x1973   :  { %v6568_v37 = vpop.f32.mrb[14].mxu1 }
0x1974   :  { %v6570_v60 = vpop.f32.mrb[15].mxu1 }
0x1977   :  { %v2035_v18 = vpop.f32.mrb[20].mxu0  ;;  %v2106_v3 = vpop.f32.mrb[16].mxu1 }
0x1978   :  { %v2112_v43 = vadd.f32 %v2106_v3, %v1898_v10  ;;  %v2037_v46 = vpop.f32.mrb[21].mxu0  ;;  %v4653_v11 = vpop.f32.mrb[17].mxu1  ;;  %v5339_v59 = vadd.f32 %v2035_v18, %v6578_v12 }
0x1979   :  { %v5340_v58 = vadd.f32 %v2037_v46, %v6572_v39 }
0x197a   :  { %5501 = vtanh.f32 %v2112_v43  ;;  %v4226_v14 = vmul.f32 -1.442695, %v5339_v59 }
0x197b   :  { %5503 = vtanh.f32 %v5340_v58  ;;  %v4227_v32 = vmul.f32 -1.442695, %v5340_v58  ;;  %v4228_v58 = vmul.f32 -1.442695, %v2112_v43  ;;  %v1903_v43 = vadd.f32 %v6553_v29, %v6566_v35 }
0x197c   :  { %5505 = vpow2.f32 %v4226_v14 }
0x1984   :  { %v5502_v0 = vpop.eup %5501 }
0x1985   :  { %v5504_v2 = vpop.eup %5503  ;;  %2139 = vrot.lane.b32.xlu1 %v5502_v0, %s5821_s5 }
0x1986   :  { %2137 = vrot.lane.b32.xlu0 %v5504_v2, %s5821_s5  ;;  %v5506_v7 = vpop.eup %5505 }
0x1987   :  { %v2116_v15 = vadd.f32 1.0, %v5506_v7 }
0x1989   :  { %5507 = vrcp.f32 %v2116_v15 }
0x198a   :  { %5509 = vpow2.f32 %v4227_v32 }
0x1993   :  { %v5508_v20 = vpop.eup %5507 }
0x1994   :  { %v5510_v26 = vpop.eup %5509  ;;  %v2133_v33 = vmul.f32 0.0, %v5508_v20 }
0x1995   :  { %v2122_v61 = vadd.f32 1.0, %v5510_v26 }
0x1997   :  { %5511 = vrcp.f32 %v2122_v61 }
0x19a1   :  { %v5512_v31 = vpop.eup %5511 }
0x19a2   :  { %v2134_v34 = vmul.f32 0.0, %v5512_v31 }
0x19f7   :  { %v2140_v17 = vpop.permute.xlu1 %2139 }
0x19f8   :  { %v2138_v19 = vpop.permute.xlu0 %2137 }
0x19f9   :  { %v2141_v22 = vsel %vm376_vm10, %v2138_v19, %v2140_v17 }
0x19fa   :  { %v2143_v1 = vmul.f32 %v5508_v20, %v2141_v22 }
0x19fc   :  { %2145 = vrot.lane.b32.xlu1 %v2143_v1, %s5823_s17 }
0x1a6e   :  { %v2146_v10 = vpop.permute.xlu1 %2145 }
0x1a6f   :  { %v6583_v18 = vadd.f32 %v2146_v10, %v2133_v33  ;;  %v6585_v3 = vadd.f32 %v2146_v10, %v2134_v34 }
0x1a71   :  { %5513 = vtanh.f32 %v6583_v18 }
0x1a72   :  { %5515 = vtanh.f32 %v6585_v3 }
0x1a73   :  { %5517 = vpow2.f32 %v4228_v58 }
0x1a7b   :  { %v5514_v46 = vpop.eup %5513 }
0x1a7c   :  { %v5516_v11 = vpop.eup %5515  ;;  %2154 = vrot.lane.b32.xlu1 %v5514_v46, %s5821_s5 }
0x1a7d   :  { %2156 = vrot.lane.b32.xlu0 %v5516_v11, %s5821_s5  ;;  %v5518_v0 = vpop.eup %5517 }
0x1a7e   :  { %v2130_v2 = vadd.f32 1.0, %v5518_v0 }
0x1a80   :  { %5519 = vrcp.f32 %v2130_v2 }
0x1a8a   :  { %v5520_v14 = vpop.eup %5519 }
0x1aee   :  { %v2155_v9 = vpop.permute.xlu1 %2154 }
0x1aef   :  { %v2157_v59 = vpop.permute.xlu0 %2156 }
0x1af0   :  { %v2158_v7 = vsel %vm376_vm10, %v2155_v9, %v2157_v59 }
0x1af1   :  { %v2160_v15 = vmul.f32 %v5520_v14, %v2158_v7 }
0x1af3   :  { %2162 = vrot.lane.b32.xlu1 %v2160_v15, %s5823_s17 }
0x1b65   :  { %v2163_v17 = vpop.permute.xlu1 %2162 }
0x1b66   :  { %2165 = vst.msk [vmem:[#allocation3] sm:$0xff] %vm1966_vm12, %v2163_v17  ;;  %4229 = vmatmul.mubr.msk.f32.vlgmr.msra.gmra.mrb[22].mxu0 %vm1966_vm12, %v2163_v17  ;;  %4679 = vmatmul.mubr.msk.f32.vlgmr.msra.gmra.mrb[18].mxu1 %vm1966_vm12, %v2163_v17 }
0x1b67   :  { %5060 = vmatpush1.bf16.msra.mxu0 %v6416_v44  ;;  %5083 = vmatpush3.bf16.msra.mxu1 %v6463_v28 }
0x1b68   :  { %5062 = vmatprep.subr.bf16.mxu0 %v6418_v45  ;;  %5084 = vmatprep.subr.bf16.mxu1 %v5818_v36 }
0x1b69   :  { %2444 = vmatprep.mubr.f32.mxu0 %v5820_v38  ;;  %4705 = vmatprep.mubr.msk.f32.mxu1 %vm5819_vm1, %v5820_v38 }
0x1b6b   :  { %5064 = vmatpush1.bf16.msra.mxu0 %v6428_v8  ;;  %5086 = vmatpush3.bf16.msra.mxu1 %v6476_v41 }
0x1b6c   :  { %5066 = vmatprep.subr.bf16.mxu0 %v6430_v40  ;;  %5087 = vmatprep.subr.bf16.mxu1 %v5818_v36 }
0x1b6f   :  { %5068 = vmatpush1.bf16.msra.mxu0 %v6433_v13  ;;  %5089 = vmatpush3.bf16.msra.mxu1 %v6488_v47 }
0x1b70   :  { %5070 = vmatprep.subr.bf16.mxu0 %v6436_v4  ;;  %5090 = vmatprep.subr.bf16.mxu1 %v5818_v36 }
0x1b73   :  { %5072 = vmatpush1.bf16.msra.mxu0 %v6439_v62  ;;  %5092 = vmatpush3.bf16.msra.mxu1 %v6497_v5 }
0x1b74   :  { %5074 = vmatprep.subr.bf16.mxu0 %v6442_v48  ;;  %5093 = vmatprep.subr.bf16.mxu1 %v5818_v36 }
0x1b77   :  { %5076 = vmatpush1.bf16.msra.mxu0 %v6445_v6  ;;  %5095 = vmatpush3.bf16.msra.mxu1 %v6503_v16 }
0x1b78   :  { %5078 = vmatprep.subr.bf16.mxu0 %v6448_v23  ;;  %5096 = vmatprep.subr.bf16.mxu1 %v5818_v36 }
0x1b7b   :  { %5080 = vmatpush1.bf16.msra.mxu0 %v6451_v27  ;;  %5098 = vmatpush3.bf16.msra.mxu1 %v6509_v63 }
0x1b7c   :  { %5100 = vmatprep.subr.bf16.mxu0 %v6414_v42  ;;  %5123 = vmatprep.subr.bf16.mxu1 %v5818_v36 }
0x1c39   :  { %v2240_v19 = vpop.f32.mrb[22].mxu0  ;;  %v2311_v20 = vpop.f32.mrb[18].mxu1 }
0x1c3a   :  { %v2317_v22 = vadd.f32 %v2311_v20, %v1903_v43  ;;  %v2242_v1 = vpop.f32.mrb[23].mxu0  ;;  %v4680_v32 = vpop.f32.mrb[19].mxu1  ;;  %v5341_v33 = vadd.f32 %v2240_v19, %v6578_v12 }
0x1c3b   :  { %v5342_v26 = vadd.f32 %v2242_v1, %v6572_v39 }
0x1c3c   :  { %5521 = vtanh.f32 %v2317_v22  ;;  %v4231_v34 = vmul.f32 -1.442695, %v5341_v33 }
0x1c3d   :  { %5523 = vtanh.f32 %v5342_v26  ;;  %v4232_v9 = vmul.f32 -1.442695, %v5342_v26  ;;  %v4233_v26 = vmul.f32 -1.442695, %v2317_v22  ;;  %v1908_v22 = vadd.f32 %v6557_v21, %v6566_v35 }
0x1c3e   :  { %5525 = vpow2.f32 %v4231_v34 }
0x1c46   :  { %v5522_v61 = vpop.eup %5521 }
0x1c47   :  { %v5524_v31 = vpop.eup %5523  ;;  %2344 = vrot.lane.b32.xlu1 %v5522_v61, %s5821_s5 }
0x1c48   :  { %2342 = vrot.lane.b32.xlu0 %v5524_v31, %s5821_s5  ;;  %v5526_v29 = vpop.eup %5525 }
0x1c49   :  { %v2321_v10 = vadd.f32 1.0, %v5526_v29 }
0x1c4b   :  { %5527 = vrcp.f32 %v2321_v10 }
0x1c4c   :  { %5529 = vpow2.f32 %v4232_v9 }
0x1c55   :  { %v5528_v58 = vpop.eup %5527 }
0x1c56   :  { %v5530_v59 = vpop.eup %5529  ;;  %v2338_v15 = vmul.f32 %v5528_v58, %v6583_v18 }
0x1c57   :  { %v2327_v14 = vadd.f32 1.0, %v5530_v59 }
0x1c59   :  { %5531 = vrcp.f32 %v2327_v14 }
0x1c63   :  { %v5532_v7 = vpop.eup %5531 }
0x1c64   :  { %v2339_v17 = vmul.f32 %v5532_v7, %v6585_v3 }
0x1cb9   :  { %v2345_v46 = vpop.permute.xlu1 %2344 }
0x1cba   :  { %v2343_v11 = vpop.permute.xlu0 %2342 }
0x1cbb   :  { %v2346_v0 = vsel %vm376_vm10, %v2343_v11, %v2345_v46 }
0x1cbc   :  { %v2348_v2 = vmul.f32 %v5528_v58, %v2346_v0 }
0x1cbe   :  { %2350 = vrot.lane.b32.xlu0 %v2348_v2, %s5823_s17 }
0x1d30   :  { %v2351_v43 = vpop.permute.xlu0 %2350 }
0x1d31   :  { %v6633_v19 = vadd.f32 %v2351_v43, %v2338_v15  ;;  %v6635_v20 = vadd.f32 %v2351_v43, %v2339_v17 }
0x1d33   :  { %5533 = vtanh.f32 %v6633_v19 }
0x1d34   :  { %5535 = vtanh.f32 %v6635_v20 }
0x1d35   :  { %5537 = vpow2.f32 %v4233_v26 }
0x1d3d   :  { %v5534_v1 = vpop.eup %5533 }
0x1d3e   :  { %v5536_v32 = vpop.eup %5535  ;;  %2359 = vrot.lane.b32.xlu1 %v5534_v1, %s5821_s5 }
0x1d3f   :  { %2361 = vrot.lane.b32.xlu0 %v5536_v32, %s5821_s5  ;;  %v5538_v18 = vpop.eup %5537 }
0x1d40   :  { %v2335_v61 = vadd.f32 1.0, %v5538_v18 }
0x1d42   :  { %5539 = vrcp.f32 %v2335_v61 }
0x1d4c   :  { %v5540_v33 = vpop.eup %5539 }
0x1db0   :  { %v2360_v3 = vpop.permute.xlu1 %2359 }
0x1db1   :  { %v2362_v31 = vpop.permute.xlu0 %2361 }
0x1db2   :  { %v2363_v34 = vsel %vm376_vm10, %v2360_v3, %v2362_v31 }
0x1db3   :  { %v2365_v29 = vmul.f32 %v5540_v33, %v2363_v34 }
0x1db5   :  { %2367 = vrot.lane.b32.xlu1 %v2365_v29, %s5823_s17 }
0x1e27   :  { %v2368_v10 = vpop.permute.xlu1 %2367 }
0x1e28   :  { %2371 = vst.msk [vmem:[#allocation3 + $0x8] sm:$0xff] %vm1966_vm12, %v2368_v10  ;;  %4234 = vmatmul.mubr.msk.f32.vlgmr.msra.gmra.mrb[24].mxu0 %vm1966_vm12, %v2368_v10  ;;  %4706 = vmatmul.mubr.msk.f32.vlgmr.msra.gmra.mrb[20].mxu1 %vm1966_vm12, %v2368_v10 }
0x1e29   :  { %5102 = vmatpush1.bf16.msra.mxu0 %v6416_v44  ;;  %5125 = vmatpush3.bf16.msra.mxu1 %v6463_v28 }
0x1e2a   :  { %5104 = vmatprep.subr.bf16.mxu0 %v6418_v45  ;;  %5126 = vmatprep.subr.bf16.mxu1 %v5818_v36 }
0x1e2b   :  { %2650 = vmatprep.mubr.f32.mxu0 %v5820_v38  ;;  %4732 = vmatprep.mubr.msk.f32.mxu1 %vm5819_vm1, %v5820_v38 }
0x1e2d   :  { %5106 = vmatpush1.bf16.msra.mxu0 %v6428_v8  ;;  %5128 = vmatpush3.bf16.msra.mxu1 %v6476_v41 }
0x1e2e   :  { %5108 = vmatprep.subr.bf16.mxu0 %v6430_v40  ;;  %5129 = vmatprep.subr.bf16.mxu1 %v5818_v36 }
0x1e31   :  { %5110 = vmatpush1.bf16.msra.mxu0 %v6433_v13  ;;  %5131 = vmatpush3.bf16.msra.mxu1 %v6488_v47 }
0x1e32   :  { %5112 = vmatprep.subr.bf16.mxu0 %v6436_v4  ;;  %5132 = vmatprep.subr.bf16.mxu1 %v5818_v36 }
0x1e35   :  { %5114 = vmatpush1.bf16.msra.mxu0 %v6439_v62  ;;  %5134 = vmatpush3.bf16.msra.mxu1 %v6497_v5 }
0x1e36   :  { %5116 = vmatprep.subr.bf16.mxu0 %v6442_v48  ;;  %5135 = vmatprep.subr.bf16.mxu1 %v5818_v36 }
0x1e39   :  { %5118 = vmatpush1.bf16.msra.mxu0 %v6445_v6  ;;  %5137 = vmatpush3.bf16.msra.mxu1 %v6503_v16 }
0x1e3a   :  { %5120 = vmatprep.subr.bf16.mxu0 %v6448_v23  ;;  %5138 = vmatprep.subr.bf16.mxu1 %v5818_v36 }
0x1e3d   :  { %5122 = vmatpush1.bf16.msra.mxu0 %v6451_v27  ;;  %5140 = vmatpush3.bf16.msra.mxu1 %v6509_v63 }
0x1e3e   :  { %5142 = vmatprep.subr.bf16.mxu0 %v6414_v42  ;;  %5165 = vmatprep.subr.bf16.mxu1 %v5818_v36 }
0x1efb   :  { %v2446_v46 = vpop.f32.mrb[24].mxu0  ;;  %v2517_v11 = vpop.f32.mrb[20].mxu1 }
0x1efc   :  { %v2523_v58 = vadd.f32 %v2517_v11, %v1908_v22  ;;  %v2448_v0 = vpop.f32.mrb[25].mxu0  ;;  %v4707_v2 = vpop.f32.mrb[21].mxu1  ;;  %v5343_v7 = vadd.f32 %v2446_v46, %v6578_v12 }
0x1efd   :  { %v5344_v9 = vadd.f32 %v2448_v0, %v6572_v39 }
0x1efe   :  { %5541 = vtanh.f32 %v2523_v58  ;;  %v4236_v15 = vmul.f32 -1.442695, %v5343_v7  ;;  %v4238_v2 = vmul.f32 -1.442695, %v2523_v58  ;;  %v1913_v58 = vadd.f32 %v6555_v49, %v6566_v35 }
0x1eff   :  { %5543 = vtanh.f32 %v5344_v9  ;;  %v4237_v61 = vmul.f32 -1.442695, %v5344_v9 }
0x1f00   :  { %5545 = vpow2.f32 %v4236_v15 }
0x1f08   :  { %v5542_v59 = vpop.eup %5541 }
0x1f09   :  { %v5544_v14 = vpop.eup %5543  ;;  %2550 = vrot.lane.b32.xlu1 %v5542_v59, %s5821_s5 }
0x1f0a   :  { %2548 = vrot.lane.b32.xlu0 %v5544_v14, %s5821_s5  ;;  %v5546_v21 = vpop.eup %5545 }
0x1f0b   :  { %v2527_v17 = vadd.f32 1.0, %v5546_v21 }
0x1f0d   :  { %5547 = vrcp.f32 %v2527_v17 }
0x1f0e   :  { %5549 = vpow2.f32 %v4237_v61 }
0x1f17   :  { %v5548_v32 = vpop.eup %5547 }
0x1f18   :  { %v5550_v3 = vpop.eup %5549  ;;  %v2544_v34 = vmul.f32 %v5548_v32, %v6633_v19 }
0x1f19   :  { %v2533_v31 = vadd.f32 1.0, %v5550_v3 }
0x1f1b   :  { %5551 = vrcp.f32 %v2533_v31 }
0x1f25   :  { %v5552_v33 = vpop.eup %5551 }
0x1f26   :  { %v2545_v29 = vmul.f32 %v5552_v33, %v6635_v20 }
0x1f7b   :  { %v2551_v43 = vpop.permute.xlu1 %2550 }
0x1f7c   :  { %v2549_v1 = vpop.permute.xlu0 %2548 }
0x1f7d   :  { %v2552_v26 = vsel %vm376_vm10, %v2549_v1, %v2551_v43 }
0x1f7e   :  { %v2554_v18 = vmul.f32 %v5548_v32, %v2552_v26 }
0x1f80   :  { %2556 = vrot.lane.b32.xlu0 %v2554_v18, %s5823_s17 }
0x1ff2   :  { %v2557_v10 = vpop.permute.xlu0 %2556 }
0x1ff3   :  { %v6683_v22 = vadd.f32 %v2557_v10, %v2544_v34  ;;  %v6685_v46 = vadd.f32 %v2557_v10, %v2545_v29 }
0x1ff5   :  { %5553 = vtanh.f32 %v6683_v22 }
0x1ff6   :  { %5555 = vtanh.f32 %v6685_v46 }
0x1ff7   :  { %5557 = vpow2.f32 %v4238_v2 }
0x1fff   :  { %v5554_v11 = vpop.eup %5553 }
0x2000   :  { %v5556_v0 = vpop.eup %5555  ;;  %2565 = vrot.lane.b32.xlu1 %v5554_v11, %s5821_s5 }
0x2001   :  { %2567 = vrot.lane.b32.xlu0 %v5556_v0, %s5821_s5  ;;  %v5558_v19 = vpop.eup %5557 }
0x2002   :  { %v2541_v9 = vadd.f32 1.0, %v5558_v19 }
0x2004   :  { %5559 = vrcp.f32 %v2541_v9 }
0x200e   :  { %v5560_v14 = vpop.eup %5559 }
0x2072   :  { %v2566_v20 = vpop.permute.xlu1 %2565 }
0x2073   :  { %v2568_v59 = vpop.permute.xlu0 %2567 }
0x2074   :  { %v2569_v7 = vsel %vm376_vm10, %v2566_v20, %v2568_v59 }
0x2075   :  { %v2571_v15 = vmul.f32 %v5560_v14, %v2569_v7 }
0x2077   :  { %2573 = vrot.lane.b32.xlu1 %v2571_v15, %s5823_s17 }
0x20e9   :  { %v2574_v21 = vpop.permute.xlu1 %2573 }
0x20ea   :  { %2577 = vst.msk [vmem:[#allocation3 + $0x10] sm:$0xff] %vm1966_vm12, %v2574_v21  ;;  %4239 = vmatmul.mubr.msk.f32.vlgmr.msra.gmra.mrb[26].mxu0 %vm1966_vm12, %v2574_v21  ;;  %4733 = vmatmul.mubr.msk.f32.vlgmr.msra.gmra.mrb[22].mxu1 %vm1966_vm12, %v2574_v21 }
0x20eb   :  { %5144 = vmatpush1.bf16.msra.mxu0 %v6416_v44  ;;  %5167 = vmatpush3.bf16.msra.mxu1 %v6463_v28 }
0x20ec   :  { %5146 = vmatprep.subr.bf16.mxu0 %v6418_v45  ;;  %5168 = vmatprep.subr.bf16.mxu1 %v5818_v36 }
0x20ed   :  { %2856 = vmatprep.mubr.f32.mxu0 %v5820_v38  ;;  %4759 = vmatprep.mubr.msk.f32.mxu1 %vm5819_vm1, %v5820_v38 }
0x20ef   :  { %5148 = vmatpush1.bf16.msra.mxu0 %v6428_v8  ;;  %5170 = vmatpush3.bf16.msra.mxu1 %v6476_v41 }
0x20f0   :  { %5150 = vmatprep.subr.bf16.mxu0 %v6430_v40  ;;  %5171 = vmatprep.subr.bf16.mxu1 %v5818_v36 }
0x20f3   :  { %5152 = vmatpush1.bf16.msra.mxu0 %v6433_v13  ;;  %5173 = vmatpush3.bf16.msra.mxu1 %v6488_v47 }
0x20f4   :  { %5154 = vmatprep.subr.bf16.mxu0 %v6436_v4  ;;  %5174 = vmatprep.subr.bf16.mxu1 %v5818_v36 }
0x20f7   :  { %5156 = vmatpush1.bf16.msra.mxu0 %v6439_v62  ;;  %5176 = vmatpush3.bf16.msra.mxu1 %v6497_v5 }
0x20f8   :  { %5158 = vmatprep.subr.bf16.mxu0 %v6442_v48  ;;  %5177 = vmatprep.subr.bf16.mxu1 %v5818_v36 }
0x20fb   :  { %5160 = vmatpush1.bf16.msra.mxu0 %v6445_v6  ;;  %5179 = vmatpush3.bf16.msra.mxu1 %v6503_v16 }
0x20fc   :  { %5162 = vmatprep.subr.bf16.mxu0 %v6448_v23  ;;  %5180 = vmatprep.subr.bf16.mxu1 %v5818_v36 }
0x20ff   :  { %5164 = vmatpush1.bf16.msra.mxu0 %v6451_v27  ;;  %5182 = vmatpush3.bf16.msra.mxu1 %v6509_v63 }
0x2100   :  { %5184 = vmatprep.subr.bf16.mxu0 %v6414_v42  ;;  %5207 = vmatprep.subr.bf16.mxu1 %v5818_v36 }
0x21bd   :  { %v2652_v17 = vpop.f32.mrb[26].mxu0  ;;  %v2723_v43 = vpop.f32.mrb[22].mxu1 }
0x21be   :  { %v2729_v1 = vadd.f32 %v2723_v43, %v1913_v58  ;;  %v2654_v32 = vpop.f32.mrb[27].mxu0  ;;  %v4734_v26 = vpop.f32.mrb[23].mxu1  ;;  %v5345_v31 = vadd.f32 %v2652_v17, %v6578_v12 }
0x21bf   :  { %v5346_v18 = vadd.f32 %v2654_v32, %v6572_v39 }
0x21c0   :  { %5561 = vtanh.f32 %v2729_v1  ;;  %v4241_v33 = vmul.f32 -1.442695, %v5345_v31  ;;  %v4243_v32 = vmul.f32 -1.442695, %v2729_v1  ;;  %v1918_v1 = vadd.f32 %v6561_v25, %v6566_v35 }
0x21c1   :  { %5563 = vtanh.f32 %v5346_v18  ;;  %v4242_v19 = vmul.f32 -1.442695, %v5346_v18 }
0x21c2   :  { %5565 = vpow2.f32 %v4241_v33 }
0x21ca   :  { %v5562_v61 = vpop.eup %5561 }
0x21cb   :  { %v5564_v3 = vpop.eup %5563  ;;  %2756 = vrot.lane.b32.xlu1 %v5562_v61, %s5821_s5 }
0x21cc   :  { %2754 = vrot.lane.b32.xlu0 %v5564_v3, %s5821_s5  ;;  %v5566_v49 = vpop.eup %5565 }
0x21cd   :  { %v2733_v34 = vadd.f32 1.0, %v5566_v49 }
0x21cf   :  { %5567 = vrcp.f32 %v2733_v34 }
0x21d0   :  { %5569 = vpow2.f32 %v4242_v19 }
0x21d9   :  { %v5568_v11 = vpop.eup %5567 }
0x21da   :  { %v5570_v9 = vpop.eup %5569  ;;  %v2750_v14 = vmul.f32 %v5568_v11, %v6683_v22 }
0x21db   :  { %v2739_v20 = vadd.f32 1.0, %v5570_v9 }
0x21dd   :  { %5571 = vrcp.f32 %v2739_v20 }
0x21e7   :  { %v5572_v59 = vpop.eup %5571 }
0x21e8   :  { %v2751_v7 = vmul.f32 %v5572_v59, %v6685_v46 }
0x223d   :  { %v2757_v29 = vpop.permute.xlu1 %2756 }
0x223e   :  { %v2755_v10 = vpop.permute.xlu0 %2754 }
0x223f   :  { %v2758_v0 = vsel %vm376_vm10, %v2755_v10, %v2757_v29 }
0x2240   :  { %v2760_v2 = vmul.f32 %v5568_v11, %v2758_v0 }
0x2242   :  { %2762 = vrot.lane.b32.xlu0 %v2760_v2, %s5823_s17 }
0x22b4   :  { %v2763_v15 = vpop.permute.xlu0 %2762 }
0x22b5   :  { %v6733_v21 = vadd.f32 %v2763_v15, %v2750_v14  ;;  %v6735_v58 = vadd.f32 %v2763_v15, %v2751_v7 }
0x22b7   :  { %5573 = vtanh.f32 %v6733_v21 }
0x22b8   :  { %5575 = vtanh.f32 %v6735_v58 }
0x22b9   :  { %5577 = vpow2.f32 %v4243_v32 }
0x22c1   :  { %v5574_v17 = vpop.eup %5573 }
0x22c2   :  { %v5576_v43 = vpop.eup %5575  ;;  %2771 = vrot.lane.b32.xlu1 %v5574_v17, %s5821_s5 }
0x22c3   :  { %2773 = vrot.lane.b32.xlu0 %v5576_v43, %s5821_s5  ;;  %v5578_v22 = vpop.eup %5577 }
0x22c4   :  { %v2747_v26 = vadd.f32 1.0, %v5578_v22 }
0x22c6   :  { %5579 = vrcp.f32 %v2747_v26 }
0x22d0   :  { %v5580_v61 = vpop.eup %5579 }
0x2334   :  { %v2772_v46 = vpop.permute.xlu1 %2771 }
0x2335   :  { %v2774_v18 = vpop.permute.xlu0 %2773 }
0x2336   :  { %v2775_v3 = vsel %vm376_vm10, %v2772_v46, %v2774_v18 }
0x2337   :  { %v2777_v31 = vmul.f32 %v5580_v61, %v2775_v3 }
0x2339   :  { %2779 = vrot.lane.b32.xlu1 %v2777_v31, %s5823_s17 }
0x23ab   :  { %v2780_v33 = vpop.permute.xlu1 %2779 }
0x23ac   :  { %2783 = vst.msk [vmem:[#allocation3 + $0x18] sm:$0xff] %vm1966_vm12, %v2780_v33  ;;  %4244 = vmatmul.mubr.msk.f32.vlgmr.msra.gmra.mrb[28].mxu0 %vm1966_vm12, %v2780_v33  ;;  %4760 = vmatmul.mubr.msk.f32.vlgmr.msra.gmra.mrb[24].mxu1 %vm1966_vm12, %v2780_v33 }
0x23ad   :  { %5186 = vmatpush1.bf16.msra.mxu0 %v6416_v44  ;;  %5209 = vmatpush3.bf16.msra.mxu1 %v6463_v28 }
0x23ae   :  { %5188 = vmatprep.subr.bf16.mxu0 %v6418_v45  ;;  %5210 = vmatprep.subr.bf16.mxu1 %v5818_v36 }
0x23af   :  { %3062 = vmatprep.mubr.f32.mxu0 %v5820_v38  ;;  %4786 = vmatprep.mubr.msk.f32.mxu1 %vm5819_vm1, %v5820_v38 }
0x23b1   :  { %5190 = vmatpush1.bf16.msra.mxu0 %v6428_v8  ;;  %5212 = vmatpush3.bf16.msra.mxu1 %v6476_v41 }
0x23b2   :  { %5192 = vmatprep.subr.bf16.mxu0 %v6430_v40  ;;  %5213 = vmatprep.subr.bf16.mxu1 %v5818_v36 }
0x23b5   :  { %5194 = vmatpush1.bf16.msra.mxu0 %v6433_v13  ;;  %5215 = vmatpush3.bf16.msra.mxu1 %v6488_v47 }
0x23b6   :  { %5196 = vmatprep.subr.bf16.mxu0 %v6436_v4  ;;  %5216 = vmatprep.subr.bf16.mxu1 %v5818_v36 }
0x23b9   :  { %5198 = vmatpush1.bf16.msra.mxu0 %v6439_v62  ;;  %5218 = vmatpush3.bf16.msra.mxu1 %v6497_v5 }
0x23ba   :  { %5200 = vmatprep.subr.bf16.mxu0 %v6442_v48  ;;  %5219 = vmatprep.subr.bf16.mxu1 %v5818_v36 }
0x23bd   :  { %5202 = vmatpush1.bf16.msra.mxu0 %v6445_v6  ;;  %5221 = vmatpush3.bf16.msra.mxu1 %v6503_v16 }
0x23be   :  { %5204 = vmatprep.subr.bf16.mxu0 %v6448_v23  ;;  %5222 = vmatprep.subr.bf16.mxu1 %v5818_v36 }
0x23c1   :  { %5206 = vmatpush1.bf16.msra.mxu0 %v6451_v27  ;;  %5224 = vmatpush3.bf16.msra.mxu1 %v6509_v63 }
0x23c2   :  { %5226 = vmatprep.subr.bf16.mxu0 %v6414_v42  ;;  %5249 = vmatprep.subr.bf16.mxu1 %v5818_v36 }
0x247f   :  { %v2858_v49 = vpop.f32.mrb[28].mxu0  ;;  %v2929_v34 = vpop.f32.mrb[24].mxu1 }
0x2480   :  { %v2935_v29 = vadd.f32 %v2929_v34, %v1918_v1  ;;  %v2860_v10 = vpop.f32.mrb[29].mxu0  ;;  %v4761_v11 = vpop.f32.mrb[25].mxu1  ;;  %v5347_v9 = vadd.f32 %v2858_v49, %v6578_v12 }
0x2481   :  { %v5348_v0 = vadd.f32 %v2860_v10, %v6572_v39 }
0x2482   :  { %5581 = vtanh.f32 %v2935_v29  ;;  %v4246_v20 = vmul.f32 -1.442695, %v5347_v9  ;;  %v4248_v34 = vmul.f32 -1.442695, %v2935_v29  ;;  %v1923_v29 = vadd.f32 %v6559_v24, %v6566_v35 }
0x2483   :  { %5583 = vtanh.f32 %v5348_v0  ;;  %v4247_v32 = vmul.f32 -1.442695, %v5348_v0 }
0x2484   :  { %5585 = vpow2.f32 %v4246_v20 }
0x248c   :  { %v5582_v2 = vpop.eup %5581 }
0x248d   :  { %v5584_v19 = vpop.eup %5583  ;;  %2962 = vrot.lane.b32.xlu1 %v5582_v2, %s5821_s5 }
0x248e   :  { %2960 = vrot.lane.b32.xlu0 %v5584_v19, %s5821_s5  ;;  %v5586_v25 = vpop.eup %5585 }
0x248f   :  { %v2939_v59 = vadd.f32 1.0, %v5586_v25 }
0x2491   :  { %5587 = vrcp.f32 %v2939_v59 }
0x2492   :  { %5589 = vpow2.f32 %v4247_v32 }
0x249b   :  { %v5588_v15 = vpop.eup %5587 }
0x249c   :  { %v5590_v22 = vpop.eup %5589  ;;  %v2956_v18 = vmul.f32 %v5588_v15, %v6733_v21 }
0x249d   :  { %v2945_v26 = vadd.f32 1.0, %v5590_v22 }
0x249f   :  { %5591 = vrcp.f32 %v2945_v26 }
0x24a9   :  { %v5592_v46 = vpop.eup %5591 }
0x24aa   :  { %v2957_v61 = vmul.f32 %v5592_v46, %v6735_v58 }
0x24ff   :  { %v2963_v14 = vpop.permute.xlu1 %2962 }
0x2500   :  { %v2961_v7 = vpop.permute.xlu0 %2960 }
0x2501   :  { %v2964_v17 = vsel %vm376_vm10, %v2961_v7, %v2963_v14 }
0x2502   :  { %v2966_v43 = vmul.f32 %v5588_v15, %v2964_v17 }
0x2504   :  { %2968 = vrot.lane.b32.xlu0 %v2966_v43, %s5823_s17 }
0x2576   :  { %v2969_v3 = vpop.permute.xlu0 %2968 }
0x2577   :  { %v6783_v31 = vadd.f32 %v2969_v3, %v2956_v18  ;;  %v6785_v33 = vadd.f32 %v2969_v3, %v2957_v61 }
0x2579   :  { %5593 = vtanh.f32 %v6783_v31 }
0x257a   :  { %5595 = vtanh.f32 %v6785_v33 }
0x257b   :  { %5597 = vpow2.f32 %v4248_v34 }
0x2583   :  { %v5594_v1 = vpop.eup %5593 }
0x2584   :  { %v5596_v49 = vpop.eup %5595  ;;  %2977 = vrot.lane.b32.xlu1 %v5594_v1, %s5821_s5 }
0x2585   :  { %2979 = vrot.lane.b32.xlu0 %v5596_v49, %s5821_s5  ;;  %v5598_v21 = vpop.eup %5597 }
0x2586   :  { %v2953_v10 = vadd.f32 1.0, %v5598_v21 }
0x2588   :  { %5599 = vrcp.f32 %v2953_v10 }
0x2592   :  { %v5600_v0 = vpop.eup %5599 }
0x25f6   :  { %v2978_v58 = vpop.permute.xlu1 %2977 }
0x25f7   :  { %v2980_v11 = vpop.permute.xlu0 %2979 }
0x25f8   :  { %v2981_v2 = vsel %vm376_vm10, %v2978_v58, %v2980_v11 }
0x25f9   :  { %v2983_v19 = vmul.f32 %v5600_v0, %v2981_v2 }
0x25fb   :  { %2985 = vrot.lane.b32.xlu1 %v2983_v19, %s5823_s17 }
0x266d   :  { %v2986_v9 = vpop.permute.xlu1 %2985 }
0x266e   :  { %2989 = vst.msk [vmem:[#allocation3 + $0x20] sm:$0xff] %vm1966_vm12, %v2986_v9  ;;  %4249 = vmatmul.mubr.msk.f32.vlgmr.msra.gmra.mrb[30].mxu0 %vm1966_vm12, %v2986_v9  ;;  %4787 = vmatmul.mubr.msk.f32.vlgmr.msra.gmra.mrb[26].mxu1 %vm1966_vm12, %v2986_v9 }
0x266f   :  { %5228 = vmatpush1.bf16.msra.mxu0 %v6416_v44  ;;  %5251 = vmatpush3.bf16.msra.mxu1 %v6463_v28 }
0x2670   :  { %5230 = vmatprep.subr.bf16.mxu0 %v6418_v45  ;;  %5252 = vmatprep.subr.bf16.mxu1 %v5818_v36 }
0x2671   :  { %3268 = vmatprep.mubr.f32.mxu0 %v5820_v38  ;;  %4813 = vmatprep.mubr.msk.f32.mxu1 %vm5819_vm1, %v5820_v38 }
0x2673   :  { %5232 = vmatpush1.bf16.msra.mxu0 %v6428_v8  ;;  %5254 = vmatpush3.bf16.msra.mxu1 %v6476_v41 }
0x2674   :  { %5234 = vmatprep.subr.bf16.mxu0 %v6430_v40  ;;  %5255 = vmatprep.subr.bf16.mxu1 %v5818_v36 }
0x2677   :  { %5236 = vmatpush1.bf16.msra.mxu0 %v6433_v13  ;;  %5257 = vmatpush3.bf16.msra.mxu1 %v6488_v47 }
0x2678   :  { %5238 = vmatprep.subr.bf16.mxu0 %v6436_v4  ;;  %5258 = vmatprep.subr.bf16.mxu1 %v5818_v36 }
0x267b   :  { %5240 = vmatpush1.bf16.msra.mxu0 %v6439_v62  ;;  %5260 = vmatpush3.bf16.msra.mxu1 %v6497_v5 }
0x267c   :  { %5242 = vmatprep.subr.bf16.mxu0 %v6442_v48  ;;  %5261 = vmatprep.subr.bf16.mxu1 %v5818_v36 }
0x267f   :  { %5244 = vmatpush1.bf16.msra.mxu0 %v6445_v6  ;;  %5263 = vmatpush3.bf16.msra.mxu1 %v6503_v16 }
0x2680   :  { %5246 = vmatprep.subr.bf16.mxu0 %v6448_v23  ;;  %5264 = vmatprep.subr.bf16.mxu1 %v5818_v36 }
0x2683   :  { %5248 = vmatpush1.bf16.msra.mxu0 %v6451_v27  ;;  %5266 = vmatpush3.bf16.msra.mxu1 %v6509_v63 }
0x2684   :  { %5291 = vmatprep.subr.bf16.mxu1 %v5818_v36  ;;  %5268 = vmatprep.subr.bf16.mxu0 %v6414_v42 }
0x2741   :  { %v3064_v20 = vpop.f32.mrb[30].mxu0  ;;  %v3135_v25 = vpop.f32.mrb[26].mxu1 }
0x2742   :  { %v3141_v59 = vadd.f32 %v3135_v25, %v1923_v29  ;;  %v3066_v14 = vpop.f32.mrb[31].mxu0  ;;  %v4788_v7 = vpop.f32.mrb[27].mxu1  ;;  %v5349_v42 = vadd.f32 %v3064_v20, %v6578_v12 }
0x2743   :  { %v5350_v15 = vadd.f32 %v3066_v14, %v6572_v39 }
0x2744   :  { %5601 = vtanh.f32 %v3141_v59  ;;  %v4251_v32 = vmul.f32 -1.442695, %v5349_v42  ;;  %v4253_v29 = vmul.f32 -1.442695, %v3141_v59 }
0x2745   :  { %5603 = vtanh.f32 %v5350_v15  ;;  %v4252_v1 = vmul.f32 -1.442695, %v5350_v15 }
0x2746   :  { %5605 = vpow2.f32 %v4251_v32 }
0x274e   :  { %v5602_v17 = vpop.eup %5601 }
0x274f   :  { %v5604_v43 = vpop.eup %5603  ;;  %3168 = vrot.lane.b32.xlu1 %v5602_v17, %s5821_s5 }
0x2750   :  { %3166 = vrot.lane.b32.xlu0 %v5604_v43, %s5821_s5  ;;  %v5606_v24 = vpop.eup %5605 }
0x2751   :  { %v3145_v22 = vadd.f32 1.0, %v5606_v24 }
0x2753   :  { %5607 = vrcp.f32 %v3145_v22 }
0x2754   :  { %5609 = vpow2.f32 %v4252_v1 }
0x275d   :  { %v5608_v18 = vpop.eup %5607 }
0x275e   :  { %v5610_v49 = vpop.eup %5609  ;;  %v3162_v10 = vmul.f32 %v5608_v18, %v6783_v31 }
0x275f   :  { %v3151_v34 = vadd.f32 1.0, %v5610_v49 }
0x2761   :  { %5611 = vrcp.f32 %v3151_v34 }
0x276b   :  { %v5612_v21 = vpop.eup %5611 }
0x276c   :  { %v3163_v58 = vmul.f32 %v5612_v21, %v6785_v33 }
0x27c1   :  { %v3169_v26 = vpop.permute.xlu1 %3168 }
0x27c2   :  { %v3167_v46 = vpop.permute.xlu0 %3166 }
0x27c3   :  { %v3170_v61 = vsel %vm376_vm10, %v3167_v46, %v3169_v26 }
0x27c4   :  { %v3172_v3 = vmul.f32 %v5608_v18, %v3170_v61  ;;  %v3616_v61 = vld [vmem:[%s7157_s9] sm:$0xff] }
0x27c6   :  { %3174 = vrot.lane.b32.xlu0 %v3172_v3, %s5823_s17  ;;  %v3617_v3 = vld [vmem:[%s7157_s9 + $0x8] sm:$0xff] }
0x27c7   :  { %v5309_v1 = vpack.c.bf16 %v3617_v3, %v3616_v61 }
0x2838   :  { %v3175_v11 = vpop.permute.xlu0 %3174 }
0x2839   :  { %v6833_v0 = vadd.f32 %v3175_v11, %v3162_v10  ;;  %v6835_v2 = vadd.f32 %v3175_v11, %v3163_v58 }
0x283b   :  { %5613 = vtanh.f32 %v6833_v0 }
0x283c   :  { %5615 = vtanh.f32 %v6835_v2 }
0x283d   :  { %5617 = vpow2.f32 %v4253_v29  ;;  %v3618_v29 = vld [vmem:[%s7157_s9 + $0x10] sm:$0xff] }
0x2845   :  { %v5614_v19 = vpop.eup %5613 }
0x2846   :  { %v5616_v9 = vpop.eup %5615  ;;  %3183 = vrot.lane.b32.xlu1 %v5614_v19, %s5821_s5 }
0x2847   :  { %3185 = vrot.lane.b32.xlu0 %v5616_v9, %s5821_s5  ;;  %v5618_v31 = vpop.eup %5617 }
0x2848   :  { %v3159_v20 = vadd.f32 1.0, %v5618_v31  ;;  %v3619_v31 = vld [vmem:[%s7157_s9 + $0x18] sm:$0xff] }
0x284a   :  { %5619 = vrcp.f32 %v3159_v20  ;;  %v5313_v20 = vpack.c.bf16 %v3619_v31, %v3618_v29 }
0x2854   :  { %v5620_v14 = vpop.eup %5619 }
0x28b8   :  { %v3184_v33 = vpop.permute.xlu1 %3183 }
0x28b9   :  { %v3186_v25 = vpop.permute.xlu0 %3185 }
0x28ba   :  { %v3187_v7 = vsel %vm376_vm10, %v3184_v33, %v3186_v25  ;;  %v3620_v25 = vld [vmem:[%s7157_s9 + $0x20] sm:$0xff] }
0x28bb   :  { %v3189_v15 = vmul.f32 %v5620_v14, %v3187_v7  ;;  %v3621_v14 = vld [vmem:[%s7157_s9 + $0x28] sm:$0xff]  ;;  %v6913_v7 = vld [vmem:[#allocation3] sm:$0xff] }
0x28bd   :  { %3191 = vrot.lane.b32.xlu1 %v3189_v15, %s5823_s17  ;;  %v5317_v15 = vpack.c.bf16 %v3621_v14, %v3620_v25 }
0x292f   :  { %v3192_v17 = vpop.permute.xlu1 %3191 }
0x2930   :  { %3195 = vst.msk [vmem:[#allocation3 + $0x28] sm:$0xff] %vm1966_vm12, %v3192_v17  ;;  %4254 = vmatmul.mubr.msk.f32.vlgmr.msra.gmra.mrb[32].mxu0 %vm1966_vm12, %v3192_v17  ;;  %4814 = vmatmul.mubr.msk.f32.vlgmr.msra.gmra.mrb[28].mxu1 %vm1966_vm12, %v3192_v17  ;;  %v3622_v17 = vld [vmem:[%s7157_s9 + $0x30] sm:$0xff] }
0x2931   :  { %5293 = vmatpush3.bf16.msra.mxu1 %v6463_v28  ;;  %5270 = vmatpush1.bf16.msra.mxu0 %v6416_v44  ;;  %v1928_v44 = vadd.f32 %v6570_v60, %v6566_v35 }
0x2932   :  { %5294 = vmatprep.subr.bf16.mxu1 %v5818_v36  ;;  %5272 = vmatprep.subr.bf16.mxu0 %v6418_v45 }
0x2933   :  { %3474 = vmatprep.mubr.f32.mxu0 %v5820_v38  ;;  %4840 = vmatprep.mubr.msk.f32.mxu1 %vm5819_vm1, %v5820_v38 }
0x2935   :  { %5296 = vmatpush3.bf16.msra.mxu1 %v6476_v41  ;;  %5274 = vmatpush1.bf16.msra.mxu0 %v6428_v8 }
0x2936   :  { %5297 = vmatprep.subr.bf16.mxu1 %v5818_v36  ;;  %5276 = vmatprep.subr.bf16.mxu0 %v6430_v40 }
0x2939   :  { %5299 = vmatpush3.bf16.msra.mxu1 %v6488_v47  ;;  %5278 = vmatpush1.bf16.msra.mxu0 %v6433_v13 }
0x293a   :  { %5300 = vmatprep.subr.bf16.mxu1 %v5818_v36  ;;  %5280 = vmatprep.subr.bf16.mxu0 %v6436_v4 }
0x293d   :  { %5302 = vmatpush3.bf16.msra.mxu1 %v6497_v5  ;;  %5282 = vmatpush1.bf16.msra.mxu0 %v6439_v62 }
0x293e   :  { %5303 = vmatprep.subr.bf16.mxu1 %v5818_v36  ;;  %5284 = vmatprep.subr.bf16.mxu0 %v6442_v48 }
0x2941   :  { %5305 = vmatpush3.bf16.msra.mxu1 %v6503_v16  ;;  %5286 = vmatpush1.bf16.msra.mxu0 %v6445_v6 }
0x2942   :  { %5306 = vmatprep.subr.bf16.mxu1 %v5818_v36  ;;  %5288 = vmatprep.subr.bf16.mxu0 %v6448_v23 }
0x2945   :  { %5308 = vmatpush3.bf16.msra.mxu1 %v6509_v63  ;;  %5290 = vmatpush1.bf16.msra.mxu0 %v6451_v27 }
0x2946   :  { %5333 = vmatprep.subr.bf16.mxu0 %v5818_v36  ;;  %5310 = vmatprep.subr.bf16.mxu1 %v5309_v1 }
0x2a03   :  { %v3270_v45 = vpop.f32.mrb[32].mxu0  ;;  %v3341_v8 = vpop.f32.mrb[28].mxu1 }
0x2a04   :  { %v3347_v40 = vadd.f32 %v3341_v8, %v1928_v44  ;;  %v3272_v13 = vpop.f32.mrb[33].mxu0  ;;  %v4815_v4 = vpop.f32.mrb[29].mxu1  ;;  %v5351_v23 = vadd.f32 %v3270_v45, %v6578_v12  ;;  %v3623_v44 = vld [vmem:[%s7157_s9 + $0x38] sm:$0xff]  ;;  %v3624_v8 = vld [vmem:[%s7157_s9 + $0x40] sm:$0xff] }
0x2a05   :  { %v5352_v62 = vadd.f32 %v3272_v13, %v6572_v39  ;;  %v5321_v45 = vpack.c.bf16 %v3623_v44, %v3622_v17  ;;  %v3626_v13 = vld [vmem:[%s7157_s9 + $0x50] sm:$0xff]  ;;  %v3627_v4 = vld [vmem:[%s7157_s9 + $0x58] sm:$0xff] }
0x2a06   :  { %5621 = vtanh.f32 %v3347_v40  ;;  %v4256_v27 = vmul.f32 -1.442695, %v5351_v23  ;;  %v4258_v21 = vmul.f32 -1.442695, %v3347_v40  ;;  %v3625_v40 = vld [vmem:[%s7157_s9 + $0x48] sm:$0xff]  ;;  %v6945_v23 = vld [vmem:[#allocation3 + $0x18] sm:$0xff] }
0x2a07   :  { %5623 = vtanh.f32 %v5352_v62  ;;  %v4257_v59 = vmul.f32 -1.442695, %v5352_v62  ;;  %v5329_v62 = vpack.c.bf16 %v3627_v4, %v3626_v13  ;;  %v4182_v13 = vld [vmem:[#allocation10] ss:$0 sm:$0xff] }
0x2a08   :  { %5625 = vpow2.f32 %v4256_v27  ;;  %v6949_v27 = vld [vmem:[#allocation3 + $0x20] sm:$0xff]  ;;  %v447_v4 = vadd.f32 %v4182_v13, %v6235_v30 }
0x2a10   :  { %v5622_v48 = vpop.eup %5621 }
0x2a11   :  { %v5624_v6 = vpop.eup %5623  ;;  %3374 = vrot.lane.b32.xlu1 %v5622_v48, %s5821_s5  ;;  %v6937_v48 = vld [vmem:[#allocation3 + $0x8] sm:$0xff] }
0x2a12   :  { %3372 = vrot.lane.b32.xlu0 %v5624_v6, %s5821_s5  ;;  %v5626_v28 = vpop.eup %5625  ;;  %v6941_v6 = vld [vmem:[#allocation3 + $0x10] sm:$0xff] }
0x2a13   :  { %v3351_v41 = vadd.f32 1.0, %v5626_v28  ;;  %v6953_v28 = vld [vmem:[#allocation3 + $0x28] sm:$0xff] }
0x2a15   :  { %5627 = vrcp.f32 %v3351_v41 }
0x2a16   :  { %5629 = vpow2.f32 %v4257_v59 }
0x2a1f   :  { %v5628_v16 = vpop.eup %5627 }
0x2a20   :  { %v5630_v43 = vpop.eup %5629  ;;  %v3368_v24 = vmul.f32 %v5628_v16, %v6833_v0 }
0x2a21   :  { %v3357_v42 = vadd.f32 1.0, %v5630_v43 }
0x2a23   :  { %5631 = vrcp.f32 %v3357_v42 }
0x2a2d   :  { %v5632_v32 = vpop.eup %5631 }
0x2a2e   :  { %v3369_v22 = vmul.f32 %v5632_v32, %v6835_v2 }
0x2a83   :  { %v3375_v47 = vpop.permute.xlu1 %3374 }
0x2a84   :  { %v3373_v5 = vpop.permute.xlu0 %3372 }
0x2a85   :  { %v3376_v63 = vsel %vm376_vm10, %v3373_v5, %v3375_v47  ;;  %v1933_v47 = vadd.f32 %v6568_v37, %v6566_v35 }
0x2a86   :  { %v3378_v60 = vmul.f32 %v5628_v16, %v3376_v63 }
0x2a88   :  { %3380 = vrot.lane.b32.xlu0 %v3378_v60, %s5823_s17 }
0x2afa   :  { %v3381_v26 = vpop.permute.xlu0 %3380 }
0x2afb   :  { %v6882_v46 = vadd.f32 %v3381_v26, %v3368_v24  ;;  %v6884_v18 = vadd.f32 %v3381_v26, %v3369_v22 }
0x2afd   :  { %5633 = vtanh.f32 %v6882_v46 }
0x2afe   :  { %5635 = vtanh.f32 %v6884_v18 }
0x2aff   :  { %5637 = vpow2.f32 %v4258_v21 }
0x2b07   :  { %v5634_v49 = vpop.eup %5633 }
0x2b08   :  { %v5636_v34 = vpop.eup %5635  ;;  %3389 = vrot.lane.b32.xlu1 %v5634_v49, %s5821_s5 }
0x2b09   :  { %3391 = vrot.lane.b32.xlu0 %v5636_v34, %s5821_s5  ;;  %v5638_v10 = vpop.eup %5637 }
0x2b0a   :  { %v3365_v58 = vadd.f32 1.0, %v5638_v10 }
0x2b0c   :  { %5639 = vrcp.f32 %v3365_v58 }
0x2b16   :  { %v5640_v2 = vpop.eup %5639 }
0x2b7a   :  { %v3390_v11 = vpop.permute.xlu1 %3389 }
0x2b7b   :  { %v3392_v0 = vpop.permute.xlu0 %3391 }
0x2b7c   :  { %v3393_v19 = vsel %vm376_vm10, %v3390_v11, %v3392_v0 }
0x2b7d   :  { %v3395_v9 = vmul.f32 %v5640_v2, %v3393_v19 }
0x2b7f   :  { %3397 = vrot.lane.b32.xlu1 %v3395_v9, %s5823_s17 }
0x2bf1   :  { %v3398_v33 = vpop.permute.xlu1 %3397 }
0x2bf2   :  { %3401 = vst.msk [vmem:[#allocation3 + $0x30] sm:$0xff] %vm1966_vm12, %v3398_v33  ;;  %4259 = vmatmul.mubr.msk.f32.vlgmr.msra.gmra.mrb[34].mxu0 %vm1966_vm12, %v3398_v33  ;;  %4841 = vmatmul.mubr.msk.f32.vlgmr.msra.gmra.mrb[30].mxu1 %vm1966_vm12, %v3398_v33 }
0x2bf3   :  { %5312 = vmatpush3.bf16.msra.mxu1 %v5309_v1  ;;  %4867 = vmatprep.mubr.msk.f32.mxu1 %vm1966_vm12, %v6913_v7 }
0x2bf4   :  { %5314 = vmatprep.subr.bf16.mxu1 %v5313_v20  ;;  %4887 = vmatprep.mubr.msk.f32.mxu0 %vm5819_vm1, %v5820_v38  ;;  %v5325_v38 = vpack.c.bf16 %v3625_v40, %v3624_v8 }
0x2bf7   :  { %5316 = vmatpush3.bf16.msra.mxu1 %v5313_v20 }
0x2bf8   :  { %5318 = vmatprep.subr.bf16.mxu1 %v5317_v15 }
0x2bf9   :  { %v6957_v41 = vld [vmem:[#allocation3 + $0x30] sm:$0xff] }
0x2bfb   :  { %5320 = vmatpush3.bf16.msra.mxu1 %v5317_v15 }
0x2bfc   :  { %5322 = vmatprep.subr.bf16.mxu1 %v5321_v45 }
0x2bff   :  { %5324 = vmatpush3.bf16.msra.mxu1 %v5321_v45 }
0x2c00   :  { %5326 = vmatprep.subr.bf16.mxu1 %v5325_v38 }
0x2c03   :  { %5328 = vmatpush3.bf16.msra.mxu1 %v5325_v38 }
0x2c04   :  { %5330 = vmatprep.subr.bf16.mxu1 %v5329_v62 }
0x2c07   :  { %5332 = vmatpush3.bf16.msra.mxu1 %v5329_v62  ;;  %v451_v62 = vsel %vm450_vm13, %v447_v4, -inf }
0x2c0a   :  { %4868 = vmatmul.mubr.msk.f32.vlgmr.msra.gmra.mrb[32].mxu1 %vm1966_vm12, %v6937_v48 }
0x2c0b   :  { %4870 = vmatprep.mubr.msk.f32.mxu1 %vm1966_vm12, %v6941_v6 }
0x2c0e   :  { %4871 = vmatmul.mubr.msk.f32.gmra.mrb[34].mxu1 %vm1966_vm12, %v6945_v23 }
0x2c0f   :  { %4873 = vmatprep.mubr.msk.f32.mxu1 %vm1966_vm12, %v6949_v27 }
0x2c12   :  { %4874 = vmatmul.mubr.msk.f32.gmra.mrb[36].mxu1 %vm1966_vm12, %v6953_v28 }
0x2c13   :  { %4876 = vmatprep.mubr.msk.f32.mxu1 %vm1966_vm12, %v6957_v41 }
0x2cc5   :  { %v3476_v5 = vpop.f32.mrb[34].mxu0  ;;  %v3547_v16 = vpop.f32.mrb[30].mxu1 }
0x2cc6   :  { %v6963_v63 = vadd.f32 %v3547_v16, %v1933_v47  ;;  %v3478_v60 = vpop.f32.mrb[35].mxu0  ;;  %v4842_v59 = vpop.f32.mrb[31].mxu1  ;;  %v5353_v11 = vadd.f32 %v3476_v5, %v6578_v12 }
0x2cc7   :  { %v5354_v43 = vadd.f32 %v3478_v60, %v6572_v39 }
0x2cc8   :  { %5641 = vtanh.f32 %v6963_v63  ;;  %v4261_v0 = vmul.f32 -1.442695, %v5353_v11 }
0x2cc9   :  { %5643 = vtanh.f32 %v5354_v43  ;;  %v4262_v33 = vmul.f32 -1.442695, %v5354_v43 }
0x2cca   :  { %5645 = vpow2.f32 %v4261_v0 }
0x2cd2   :  { %v5642_v42 = vpop.eup %5641 }
0x2cd3   :  { %v5644_v32 = vpop.eup %5643  ;;  %3580 = vrot.lane.b32.xlu1 %v5642_v42, %s5821_s5  ;;  %v470_v42 = vsel %vm469_vm14, %v447_v4, -inf }
0x2cd4   :  { %3578 = vrot.lane.b32.xlu0 %v5644_v32, %s5821_s5  ;;  %v5646_v2 = vpop.eup %5645  ;;  %v127_v32 = vld [vmem:[%s7174_s23] sm:$0xff] }
0x2cd5   :  { %v3557_v19 = vadd.f32 1.0, %v5646_v2  ;;  %vm462_vm15 = vcmp.eq.s32.totalorder %v127_v32, 0  ;;  %vm485_vm0 = vcmp.eq.s32.totalorder %v127_v32, 1 }
0x2cd7   :  { %5647 = vrcp.f32 %v3557_v19 }
0x2cd8   :  { %5649 = vpow2.f32 %v4262_v33 }
0x2cdd   :  { %v4869_v24 = vpop.f32.mrb[32].mxu1 }
0x2cde   :  { %v3718_v22 = vpop.f32.mrb[33].mxu1  ;;  %v6975_v26 = vsel %vm154_vm6, %v4869_v24, -1e+30  ;;  %vm4126_vm6 = vcmask 15360  }
0x2cdf   :  { %v6979_v39 = vsel %vm153_vm5, %v3718_v22, -1e+30  ;;  %v3782_v49 = vsel %vm450_vm13, %v6975_v26, -inf  ;;  %vm4139_vm5 = vcmask 31760  }
0x2ce0   :  { %v3781_v51 = vsel %vm450_vm13, %v6979_v39, -inf }
0x2ce1   :  { %v6969_v35 = vpop.f32.mrb[34].mxu1  ;;  %v5648_v29 = vpop.eup %5647 }
0x2ce2   :  { %v6971_v37 = vpop.f32.mrb[35].mxu1  ;;  %v5650_v25 = vpop.eup %5649  ;;  %v3574_v12 = vmul.f32 %v5648_v29, %v6882_v46  ;;  %v5824_v46 = vmov 0   ;;  %v3776_v33 = vsel %vm156_vm7, %v6969_v35, -1e+30 }
0x2ce3   :  { %v3563_v14 = vadd.f32 1.0, %v5650_v25  ;;  %5391 = vset.pattern.permute.xlu1 %v5824_v46  ;;  %5392 = vset.pattern.permute.xlu0 %v5824_v46  ;;  %v486_v0 = vsel %vm485_vm0, 1, %v5824_v46  ;;  %v3775_v25 = vsel %vm155_vm4, %v6971_v37, -1e+30  ;;  %vm4021_vm4 = vcmask 785920  }
0x2ce5   :  { %v4875_v61 = vpop.f32.mrb[36].mxu1  ;;  %5651 = vrcp.f32 %v3563_v14 }
0x2ce6   :  { %v6983_v3 = vsel %vm158_vm2, %v4875_v61, -1e+30  ;;  %v3738_v1 = vpop.f32.mrb[37].mxu1 }
0x2ce7   :  { %v3787_v34 = vsel %vm450_vm13, %v6983_v3, -inf  ;;  %v6991_v53 = vsel %vm157_vm3, %v3738_v1, -1e+30  ;;  %vm3960_vm3 = vcmask 523520  }
0x2ce8   :  { %v3788_v21 = vmax.f32 %v3782_v49, %v3787_v34  ;;  %v3785_v54 = vsel %vm450_vm13, %v6991_v53, -inf }
0x2ce9   :  { %v3786_v10 = vmax.f32 %v3781_v51, %v3785_v54 }
0x2ceb   :  { %v6997_v58 = vmax.f32 %v3786_v10, %v3788_v21 }
0x2cef   :  { %v5652_v15 = vpop.eup %5651 }
0x2cf0   :  { %v3575_v17 = vmul.f32 %v5652_v15, %v6884_v18  ;;  %v4263_v18 = vmul.f32 -1.442695, %v6963_v63  ;;  %v463_v63 = vsel %vm462_vm15, 1, %v5824_v46 }
0x2d45   :  { %v3581_v55 = vpop.permute.xlu1 %3580 }
0x2d46   :  { %v3579_v9 = vpop.permute.xlu0 %3578 }
0x2d47   :  { %v3582_v31 = vsel %vm376_vm10, %v3579_v9, %v3581_v55 }
0x2d48   :  { %v3584_v20 = vmul.f32 %v5648_v29, %v3582_v31 }
0x2d4a   :  { %3586 = vrot.lane.b32.xlu0 %v3584_v20, %s5823_s17 }
0x2dbc   :  { %v3587_v44 = vpop.permute.xlu0 %3586 }
0x2dbd   :  { %v3589_v45 = vadd.f32 %v3587_v44, %v3574_v12  ;;  %v3590_v8 = vadd.f32 %v3587_v44, %v3575_v17  ;;  %v3784_v17 = vsel %vm450_vm13, %v3776_v33, -inf }
0x2dbf   :  { %5653 = vtanh.f32 %v3589_v45 }
0x2dc0   :  { %5655 = vtanh.f32 %v3590_v8  ;;  %v3783_v8 = vsel %vm450_vm13, %v3775_v25, -inf }
0x2dc1   :  { %5657 = vpow2.f32 %v4263_v18 }
0x2dc9   :  { %v5654_v40 = vpop.eup %5653 }
0x2dca   :  { %v5656_v38 = vpop.eup %5655  ;;  %3595 = vrot.lane.b32.xlu1 %v5654_v40, %s5821_s5 }
0x2dcb   :  { %3597 = vrot.lane.b32.xlu0 %v5656_v38, %s5821_s5  ;;  %v5658_v47 = vpop.eup %5657 }
0x2dcc   :  { %v3571_v5 = vadd.f32 1.0, %v5658_v47 }
0x2dce   :  { %5659 = vrcp.f32 %v3571_v5 }
0x2dd8   :  { %v5660_v59 = vpop.eup %5659 }
0x2dea   :  { %452 = vmax.xlane.f32.xlu0 %v451_v62 }
0x2e3c   :  { %v3596_v16 = vpop.permute.xlu1 %3595 }
0x2e3d   :  { %v3598_v60 = vpop.permute.xlu0 %3597 }
0x2e3e   :  { %v3599_v43 = vsel %vm376_vm10, %v3596_v16, %v3598_v60 }
0x2e3f   :  { %v3601_v30 = vmul.f32 %v5660_v59, %v3599_v43 }
0x2e41   :  { %3603 = vrot.lane.b32.xlu1 %v3601_v30, %s5823_s17 }
0x2e65   :  { %471 = vmax.xlane.f32.xlu1 %v470_v42 }
0x2e76   :  { %465 = vperm.xlu1 %5391, %v463_v63  }
0x2e77   :  { %v453_v24 = vpop.xlane.xlu0 %452 }
0x2e78   :  { %v454_v22 = vsub.f32 %v447_v4, %v453_v24 }
0x2e7a   :  { %v455_v61 = vmul.f32 1.442695, %v454_v22 }
0x2e7c   :  { %5661 = vpow2.f32 %v455_v61 }
0x2e86   :  { %v5662_v1 = vpop.eup %5661 }
0x2e87   :  { %v457_v49 = vsel %vm450_vm13, %v5662_v1, 0.0 }
0x2e88   :  { %458 = vadd.xlane.f32.xlu0 %v457_v49 }
0x2eb3   :  { %v3604_v34 = vpop.permute.xlu1 %3603 }
0x2eb4   :  { %3607 = vst.msk [vmem:[#allocation3 + $0x38] sm:$0xff] %vm1966_vm12, %v3604_v34 }
0x2ebb   :  { %v7019_v51 = vld [vmem:[#allocation3 + $0x38] sm:$0xff] }
0x2ebc   :  { %4877 = vmatmul.mubr.msk.f32.gmra.mrb[38].mxu1 %vm1966_vm12, %v7019_v51 }
0x2ef2   :  { %v472_v21 = vpop.xlane.xlu1 %471 }
0x2ef3   :  { %v473_v54 = vsub.f32 %v447_v4, %v472_v21 }
0x2ef5   :  { %v474_v10 = vmul.f32 1.442695, %v473_v54 }
0x2ef6   :  { %v7028_v19 = vpop.permute.xlu1 %465 }
0x2ef7   :  { %5663 = vpow2.f32 %v474_v10  ;;  %vm467_vm1 = vcmp.eq.s32.totalorder %v7028_v19, 1 }
0x2f01   :  { %v7023_v11 = vpop.eup %5663 }
0x2f02   :  { %477 = vrot.lane.b32.xlu0 %v7023_v11, %s5825_s25 }
0x2f06   :  { %488 = vperm.xlu0 %5392, %v486_v0  }
0x2f15   :  { %v459_v2 = vpop.xlane.xlu0 %458 }
0x2f16   :  { %5665 = vrcp.f32 %v459_v2 }
0x2f20   :  { %v5666_v55 = vpop.eup %5665 }
0x2f21   :  { %v461_v9 = vmul.f32 %v5666_v55, %v5662_v1 }
0x2f23   :  { %v468_v29 = vsel %vm467_vm1, %v461_v9, 0.0 }
0x2f24   :  { %492 = vrot.lane.b32.xlu0 %v468_v29, %s5826_s27 }
0x2f74   :  { %v478_v31 = vpop.permute.xlu0 %477 }
0x2f75   :  { %v480_v20 = vsel %vm450_vm13, %v478_v31, 0.0 }
0x2f76   :  { %481 = vadd.xlane.f32.xlu1 %v480_v20 }
0x2f8f   :  { %v4878_v14 = vpop.f32.mrb[38].mxu1 }
0x2f90   :  { %v3780_v15 = vsel %vm160_vm8, %v4878_v14, -1e+30  ;;  %v3748_v12 = vpop.f32.mrb[39].mxu1 }
0x2f91   :  { %v3791_v44 = vsel %vm450_vm13, %v3780_v15, -inf  ;;  %v3779_v45 = vsel %vm159_vm9, %v3748_v12, -1e+30 }
0x2f92   :  { %v3792_v52 = vmax.f32 %v3784_v17, %v3791_v44  ;;  %v3789_v35 = vsel %vm450_vm13, %v3779_v45, -inf }
0x2f93   :  { %v3790_v40 = vmax.f32 %v3783_v8, %v3789_v35 }
0x2f95   :  { %v3794_v50 = vmax.f32 %v3790_v40, %v3792_v52  ;;  %v5827_v40 = vmov 2  }
0x2f96   :  { %5395 = vset.pattern.permute.xlu1 %v5827_v40 }
0x2f97   :  { %v3795_v37 = vmax.f32 %v6997_v58, %v3794_v50  ;;  %v5828_v50 = vmov 1  }
0x2f98   :  { %5393 = vset.pattern.permute.xlu0 %v5828_v50 }
0x2f99   :  { %v3796_v56 = vsub.f32 %v6979_v39, %v3795_v37  ;;  %v3797_v38 = vsub.f32 %v6975_v26, %v3795_v37  ;;  %v3798_v13 = vsub.f32 %v3775_v25, %v3795_v37  ;;  %v3799_v4 = vsub.f32 %v3776_v33, %v3795_v37 }
0x2f9a   :  { %v3800_v62 = vsub.f32 %v6991_v53, %v3795_v37  ;;  %v3801_v57 = vsub.f32 %v6983_v3, %v3795_v37  ;;  %v3802_v18 = vsub.f32 %v3779_v45, %v3795_v37  ;;  %v3803_v47 = vsub.f32 %v3780_v15, %v3795_v37  ;;  %v7061_v37 = vpop.permute.xlu0 %488 }
0x2f9b   :  { %v3804_v5 = vmul.f32 1.442695, %v3796_v56  ;;  %v3806_v16 = vmul.f32 1.442695, %v3797_v38  ;;  %v3808_v60 = vmul.f32 1.442695, %v3798_v13 }
0x2f9c   :  { %v3810_v59 = vmul.f32 1.442695, %v3799_v4  ;;  %v3812_v43 = vmul.f32 1.442695, %v3800_v62  ;;  %v3814_v39 = vmul.f32 1.442695, %v3801_v57 }
0x2f9d   :  { %5667 = vpow2.f32 %v3804_v5  ;;  %v3816_v26 = vmul.f32 1.442695, %v3802_v18  ;;  %v3818_v58 = vmul.f32 1.442695, %v3803_v47  ;;  %vm490_vm2 = vcmp.eq.s32.totalorder %v7061_v37, 1 }
0x2f9e   :  { %5669 = vpow2.f32 %v3806_v16  ;;  %v493_v13 = vpop.permute.xlu0 %492 }
0x2f9f   :  { %5671 = vpow2.f32 %v3808_v60 }
0x2fa0   :  { %5673 = vpow2.f32 %v3810_v59 }
0x2fa1   :  { %5675 = vpow2.f32 %v3812_v43 }
0x2fa2   :  { %5677 = vpow2.f32 %v3814_v39 }
0x2fa3   :  { %5679 = vpow2.f32 %v3816_v26 }
0x2fa4   :  { %5681 = vpow2.f32 %v3818_v58 }
0x2fa7   :  { %v5668_v53 = vpop.eup %5667 }
0x2fa8   :  { %v5670_v30 = vpop.eup %5669  ;;  %v3820_v3 = vsel %vm450_vm13, %v5668_v53, 0.0 }
0x2fa9   :  { %v5672_v42 = vpop.eup %5671  ;;  %v3821_v32 = vsel %vm450_vm13, %v5670_v30, 0.0 }
0x2faa   :  { %v5674_v63 = vpop.eup %5673  ;;  %v3822_v24 = vadd.f32 %v3821_v32, %v3820_v3  ;;  %v3823_v22 = vsel %vm450_vm13, %v5672_v42, 0.0 }
0x2fab   :  { %v5676_v61 = vpop.eup %5675  ;;  %v3825_v49 = vsel %vm450_vm13, %v5674_v63, 0.0 }
0x2fac   :  { %v3824_v1 = vadd.f32 %v3823_v22, %v3822_v24  ;;  %v5678_v34 = vpop.eup %5677  ;;  %v3827_v54 = vsel %vm450_vm13, %v5676_v61, 0.0 }
0x2fad   :  { %v5680_v10 = vpop.eup %5679  ;;  %v3829_v2 = vsel %vm450_vm13, %v5678_v34, 0.0 }
0x2fae   :  { %v3826_v21 = vadd.f32 %v3825_v49, %v3824_v1  ;;  %v5682_v55 = vpop.eup %5681  ;;  %v3831_v29 = vsel %vm450_vm13, %v5680_v10, 0.0 }
0x2faf   :  { %v3833_v20 = vsel %vm450_vm13, %v5682_v55, 0.0 }
0x2fb0   :  { %v3828_v0 = vadd.f32 %v3827_v54, %v3826_v21  ;;  %v4042_v54 = vld [vmem:[%s7158_s10] sm:$0xff] }
0x2fb2   :  { %v3830_v9 = vadd.f32 %v3829_v2, %v3828_v0  ;;  %v4044_v0 = vld [vmem:[%s7158_s10 + $0x10] sm:$0xff] }
0x2fb4   :  { %v3832_v31 = vadd.f32 %v3831_v29, %v3830_v9  ;;  %v4045_v9 = vld [vmem:[%s7158_s10 + $0x18] sm:$0xff] }
0x2fb6   :  { %v3834_v33 = vadd.f32 %v3833_v20, %v3832_v31 }
0x2fb8   :  { %5683 = vrcp.f32 %v3834_v33 }
0x2fc2   :  { %v5684_v25 = vpop.eup %5683 }
0x2fc3   :  { %v3837_v14 = vmul.f32 %v5684_v25, %v5670_v30  ;;  %v3836_v15 = vmul.f32 %v5684_v25, %v5668_v53  ;;  %v3840_v12 = vmul.f32 %v5684_v25, %v5676_v61  ;;  %v3838_v17 = vmul.f32 %v5684_v25, %v5672_v42 }
0x2fc4   :  { %v3841_v44 = vmul.f32 %v5684_v25, %v5678_v34  ;;  %v3842_v45 = vmul.f32 %v5684_v25, %v5680_v10  ;;  %v3843_v8 = vmul.f32 %v5684_v25, %v5682_v55  ;;  %v3839_v52 = vmul.f32 %v5684_v25, %v5674_v63  ;;  %v4043_v10 = vld [vmem:[%s7158_s10 + $0x8] sm:$0xff] }
0x2fc5   :  { %v5334_v55 = vpack.c.bf16 %v4043_v10, %v4042_v54  ;;  %v5337_v25 = vpack.c.bf16 %v4045_v9, %v4044_v0 }
0x2fc7   :  { %5335 = vmatpush3.bf16.msra.mxu0 %v5334_v55 }
0x2fc8   :  { %5336 = vmatprep.subr.bf16.mxu0 %v5818_v36 }
0x2fcb   :  { %5338 = vmatpush3.bf16.msra.mxu0 %v5337_v25 }
0x3003   :  { %v482_v35 = vpop.xlane.xlu1 %481 }
0x3004   :  { %5685 = vrcp.f32 %v482_v35 }
0x300e   :  { %v5686_v56 = vpop.eup %5685 }
0x300f   :  { %v484_v38 = vmul.f32 %v5686_v56, %v7023_v11 }
0x3011   :  { %v495_v4 = vsel %vm490_vm2, %v484_v38, %v493_v13 }
0x3012   :  { %3845 = vrot.lane.b32.xlu0 %v495_v4, %s5825_s25 }
0x3084   :  { %v3846_v62 = vpop.permute.xlu0 %3845 }
0x3085   :  { %v3849_v57 = vmul.f32 %v3846_v62, %v3837_v14  ;;  %v3848_v18 = vmul.f32 %v3846_v62, %v3836_v15  ;;  %v3852_v47 = vmul.f32 %v3846_v62, %v3840_v12  ;;  %v3850_v5 = vmul.f32 %v3846_v62, %v3838_v17 }
0x3086   :  { %v3853_v16 = vmul.f32 %v3846_v62, %v3841_v44  ;;  %v3854_v11 = vmul.f32 %v3846_v62, %v3842_v45  ;;  %v3855_v60 = vmul.f32 %v3846_v62, %v3843_v8  ;;  %v3851_v59 = vmul.f32 %v3846_v62, %v3839_v52 }
0x3087   :  { %3986 = vperm.xlu1 %5395, %v3849_v57   ;;  %3921 = vperm.xlu0 %5393, %v3848_v18  }
0x308b   :  { %5398 = vset.pattern.permute.xlu1 %v5828_v50  ;;  %3925 = vperm.xlu0 %5393, %v3849_v57  }
0x308c   :  { %3937 = vperm.xlu1 %5398, %v3852_v47  }
0x308f   :  { %3929 = vperm.xlu0 %5393, %v3850_v5  }
0x3090   :  { %3941 = vperm.xlu1 %5398, %v3853_v16  }
0x3093   :  { %5394 = vset.pattern.permute.xlu0 %v5827_v40 }
0x3094   :  { %3945 = vperm.xlu1 %5398, %v3854_v11   ;;  %3982 = vperm.xlu0 %5394, %v3848_v18  }
0x3098   :  { %3949 = vperm.xlu1 %5398, %v3855_v60   ;;  %5396 = vset.pattern.permute.xlu0 %v5828_v50 }
0x3099   :  { %3933 = vperm.xlu0 %5396, %v3851_v59  }
0x309c   :  { %5399 = vset.pattern.permute.xlu1 %v5827_v40 }
0x309d   :  { %4010 = vperm.xlu1 %5399, %v3855_v60   ;;  %5397 = vset.pattern.permute.xlu0 %v5827_v40 }
0x309e   :  { %3990 = vperm.xlu0 %5397, %v3850_v5  }
0x30a1   :  { %5401 = vset.pattern.permute.xlu1 %v5824_v46 }
0x30a2   :  { %3863 = vperm.xlu1 %5401, %v3849_v57   ;;  %3994 = vperm.xlu0 %5397, %v3851_v59  }
0x30a6   :  { %3868 = vperm.xlu1 %5401, %v3850_v5   ;;  %3998 = vperm.xlu0 %5397, %v3852_v47  }
0x30aa   :  { %3878 = vperm.xlu1 %5401, %v3852_v47   ;;  %4002 = vperm.xlu0 %5397, %v3853_v16  }
0x30ae   :  { %3888 = vperm.xlu1 %5401, %v3854_v11   ;;  %4006 = vperm.xlu0 %5397, %v3854_v11  }
0x30b2   :  { %5400 = vset.pattern.permute.xlu0 %v5824_v46 }
0x30b3   :  { %3858 = vperm.xlu0 %5400, %v3848_v18  }
0x30b7   :  { %3873 = vperm.xlu0 %5400, %v3851_v59  }
0x30bb   :  { %3883 = vperm.xlu0 %5400, %v3853_v16  }
0x30bf   :  { %3893 = vperm.xlu0 %5400, %v3855_v60  }
0x30c3   :  { %5402 = vset.pattern.permute.xlu0 %v5827_v40 }
0x3106   :  { %v3987_v43 = vpop.permute.xlu1 %3986  ;;  %v3922_v39 = vpop.permute.xlu0 %3921 }
0x3107   :  { %v3952_v42 = vmul.f32 %v3922_v39, %v6913_v7  ;;  %v4014_v50 = vmul.f32 %v3987_v43, %v6937_v48 }
0x3109   :  { %v3961_v22 = vsel %vm3960_vm3, %v3952_v42, 0.0  ;;  %v4023_v18 = vsel %vm4021_vm4, %v4014_v50, 0.0 }
0x310a   :  { %v3926_v26 = vpop.permute.xlu0 %3925 }
0x310b   :  { %v3938_v58 = vpop.permute.xlu1 %3937  ;;  %v3953_v3 = vmul.f32 %v3926_v26, %v6937_v48 }
0x310c   :  { %v3956_v34 = vmul.f32 %v3938_v58, %v6949_v27 }
0x310d   :  { %v3962_v46 = vsel %vm3960_vm3, %v3953_v3, 0.0 }
0x310e   :  { %v3930_v53 = vpop.permute.xlu0 %3929  ;;  %v3963_v1 = vadd.f32 %v3962_v46, %v3961_v22  ;;  %v3968_v14 = vsel %vm3960_vm3, %v3956_v34, 0.0 }
0x310f   :  { %v3942_v30 = vpop.permute.xlu1 %3941  ;;  %v3954_v32 = vmul.f32 %v3930_v53, %v6941_v6 }
0x3110   :  { %v3957_v29 = vmul.f32 %v3942_v30, %v6953_v28 }
0x3111   :  { %v3964_v61 = vsel %vm3960_vm3, %v3954_v32, 0.0 }
0x3112   :  { %v3965_v2 = vadd.f32 %v3964_v61, %v3963_v1  ;;  %v3970_v44 = vsel %vm3960_vm3, %v3957_v29, 0.0 }
0x3113   :  { %v3983_v63 = vpop.permute.xlu0 %3982  ;;  %v3946_v24 = vpop.permute.xlu1 %3945 }
0x3114   :  { %v3958_v15 = vmul.f32 %v3946_v24, %v6957_v41  ;;  %v4013_v8 = vmul.f32 %v3983_v63, %v6913_v7 }
0x3116   :  { %v3972_v35 = vsel %vm3960_vm3, %v3958_v15, 0.0  ;;  %v4022_v13 = vsel %vm4021_vm4, %v4013_v8, 0.0 }
0x3117   :  { %v3950_v20 = vpop.permute.xlu1 %3949  ;;  %v4024_v16 = vadd.f32 %v4023_v18, %v4022_v13  ;;  %v4272_v13 = vld [vmem:[%s7159_s11] ss:$0 sm:$0xff]  ;;  %s5829_s11 = smov 126  }
0x3118   :  { %v3934_v49 = vpop.permute.xlu0 %3933  ;;  %v3959_v45 = vmul.f32 %v3950_v20, %v7019_v51 }
0x3119   :  { %v3955_v21 = vmul.f32 %v3934_v49, %v6945_v23 }
0x311a   :  { %v3974_v36 = vsel %vm3960_vm3, %v3959_v45, 0.0 }
0x311b   :  { %v3966_v31 = vsel %vm3960_vm3, %v3955_v21, 0.0 }
0x311c   :  { %v3967_v33 = vadd.f32 %v3966_v31, %v3965_v2  ;;  %v4011_v26 = vpop.permute.xlu1 %4010 }
0x311d   :  { %v3991_v12 = vpop.permute.xlu0 %3990  ;;  %v4020_v42 = vmul.f32 %v4011_v26, %v7019_v51 }
0x311e   :  { %v3969_v17 = vadd.f32 %v3968_v14, %v3967_v33  ;;  %v4015_v56 = vmul.f32 %v3991_v12, %v6941_v6 }
0x311f   :  { %v4035_v22 = vsel %vm4021_vm4, %v4020_v42, 0.0 }
0x3120   :  { %v3971_v52 = vadd.f32 %v3970_v44, %v3969_v17  ;;  %v4025_v47 = vsel %vm4021_vm4, %v4015_v56, 0.0 }
0x3121   :  { %v3995_v40 = vpop.permute.xlu0 %3994  ;;  %v4026_v60 = vadd.f32 %v4025_v47, %v4024_v16  ;;  %v3864_v1 = vpop.permute.xlu1 %3863 }
0x3122   :  { %v3973_v38 = vadd.f32 %v3972_v35, %v3971_v52  ;;  %v4016_v4 = vmul.f32 %v3995_v40, %v6945_v23  ;;  %v3897_v21 = vmul.f32 %v3864_v1, %v6937_v48 }
0x3124   :  { %v3975_v62 = vadd.f32 %v3974_v36, %v3973_v38  ;;  %v4027_v11 = vsel %vm4021_vm4, %v4016_v4, 0.0  ;;  %v3905_v2 = vsel %vm647_vm11, %v3897_v21, 0.0 }
0x3125   :  { %v3999_v57 = vpop.permute.xlu0 %3998  ;;  %v4028_v58 = vadd.f32 %v4027_v11, %v4026_v60  ;;  %v3869_v54 = vpop.permute.xlu1 %3868 }
0x3126   :  { %v4017_v5 = vmul.f32 %v3999_v57, %v6949_v27  ;;  %3977 = vrot.lane.b32.xlu1 %v3975_v62, %s5823_s17  ;;  %v3898_v55 = vmul.f32 %v3869_v54, %v6941_v6  ;;  %s5830_s17 = smov 2  }
0x3128   :  { %v4029_v43 = vsel %vm4021_vm4, %v4017_v5, 0.0  ;;  %v3907_v31 = vsel %vm647_vm11, %v3898_v55, 0.0 }
0x3129   :  { %v4003_v59 = vpop.permute.xlu0 %4002  ;;  %v4030_v30 = vadd.f32 %v4029_v43, %v4028_v58  ;;  %v3879_v20 = vpop.permute.xlu1 %3878 }
0x312a   :  { %v4018_v39 = vmul.f32 %v4003_v59, %v6953_v28  ;;  %v3900_v48 = vmul.f32 %v3879_v20, %v6949_v27 }
0x312c   :  { %v4031_v53 = vsel %vm4021_vm4, %v4018_v39, 0.0  ;;  %v3911_v12 = vsel %vm647_vm11, %v3900_v48, 0.0 }
0x312d   :  { %v4007_v3 = vpop.permute.xlu0 %4006  ;;  %v4032_v63 = vadd.f32 %v4031_v53, %v4030_v30  ;;  %v3889_v17 = vpop.permute.xlu1 %3888 }
0x312e   :  { %v4019_v32 = vmul.f32 %v4007_v3, %v6957_v41 }
0x3130   :  { %v4033_v46 = vsel %vm4021_vm4, %v4019_v32, 0.0 }
0x3131   :  { %v4034_v24 = vadd.f32 %v4033_v46, %v4032_v63 }
0x3132   :  { %v3859_v49 = vpop.permute.xlu0 %3858 }
0x3133   :  { %v4036_v61 = vadd.f32 %v4035_v22, %v4034_v24  ;;  %v3896_v34 = vmul.f32 %v3859_v49, %v6913_v7 }
0x3135   :  { %4038 = vrot.lane.b32.xlu0 %v4036_v61, %s5821_s5  ;;  %v3904_v10 = vsel %vm647_vm11, %v3896_v34, 0.0 }
0x3136   :  { %v3874_v0 = vpop.permute.xlu0 %3873  ;;  %v3906_v9 = vadd.f32 %v3905_v2, %v3904_v10 }
0x3137   :  { %v3899_v29 = vmul.f32 %v3874_v0, %v6945_v23  ;;  %v3902_v23 = vmul.f32 %v3889_v17, %v6957_v41 }
0x3138   :  { %v3908_v33 = vadd.f32 %v3907_v31, %v3906_v9 }
0x3139   :  { %v3909_v25 = vsel %vm647_vm11, %v3899_v29, 0.0  ;;  %v3915_v35 = vsel %vm647_vm11, %v3902_v23, 0.0 }
0x313a   :  { %v3884_v7 = vpop.permute.xlu0 %3883  ;;  %v3910_v14 = vadd.f32 %v3909_v25, %v3908_v33 }
0x313b   :  { %v3901_v15 = vmul.f32 %v3884_v7, %v6953_v28 }
0x313c   :  { %v3912_v44 = vadd.f32 %v3911_v12, %v3910_v14 }
0x313d   :  { %v3913_v6 = vsel %vm647_vm11, %v3901_v15, 0.0 }
0x313e   :  { %v3894_v45 = vpop.permute.xlu0 %3893  ;;  %v3914_v8 = vadd.f32 %v3913_v6, %v3912_v44 }
0x313f   :  { %v3903_v52 = vmul.f32 %v3894_v45, %v7019_v51 }
0x3140   :  { %v3916_v40 = vadd.f32 %v3915_v35, %v3914_v8 }
0x3141   :  { %v3917_v27 = vsel %vm647_vm11, %v3903_v52, 0.0 }
0x3142   :  { %v3918_v56 = vadd.f32 %v3917_v27, %v3916_v40 }
0x3198   :  { %v3978_v50 = vpop.permute.xlu1 %3977 }
0x3199   :  { %v3980_v28 = vadd.f32 %v3978_v50, %v3918_v56 }
0x31a7   :  { %v4039_v38 = vpop.permute.xlu0 %4038 }
0x31a8   :  { %v4041_v36 = vadd.f32 %v4039_v38, %v3980_v28 }
0x31aa   :  { %4888 = vmatmul.mubr.msk.f32.vlgmr.msra.gmra.mrb[36].mxu0 %vm647_vm11, %v4041_v36 }
0x327d   :  { %v4122_v41 = vpop.f32.mrb[36].mxu0 }
0x327e   :  { %v4123_v51 = vadd.f32 %v4272_v13, %v4122_v41  ;;  %v4889_v4 = vpop.f32.mrb[37].mxu0 }
0x3280   :  { %v4140_v62 = vsel %vm4139_vm5, %v4123_v51, -inf  ;;  %v4127_v57 = vsel %vm4126_vm6, %v4123_v51, -inf }
0x3281   :  { %4141 = vmax.xlane.f32.xlu0 %v4140_v62  ;;  %4128 = vmax.xlane.f32.xlu1 %v4127_v57 }
0x330e   :  { %v4142_v18 = vpop.xlane.xlu0 %4141  ;;  %v4129_v47 = vpop.xlane.xlu1 %4128 }
0x330f   :  { %v4143_v5 = vsub.f32 %v4123_v51, %v4142_v18  ;;  %v4130_v16 = vsub.f32 %v4123_v51, %v4129_v47 }
0x3311   :  { %v4144_v11 = vmul.f32 1.442695, %v4143_v5  ;;  %v4131_v60 = vmul.f32 1.442695, %v4130_v16 }
0x3313   :  { %5687 = vpow2.f32 %v4144_v11 }
0x3314   :  { %5689 = vpow2.f32 %v4131_v60 }
0x331d   :  { %v5688_v59 = vpop.eup %5687 }
0x331e   :  { %v5690_v43 = vpop.eup %5689  ;;  %4147 = vrot.lane.b32.xlu1 %v5688_v59, %s5829_s11 }
0x331f   :  { %v4133_v39 = vsel %vm4126_vm6, %v5690_v43, 0.0 }
0x3320   :  { %4134 = vadd.xlane.f32.xlu0 %v4133_v39 }
0x3390   :  { %v4148_v26 = vpop.permute.xlu1 %4147 }
0x3391   :  { %v4150_v58 = vsel %vm4126_vm6, %v4148_v26, 0.0 }
0x3392   :  { %4151 = vadd.xlane.f32.xlu0 %v4150_v58 }
0x33ad   :  { %v4135_v53 = vpop.xlane.xlu0 %4134 }
0x33ae   :  { %5691 = vrcp.f32 %v4135_v53 }
0x33b8   :  { %v5692_v30 = vpop.eup %5691 }
0x33b9   :  { %v4137_v3 = vmul.f32 %v5692_v30, %v5690_v43 }
0x33bb   :  { %v4138_v42 = vsel %vm467_vm1, %v4137_v3, 0.0 }
0x33bc   :  { %4156 = vrot.lane.b32.xlu0 %v4138_v42, %s5830_s17 }
0x341f   :  { %v4152_v32 = vpop.xlane.xlu0 %4151 }
0x3420   :  { %5693 = vrcp.f32 %v4152_v32 }
0x342a   :  { %v5694_v63 = vpop.eup %5693 }
0x342b   :  { %v4154_v46 = vmul.f32 %v5694_v63, %v5688_v59 }
0x342e   :  { %v4157_v24 = vpop.permute.xlu0 %4156 }
0x342f   :  { %v4159_v22 = vsel %vm490_vm2, %v4154_v46, %v4157_v24 }
0x3430   :  { %4161 = vrot.lane.b32.xlu1 %v4159_v22, %s5829_s11 }
0x34a2   :  { %v4162_v61 = vpop.permute.xlu1 %4161 }
0x34a3   :  { %4164 = vst.msk [vmem:[%s7166_s18] sm:$0xff] %vm4126_vm6, %v4162_v61 }
0x34a4   :  { %4169 = vsyncpa [#allocation7], 1 }
0x34a5   :  { %4170 = vsyncpa [#allocation9], 1 }
0x34a6   :  { %4171 = vsyncpa [#allocation12], 1 }

</bundles_post_ra>
